<compile_context>
chip_gen: v7x
topology: tpu7x:2x2x1
jax: 0.10.0
libtpu: 0.0.40
codegen_flags: <defaults>
</compile_context>

<pallas_src>
import functools
import numpy as np
import jax
import jax.numpy as jnp
from jax import lax
from jax.experimental import pallas as pl
from jax.experimental.pallas import tpu as pltpu


# ------------------------- fully fused forward kernel -------------------------

def _fused_vrc_kernel(x_ref, xt_ref, sin_ref, cos_ref, sint_ref, cost_ref,
                      wq_ref, bq_ref, wk_ref, bk_ref, wv_ref, bv_ref,
                      lw_ref, lb_ref, mw_ref, mh_ref, wo_ref, ob_ref,
                      o_ref, vw_ref, vpad_ref):
    n = pl.program_id(1)                       # head index (reduction / accumulation axis)
    H, W, C = x_ref.shape[1], x_ref.shape[2], x_ref.shape[3]
    kd = wq_ref.shape[2]
    hd = wv_ref.shape[2]
    KH, KW = lw_ref.shape[1], lw_ref.shape[2]
    pad = KH // 2
    f32, bf16 = jnp.float32, jnp.bfloat16

    def rotate_every_two(t):
        # out[2i] = -t[2i+1], out[2i+1] = t[2i]; the circular wrap entries are never selected.
        left = jnp.concatenate([t[:, 1:], t[:, :1]], axis=1)      # t[j+1]
        right = jnp.concatenate([t[:, -1:], t[:, :-1]], axis=1)   # t[j-1]
        lane = lax.broadcasted_iota(jnp.int32, t.shape, 1)
        return jnp.where(lane % 2 == 0, -left, right)

    def theta_shift(t, s, c):
        return t * c + rotate_every_two(t) * s

    def proj(x_bf, w_ref_, b_ref_):
        # bf16 MXU matmul, f32 accumulation + f32 bias.
        return jnp.dot(x_bf, w_ref_[0], preferred_element_type=f32) + b_ref_[0]

    def softmax_last(s):
        s = s - jnp.max(s, axis=-1, keepdims=True)
        e = jnp.exp(s)
        return e * pl.reciprocal(jnp.sum(e, axis=-1, keepdims=True), approx=True)

    # ---- per-head projections in both spatial orientations (per-head weights come pre-sliced
    #      through the BlockSpec; k-scaling already folded into wk/bk on the host) ----
    x2d = x_ref[0].reshape(H * W, C).astype(bf16)     # rows ordered (h, w)
    xt2d = xt_ref[0].reshape(W * H, C).astype(bf16)   # rows ordered (w, h)

    qr = theta_shift(proj(x2d, wq_ref, bq_ref), sin_ref[...], cos_ref[...])        # (HW, kd) f32
    kr = theta_shift(proj(x2d, wk_ref, bk_ref), sin_ref[...], cos_ref[...])        # (HW, kd)
    v = proj(x2d, wv_ref, bv_ref)                                                  # (HW, hd)
    qr_t = theta_shift(proj(xt2d, wq_ref, bq_ref), sint_ref[...], cost_ref[...])   # (WH, kd)
    kr_t = theta_shift(proj(xt2d, wk_ref, bk_ref), sint_ref[...], cost_ref[...])   # (WH, kd)
    v_t = proj(xt2d, wv_ref, bv_ref)                                               # (WH, hd)

    # ---- width retention: image rows are the leading batch dim of a single 3-D dot ----
    qr3 = qr.reshape(H, W, kd).astype(bf16)
    kr3 = kr.reshape(H, W, kd).astype(bf16)
    v3 = v.reshape(H, W, hd).astype(bf16)
    s_w = lax.dot_general(qr3, kr3, (((2,), (2,)), ((0,), (0,))),
                          preferred_element_type=f32)                  # (H, W, W)
    p_w = softmax_last(s_w + mw_ref[0]).astype(bf16)
    vw = lax.dot_general(p_w, v3, (((2,), (1,)), ((0,), (0,))),
                         preferred_element_type=f32)                   # (H, W, hd)
    vw_ref[...] = vw

    # ---- lepe: depthwise KHxKW conv of v, computed directly in (W, H) orientation so it can be
    #      added to the height-stage output without any transpose ----
    vpad_ref[...] = jnp.zeros(vpad_ref.shape, f32)
    vpad_ref[pad:pad + W, pad:pad + H, :] = v_t.reshape(W, H, hd)
    lepe_t = jnp.zeros((W, H, hd), f32)
    # TODO(synk): per-head hd lanes under-fill the VPU; pack several heads per step once
    #             num_heads*head_dim >= 128 lanes.
    for ky in range(KH):
        for kx in range(KW):
            lepe_t = lepe_t + vpad_ref[kx:kx + W, ky:ky + H, :] * lw_ref[0, ky, kx:kx + 1, :]
    lepe_t = lepe_t + lb_ref[0]

    # ---- height retention: one (H, H) attention per image column, reading the width-stage output
    #      column-wise from the VMEM scratch (no permutation matmul, no in-kernel transpose) ----
    qr_tb = qr_t.astype(bf16)
    kr_tb = kr_t.astype(bf16)
    cols = []
    # TODO(synk): for production W convert this unrolled loop into lax.fori_loop (or a third grid
    #             axis) to bound instruction count.
    for w in range(W):
        q_col = qr_tb[w * H:(w + 1) * H, :]                                   # (H, kd)
        k_col = kr_tb[w * H:(w + 1) * H, :]                                   # (H, kd)
        s_h = lax.dot_general(q_col, k_col, (((1,), (1,)), ((), ())),
                              preferred_element_type=f32)                     # (H, H)
        p_h = softmax_last(s_h + mh_ref[0]).astype(bf16)
        v_col = vw_ref[:, w, :].astype(bf16)                                  # (H, hd)
        cols.append(jnp.dot(p_h, v_col, preferred_element_type=f32))          # (H, hd)
    out_t = jnp.stack(cols, axis=0)                                           # (W, H, hd)

    # ---- fold the lepe residual and this head's slice of the output projection; accumulate over
    #      heads into the resident output block (single full-width store per image) ----
    contrib = jnp.dot((out_t + lepe_t).reshape(W * H, hd).astype(bf16), wo_ref[0],
                      preferred_element_type=f32).reshape(W, H, C)

    @pl.when(n == 0)
    def _init():
        o_ref[0] = jnp.broadcast_to(ob_ref[0], (W, H, C)).astype(o_ref.dtype)

    o_ref[0] += contrib.astype(o_ref.dtype)


# ------------------------- wrapper -------------------------

def vision_retention_chunk_forward(x, sin, cos, mask_h, mask_w, params, num_heads):
    B, H, W, C = x.shape
    kd = C // num_heads
    Cv = params["v_w"].shape[1]
    hd = Cv // num_heads
    KH, KW, _ = params["lepe_w"].shape
    scaling = kd ** (-0.5)
    bf16 = jnp.bfloat16

    # Host-side per-head weight layouts (tiny, one-time): heads are selected by BlockSpec index
    # maps so the kernel never lane-slices activations.  k-scaling folded in once.  MXU weights
    # are pre-cast to bf16; elementwise-path params (lepe, biases, masks, sin/cos) stay f32.
    wq = params["q_w"].reshape(C, num_heads, kd).transpose(1, 0, 2).astype(bf16)
    wk = (params["k_w"] * scaling).reshape(C, num_heads, kd).transpose(1, 0, 2).astype(bf16)
    wv = params["v_w"].reshape(C, num_heads, hd).transpose(1, 0, 2).astype(bf16)
    bq = params["q_b"].reshape(num_heads, 1, kd)
    bk = (params["k_b"] * scaling).reshape(num_heads, 1, kd)
    bv = params["v_b"].reshape(num_heads, 1, hd)
    lw = params["lepe_w"].reshape(KH, KW, num_heads, hd).transpose(2, 0, 1, 3)
    lb = params["lepe_b"].reshape(num_heads, 1, hd)
    wo = params["o_w"].reshape(num_heads, hd, C).astype(bf16)
    ob = params["o_b"].reshape(1, 1, C)

    x_t = jnp.transpose(x, (0, 2, 1, 3))                    # (B, W, H, C): thin XLA layout glue
    sin2 = sin.reshape(H * W, kd)
    cos2 = cos.reshape(H * W, kd)
    sin2t = jnp.transpose(sin, (1, 0, 2)).reshape(W * H, kd)
    cos2t = jnp.transpose(cos, (1, 0, 2)).reshape(W * H, kd)

    out_t = pl.pallas_call(
        _fused_vrc_kernel,
        out_shape=jax.ShapeDtypeStruct((B, W, H, C), x.dtype),
        grid=(B, num_heads),
        in_specs=[
            pl.BlockSpec((1, H, W, C), lambda b, n: (b, 0, 0, 0)),      # x
            pl.BlockSpec((1, W, H, C), lambda b, n: (b, 0, 0, 0)),      # x (spatially transposed)
            pl.BlockSpec((H * W, kd), lambda b, n: (0, 0)),             # sin
            pl.BlockSpec((H * W, kd), lambda b, n: (0, 0)),             # cos
            pl.BlockSpec((W * H, kd), lambda b, n: (0, 0)),             # sin (transposed order)
            pl.BlockSpec((W * H, kd), lambda b, n: (0, 0)),             # cos (transposed order)
            pl.BlockSpec((1, C, kd), lambda b, n: (n, 0, 0)),           # wq (per head)
            pl.BlockSpec((1, 1, kd), lambda b, n: (n, 0, 0)),           # bq
            pl.BlockSpec((1, C, kd), lambda b, n: (n, 0, 0)),           # wk (pre-scaled)
            pl.BlockSpec((1, 1, kd), lambda b, n: (n, 0, 0)),           # bk (pre-scaled)
            pl.BlockSpec((1, C, hd), lambda b, n: (n, 0, 0)),           # wv
            pl.BlockSpec((1, 1, hd), lambda b, n: (n, 0, 0)),           # bv
            pl.BlockSpec((1, KH, KW, hd), lambda b, n: (n, 0, 0, 0)),   # lepe weight (per head)
            pl.BlockSpec((1, 1, hd), lambda b, n: (n, 0, 0)),           # lepe bias
            pl.BlockSpec((1, W, W), lambda b, n: (n, 0, 0)),            # width decay mask
            pl.BlockSpec((1, H, H), lambda b, n: (n, 0, 0)),            # height decay mask
            pl.BlockSpec((1, hd, C), lambda b, n: (n, 0, 0)),           # out-proj weight (per head)
            pl.BlockSpec((1, 1, C), lambda b, n: (0, 0, 0)),            # out-proj bias
        ],
        out_specs=pl.BlockSpec((1, W, H, C), lambda b, n: (b, 0, 0, 0)),
        scratch_shapes=[
            pltpu.VMEM((H, W, hd), jnp.float32),                        # width-stage output
            pltpu.VMEM((W + KH - 1, H + KW - 1, hd), jnp.float32),      # padded v for lepe
        ],
        compiler_params=pltpu.CompilerParams(
            dimension_semantics=("parallel", "arbitrary")),
        # TODO(synk): at production H,W,C add a row-tile grid axis and set vmem_limit_bytes so the
        #             per-step blocks fit v7x's 64 MiB VMEM with double-buffering.
    )(x, x_t, sin2, cos2, sin2t, cos2t, wq, bq, wk, bk, wv, bv, lw, lb,
      mask_w, mask_h, wo, ob)

    # Kernel output is in (B, W, H, C) orientation (height retention is the last stage);
    # restore (B, H, W, C) with one XLA copy of the smallest tensor.
    return jnp.transpose(out_t, (0, 2, 1, 3))


# ------------------------- pure-JAX reference (mirrors the PyTorch module) -------------------------

def _rotate_every_two_ref(x):
    x1 = x[..., ::2]
    x2 = x[..., 1::2]
    return jnp.stack([-x2, x1], axis=-1).reshape(x.shape)


def _theta_shift_ref(x, sin, cos):
    return x * cos + _rotate_every_two_ref(x) * sin


def forward_ref(x, sin, cos, mask_h, mask_w, params, num_heads):
    B, H, W, C = x.shape
    key_dim = C // num_heads
    Cv = params["v_w"].shape[1]
    head_dim = Cv // num_heads
    scaling = key_dim ** (-0.5)

    q = x @ params["q_w"] + params["q_b"]
    k = (x @ params["k_w"] + params["k_b"]) * scaling
    v = x @ params["v_w"] + params["v_b"]

    lepe = jax.lax.conv_general_dilated(
        v, params["lepe_w"][:, :, None, :], window_strides=(1, 1),
        padding=((2, 2), (2, 2)), dimension_numbers=("NHWC", "HWIO", "NHWC"),
        feature_group_count=Cv) + params["lepe_b"]

    q = q.reshape(B, H, W, num_heads, key_dim).transpose(0, 3, 1, 2, 4)
    k = k.reshape(B, H, W, num_heads, key_dim).transpose(0, 3, 1, 2, 4)
    qr = _theta_shift_ref(q, sin, cos)
    kr = _theta_shift_ref(k, sin, cos)

    qr_w = jnp.swapaxes(qr, 1, 2)
    kr_w = jnp.swapaxes(kr, 1, 2)
    vv = v.reshape(B, H, W, num_heads, head_dim).transpose(0, 1, 3, 2, 4)
    qk_w = qr_w @ jnp.swapaxes(kr_w, -1, -2) + mask_w
    qk_w = jax.nn.softmax(qk_w, axis=-1)
    vv = qk_w @ vv

    qr_h = qr.transpose(0, 3, 1, 2, 4)
    kr_h = kr.transpose(0, 3, 1, 2, 4)
    vv = vv.transpose(0, 3, 2, 1, 4)
    qk_h = qr_h @ jnp.swapaxes(kr_h, -1, -2) + mask_h
    qk_h = jax.nn.softmax(qk_h, axis=-1)
    out = qk_h @ vv
    out = out.transpose(0, 3, 1, 2, 4).reshape(B, H, W, Cv)
    out = out + lepe
    return out @ params["o_w"] + params["o_b"]


# ------------------------- main -------------------------

if __name__ == "__main__":
    key = jax.random.PRNGKey(0)
    B, H, W = 2, 8, 8
    embed_dim, num_heads, factor = 32, 4, 1
    key_dim = embed_dim // num_heads

    ks = jax.random.split(key, 10)

    def xavier(k, shape, gain):
        fan_in, fan_out = shape
        std = gain * (2.0 / (fan_in + fan_out)) ** 0.5
        return std * jax.random.normal(k, shape, jnp.float32)

    gain = 2 ** (-2.5)
    params = {
        "q_w": xavier(ks[0], (embed_dim, embed_dim), gain),
        "q_b": 0.02 * jax.random.normal(ks[1], (embed_dim,), jnp.float32),
        "k_w": xavier(ks[2], (embed_dim, embed_dim), gain),
        "k_b": 0.02 * jax.random.normal(ks[3], (embed_dim,), jnp.float32),
        "v_w": xavier(ks[4], (embed_dim, embed_dim * factor), gain),
        "v_b": 0.02 * jax.random.normal(ks[5], (embed_dim * factor,), jnp.float32),
        "o_w": xavier(ks[6], (embed_dim * factor, embed_dim), 1.0),
        "o_b": jnp.zeros((embed_dim,), jnp.float32),
        "lepe_w": 0.05 * jax.random.normal(ks[7], (5, 5, embed_dim * factor), jnp.float32),
        "lepe_b": 0.02 * jax.random.normal(ks[8], (embed_dim * factor,), jnp.float32),
    }

    x = jax.random.normal(ks[9], (B, H, W, embed_dim), jnp.float32)

    # rel_pos = ((sin, cos), (mask_h, mask_w)) -- deterministic synthetic values
    idx_h = jnp.arange(H, dtype=jnp.float32)
    idx_w = jnp.arange(W, dtype=jnp.float32)
    angle = 1.0 / (10000.0 ** (jnp.arange(key_dim // 2, dtype=jnp.float32) / (key_dim // 2)))
    angle = jnp.repeat(angle, 2)                                       # (key_dim,)
    theta = idx_h[:, None, None] + 0.5 * idx_w[None, :, None]          # (H, W, 1)
    sin = jnp.sin(theta * angle)                                       # (H, W, key_dim)
    cos = jnp.cos(theta * angle)
    decay = jnp.log(1.0 - 2.0 ** (-5.0 - jnp.arange(num_heads, dtype=jnp.float32)))
    mask_w = decay[:, None, None] * jnp.abs(idx_w[:, None] - idx_w[None, :])   # (N, W, W)
    mask_h = decay[:, None, None] * jnp.abs(idx_h[:, None] - idx_h[None, :])   # (N, H, H)

    fwd = jax.jit(functools.partial(vision_retention_chunk_forward, num_heads=num_heads))
    out = fwd(x, sin, cos, mask_h, mask_w, params)
    out = jax.block_until_ready(out)
    assert out.shape == (B, H, W, embed_dim)

    ref = forward_ref(x, sin, cos, mask_h, mask_w, params, num_heads)
    # Tolerance loosened vs. the f32 version: matmul inputs are bf16 (f32 accumulation) and the
    # softmax denominator uses the approximate EUP reciprocal.
    np.testing.assert_allclose(np.asarray(out), np.asarray(ref), rtol=2e-2, atol=2e-2)

    print("KERNEL_OK")
</pallas_src>

<mosaic_0001>
module attributes {stable_mosaic.version = 11 : i64} {
  func.func @_fused_vrc_kernel(%arg0: i32, %arg1: i32, %arg2: memref<1x8x8x32xf32, #tpu.memory_space<vmem>>, %arg3: memref<1x8x8x32xf32, #tpu.memory_space<vmem>>, %arg4: memref<64x8xf32, #tpu.memory_space<vmem>>, %arg5: memref<64x8xf32, #tpu.memory_space<vmem>>, %arg6: memref<64x8xf32, #tpu.memory_space<vmem>>, %arg7: memref<64x8xf32, #tpu.memory_space<vmem>>, %arg8: memref<1x32x8xbf16, #tpu.memory_space<vmem>>, %arg9: memref<1x1x8xf32, #tpu.memory_space<vmem>>, %arg10: memref<1x32x8xbf16, #tpu.memory_space<vmem>>, %arg11: memref<1x1x8xf32, #tpu.memory_space<vmem>>, %arg12: memref<1x32x8xbf16, #tpu.memory_space<vmem>>, %arg13: memref<1x1x8xf32, #tpu.memory_space<vmem>>, %arg14: memref<1x5x5x8xf32, #tpu.memory_space<vmem>>, %arg15: memref<1x1x8xf32, #tpu.memory_space<vmem>>, %arg16: memref<1x8x8xf32, #tpu.memory_space<vmem>>, %arg17: memref<1x8x8xf32, #tpu.memory_space<vmem>>, %arg18: memref<1x8x32xbf16, #tpu.memory_space<vmem>>, %arg19: memref<1x1x32xf32, #tpu.memory_space<vmem>>, %arg20: memref<1x8x8x32xf32, #tpu.memory_space<vmem>>, %arg21: memref<8x8x8xf32, #tpu.memory_space<vmem>>, %arg22: memref<12x12x8xf32, #tpu.memory_space<vmem>>) attributes {dimension_semantics = [#tpu.dimension_semantics<parallel>, #tpu.dimension_semantics<arbitrary>], iteration_bounds = array<i64: 2, 4>, scalar_prefetch = 0 : i64, scratch_operands = 2 : i64, tpu.core_type = #tpu.core_type<tc>, window_params = [{transform_indices = @transform_0, window_bounds = array<i64: 1, 8, 8, 32>}, {transform_indices = @transform_1, window_bounds = array<i64: 1, 8, 8, 32>}, {pipeline_mode = #tpu.pipeline_mode<synchronous>, transform_indices = @transform_2, window_bounds = array<i64: 64, 8>}, {pipeline_mode = #tpu.pipeline_mode<synchronous>, transform_indices = @transform_3, window_bounds = array<i64: 64, 8>}, {pipeline_mode = #tpu.pipeline_mode<synchronous>, transform_indices = @transform_4, window_bounds = array<i64: 64, 8>}, {pipeline_mode = #tpu.pipeline_mode<synchronous>, transform_indices = @transform_5, window_bounds = array<i64: 64, 8>}, {transform_indices = @transform_6, window_bounds = array<i64: 1, 32, 8>}, {transform_indices = @transform_7, window_bounds = array<i64: 1, 1, 8>}, {transform_indices = @transform_8, window_bounds = array<i64: 1, 32, 8>}, {transform_indices = @transform_9, window_bounds = array<i64: 1, 1, 8>}, {transform_indices = @transform_10, window_bounds = array<i64: 1, 32, 8>}, {transform_indices = @transform_11, window_bounds = array<i64: 1, 1, 8>}, {transform_indices = @transform_12, window_bounds = array<i64: 1, 5, 5, 8>}, {transform_indices = @transform_13, window_bounds = array<i64: 1, 1, 8>}, {transform_indices = @transform_14, window_bounds = array<i64: 1, 8, 8>}, {transform_indices = @transform_15, window_bounds = array<i64: 1, 8, 8>}, {transform_indices = @transform_16, window_bounds = array<i64: 1, 8, 32>}, {pipeline_mode = #tpu.pipeline_mode<synchronous>, transform_indices = @transform_17, window_bounds = array<i64: 1, 1, 32>}, {transform_indices = @transform_18, window_bounds = array<i64: 1, 8, 8, 32>}]} {
    %c0 = arith.constant 0 : index
    %c0_0 = arith.constant 0 : index
    %c0_1 = arith.constant 0 : index
    %c0_2 = arith.constant 0 : index
    %0 = vector.load %arg2[%c0, %c0_0, %c0_1, %c0_2] : memref<1x8x8x32xf32, #tpu.memory_space<vmem>>, vector<1x8x8x32xf32>
    %1 = vector.shape_cast %0 : vector<1x8x8x32xf32> to vector<8x8x32xf32>
    %2 = vector.shape_cast %1 : vector<8x8x32xf32> to vector<64x32xf32>
    %3 = arith.truncf %2 : vector<64x32xf32> to vector<64x32xbf16>
    %c0_3 = arith.constant 0 : index
    %c0_4 = arith.constant 0 : index
    %c0_5 = arith.constant 0 : index
    %c0_6 = arith.constant 0 : index
    %4 = vector.load %arg3[%c0_3, %c0_4, %c0_5, %c0_6] : memref<1x8x8x32xf32, #tpu.memory_space<vmem>>, vector<1x8x8x32xf32>
    %5 = vector.shape_cast %4 : vector<1x8x8x32xf32> to vector<8x8x32xf32>
    %6 = vector.shape_cast %5 : vector<8x8x32xf32> to vector<64x32xf32>
    %7 = arith.truncf %6 : vector<64x32xf32> to vector<64x32xbf16>
    %c0_7 = arith.constant 0 : index
    %c0_8 = arith.constant 0 : index
    %c0_9 = arith.constant 0 : index
    %8 = vector.load %arg8[%c0_7, %c0_8, %c0_9] : memref<1x32x8xbf16, #tpu.memory_space<vmem>>, vector<1x32x8xbf16>
    %9 = vector.shape_cast %8 : vector<1x32x8xbf16> to vector<32x8xbf16>
    %cst = arith.constant dense<0.000000e+00> : vector<64x8xf32>
    %10 = tpu.matmul %3, %9, %cst {dimension_numbers = #tpu.dot_dimension_numbers<[1], [0], [0], [1], [0, 0, 1, 1], [], []>} : vector<64x32xbf16>, vector<32x8xbf16>, vector<64x8xf32> -> vector<64x8xf32>
    %c0_10 = arith.constant 0 : index
    %c0_11 = arith.constant 0 : index
    %c0_12 = arith.constant 0 : index
    %11 = vector.load %arg9[%c0_10, %c0_11, %c0_12] : memref<1x1x8xf32, #tpu.memory_space<vmem>>, vector<1x1x8xf32>
    %12 = vector.shape_cast %11 : vector<1x1x8xf32> to vector<1x8xf32>
    %13 = vector.broadcast %12 : vector<1x8xf32> to vector<64x8xf32>
    %14 = arith.addf %10, %13 : vector<64x8xf32>
    %c0_13 = arith.constant 0 : index
    %c0_14 = arith.constant 0 : index
    %15 = vector.load %arg4[%c0_13, %c0_14] : memref<64x8xf32, #tpu.memory_space<vmem>>, vector<64x8xf32>
    %c0_15 = arith.constant 0 : index
    %c0_16 = arith.constant 0 : index
    %16 = vector.load %arg5[%c0_15, %c0_16] : memref<64x8xf32, #tpu.memory_space<vmem>>, vector<64x8xf32>
    %17 = arith.mulf %14, %16 : vector<64x8xf32>
    %18 = vector.extract_strided_slice %14 {offsets = [0, 1], sizes = [64, 7], strides = [1, 1]} : vector<64x8xf32> to vector<64x7xf32>
    %19 = vector.extract_strided_slice %14 {offsets = [0, 0], sizes = [64, 1], strides = [1, 1]} : vector<64x8xf32> to vector<64x1xf32>
    %20 = tpu.concatenate %18, %19 in 1 : vector<64x7xf32>, vector<64x1xf32> -> vector<64x8xf32>
    %21 = vector.extract_strided_slice %14 {offsets = [0, 7], sizes = [64, 1], strides = [1, 1]} : vector<64x8xf32> to vector<64x1xf32>
    %22 = vector.extract_strided_slice %14 {offsets = [0, 0], sizes = [64, 7], strides = [1, 1]} : vector<64x8xf32> to vector<64x7xf32>
    %23 = tpu.concatenate %21, %22 in 1 : vector<64x1xf32>, vector<64x7xf32> -> vector<64x8xf32>
    %24 = tpu.iota {dimensions = array<i32: 1>} : vector<64x8xi32>
    %c2_i32 = arith.constant 2 : i32
    %c0_i32 = arith.constant 0 : i32
    %25 = arith.cmpi eq, %c2_i32, %c0_i32 : i32
    %c1_i32 = arith.constant 1 : i32
    %26 = arith.select %25, %c1_i32, %c2_i32 : i32
    %27 = vector.broadcast %26 : i32 to vector<64x8xi32>
    %28 = arith.remsi %24, %27 : vector<64x8xi32>
    %c0_i32_17 = arith.constant 0 : i32
    %29 = vector.broadcast %c0_i32_17 : i32 to vector<64x8xi32>
    %30 = arith.cmpi ne, %28, %29 : vector<64x8xi32>
    %c0_i32_18 = arith.constant 0 : i32
    %31 = vector.broadcast %c0_i32_18 : i32 to vector<64x8xi32>
    %32 = arith.cmpi slt, %28, %31 : vector<64x8xi32>
    %c0_i32_19 = arith.constant 0 : i32
    %33 = arith.cmpi slt, %26, %c0_i32_19 : i32
    %34 = vector.broadcast %33 : i1 to vector<64x8xi1>
    %35 = vector.broadcast %34 : vector<64x8xi1> to vector<64x8xi1>
    %36 = arith.xori %32, %35 : vector<64x8xi1>
    %37 = arith.andi %36, %30 : vector<64x8xi1>
    %38 = vector.broadcast %26 : i32 to vector<64x8xi32>
    %39 = arith.addi %28, %38 : vector<64x8xi32>
    %40 = arith.select %37, %39, %28 : vector<64x8xi1>, vector<64x8xi32>
    %c0_i32_20 = arith.constant 0 : i32
    %41 = vector.broadcast %c0_i32_20 : i32 to vector<64x8xi32>
    %42 = arith.cmpi eq, %40, %41 : vector<64x8xi32>
    %cst_21 = arith.constant 0.000000e+00 : f32
    %43 = vector.broadcast %cst_21 : f32 to vector<64x8xf32>
    %44 = arith.subf %43, %20 : vector<64x8xf32>
    %45 = arith.select %42, %44, %23 : vector<64x8xi1>, vector<64x8xf32>
    %46 = arith.mulf %45, %15 : vector<64x8xf32>
    %47 = arith.addf %17, %46 : vector<64x8xf32>
    %c0_22 = arith.constant 0 : index
    %c0_23 = arith.constant 0 : index
    %c0_24 = arith.constant 0 : index
    %48 = vector.load %arg10[%c0_22, %c0_23, %c0_24] : memref<1x32x8xbf16, #tpu.memory_space<vmem>>, vector<1x32x8xbf16>
    %49 = vector.shape_cast %48 : vector<1x32x8xbf16> to vector<32x8xbf16>
    %cst_25 = arith.constant dense<0.000000e+00> : vector<64x8xf32>
    %50 = tpu.matmul %3, %49, %cst_25 {dimension_numbers = #tpu.dot_dimension_numbers<[1], [0], [0], [1], [0, 0, 1, 1], [], []>} : vector<64x32xbf16>, vector<32x8xbf16>, vector<64x8xf32> -> vector<64x8xf32>
    %c0_26 = arith.constant 0 : index
    %c0_27 = arith.constant 0 : index
    %c0_28 = arith.constant 0 : index
    %51 = vector.load %arg11[%c0_26, %c0_27, %c0_28] : memref<1x1x8xf32, #tpu.memory_space<vmem>>, vector<1x1x8xf32>
    %52 = vector.shape_cast %51 : vector<1x1x8xf32> to vector<1x8xf32>
    %53 = vector.broadcast %52 : vector<1x8xf32> to vector<64x8xf32>
    %54 = arith.addf %50, %53 : vector<64x8xf32>
    %c0_29 = arith.constant 0 : index
    %c0_30 = arith.constant 0 : index
    %55 = vector.load %arg4[%c0_29, %c0_30] : memref<64x8xf32, #tpu.memory_space<vmem>>, vector<64x8xf32>
    %c0_31 = arith.constant 0 : index
    %c0_32 = arith.constant 0 : index
    %56 = vector.load %arg5[%c0_31, %c0_32] : memref<64x8xf32, #tpu.memory_space<vmem>>, vector<64x8xf32>
    %57 = arith.mulf %54, %56 : vector<64x8xf32>
    %58 = vector.extract_strided_slice %54 {offsets = [0, 1], sizes = [64, 7], strides = [1, 1]} : vector<64x8xf32> to vector<64x7xf32>
    %59 = vector.extract_strided_slice %54 {offsets = [0, 0], sizes = [64, 1], strides = [1, 1]} : vector<64x8xf32> to vector<64x1xf32>
    %60 = tpu.concatenate %58, %59 in 1 : vector<64x7xf32>, vector<64x1xf32> -> vector<64x8xf32>
    %61 = vector.extract_strided_slice %54 {offsets = [0, 7], sizes = [64, 1], strides = [1, 1]} : vector<64x8xf32> to vector<64x1xf32>
    %62 = vector.extract_strided_slice %54 {offsets = [0, 0], sizes = [64, 7], strides = [1, 1]} : vector<64x8xf32> to vector<64x7xf32>
    %63 = tpu.concatenate %61, %62 in 1 : vector<64x1xf32>, vector<64x7xf32> -> vector<64x8xf32>
    %64 = tpu.iota {dimensions = array<i32: 1>} : vector<64x8xi32>
    %c2_i32_33 = arith.constant 2 : i32
    %c0_i32_34 = arith.constant 0 : i32
    %65 = arith.cmpi eq, %c2_i32_33, %c0_i32_34 : i32
    %c1_i32_35 = arith.constant 1 : i32
    %66 = arith.select %65, %c1_i32_35, %c2_i32_33 : i32
    %67 = vector.broadcast %66 : i32 to vector<64x8xi32>
    %68 = arith.remsi %64, %67 : vector<64x8xi32>
    %c0_i32_36 = arith.constant 0 : i32
    %69 = vector.broadcast %c0_i32_36 : i32 to vector<64x8xi32>
    %70 = arith.cmpi ne, %68, %69 : vector<64x8xi32>
    %c0_i32_37 = arith.constant 0 : i32
    %71 = vector.broadcast %c0_i32_37 : i32 to vector<64x8xi32>
    %72 = arith.cmpi slt, %68, %71 : vector<64x8xi32>
    %c0_i32_38 = arith.constant 0 : i32
    %73 = arith.cmpi slt, %66, %c0_i32_38 : i32
    %74 = vector.broadcast %73 : i1 to vector<64x8xi1>
    %75 = vector.broadcast %74 : vector<64x8xi1> to vector<64x8xi1>
    %76 = arith.xori %72, %75 : vector<64x8xi1>
    %77 = arith.andi %76, %70 : vector<64x8xi1>
    %78 = vector.broadcast %66 : i32 to vector<64x8xi32>
    %79 = arith.addi %68, %78 : vector<64x8xi32>
    %80 = arith.select %77, %79, %68 : vector<64x8xi1>, vector<64x8xi32>
    %c0_i32_39 = arith.constant 0 : i32
    %81 = vector.broadcast %c0_i32_39 : i32 to vector<64x8xi32>
    %82 = arith.cmpi eq, %80, %81 : vector<64x8xi32>
    %cst_40 = arith.constant 0.000000e+00 : f32
    %83 = vector.broadcast %cst_40 : f32 to vector<64x8xf32>
    %84 = arith.subf %83, %60 : vector<64x8xf32>
    %85 = arith.select %82, %84, %63 : vector<64x8xi1>, vector<64x8xf32>
    %86 = arith.mulf %85, %55 : vector<64x8xf32>
    %87 = arith.addf %57, %86 : vector<64x8xf32>
    %c0_41 = arith.constant 0 : index
    %c0_42 = arith.constant 0 : index
    %c0_43 = arith.constant 0 : index
    %88 = vector.load %arg12[%c0_41, %c0_42, %c0_43] : memref<1x32x8xbf16, #tpu.memory_space<vmem>>, vector<1x32x8xbf16>
    %89 = vector.shape_cast %88 : vector<1x32x8xbf16> to vector<32x8xbf16>
    %cst_44 = arith.constant dense<0.000000e+00> : vector<64x8xf32>
    %90 = tpu.matmul %3, %89, %cst_44 {dimension_numbers = #tpu.dot_dimension_numbers<[1], [0], [0], [1], [0, 0, 1, 1], [], []>} : vector<64x32xbf16>, vector<32x8xbf16>, vector<64x8xf32> -> vector<64x8xf32>
    %c0_45 = arith.constant 0 : index
    %c0_46 = arith.constant 0 : index
    %c0_47 = arith.constant 0 : index
    %91 = vector.load %arg13[%c0_45, %c0_46, %c0_47] : memref<1x1x8xf32, #tpu.memory_space<vmem>>, vector<1x1x8xf32>
    %92 = vector.shape_cast %91 : vector<1x1x8xf32> to vector<1x8xf32>
    %93 = vector.broadcast %92 : vector<1x8xf32> to vector<64x8xf32>
    %94 = arith.addf %90, %93 : vector<64x8xf32>
    %c0_48 = arith.constant 0 : index
    %c0_49 = arith.constant 0 : index
    %c0_50 = arith.constant 0 : index
    %95 = vector.load %arg8[%c0_48, %c0_49, %c0_50] : memref<1x32x8xbf16, #tpu.memory_space<vmem>>, vector<1x32x8xbf16>
    %96 = vector.shape_cast %95 : vector<1x32x8xbf16> to vector<32x8xbf16>
    %cst_51 = arith.constant dense<0.000000e+00> : vector<64x8xf32>
    %97 = tpu.matmul %7, %96, %cst_51 {dimension_numbers = #tpu.dot_dimension_numbers<[1], [0], [0], [1], [0, 0, 1, 1], [], []>} : vector<64x32xbf16>, vector<32x8xbf16>, vector<64x8xf32> -> vector<64x8xf32>
    %c0_52 = arith.constant 0 : index
    %c0_53 = arith.constant 0 : index
    %c0_54 = arith.constant 0 : index
    %98 = vector.load %arg9[%c0_52, %c0_53, %c0_54] : memref<1x1x8xf32, #tpu.memory_space<vmem>>, vector<1x1x8xf32>
    %99 = vector.shape_cast %98 : vector<1x1x8xf32> to vector<1x8xf32>
    %100 = vector.broadcast %99 : vector<1x8xf32> to vector<64x8xf32>
    %101 = arith.addf %97, %100 : vector<64x8xf32>
    %c0_55 = arith.constant 0 : index
    %c0_56 = arith.constant 0 : index
    %102 = vector.load %arg6[%c0_55, %c0_56] : memref<64x8xf32, #tpu.memory_space<vmem>>, vector<64x8xf32>
    %c0_57 = arith.constant 0 : index
    %c0_58 = arith.constant 0 : index
    %103 = vector.load %arg7[%c0_57, %c0_58] : memref<64x8xf32, #tpu.memory_space<vmem>>, vector<64x8xf32>
    %104 = arith.mulf %101, %103 : vector<64x8xf32>
    %105 = vector.extract_strided_slice %101 {offsets = [0, 1], sizes = [64, 7], strides = [1, 1]} : vector<64x8xf32> to vector<64x7xf32>
    %106 = vector.extract_strided_slice %101 {offsets = [0, 0], sizes = [64, 1], strides = [1, 1]} : vector<64x8xf32> to vector<64x1xf32>
    %107 = tpu.concatenate %105, %106 in 1 : vector<64x7xf32>, vector<64x1xf32> -> vector<64x8xf32>
    %108 = vector.extract_strided_slice %101 {offsets = [0, 7], sizes = [64, 1], strides = [1, 1]} : vector<64x8xf32> to vector<64x1xf32>
    %109 = vector.extract_strided_slice %101 {offsets = [0, 0], sizes = [64, 7], strides = [1, 1]} : vector<64x8xf32> to vector<64x7xf32>
    %110 = tpu.concatenate %108, %109 in 1 : vector<64x1xf32>, vector<64x7xf32> -> vector<64x8xf32>
    %111 = tpu.iota {dimensions = array<i32: 1>} : vector<64x8xi32>
    %c2_i32_59 = arith.constant 2 : i32
    %c0_i32_60 = arith.constant 0 : i32
    %112 = arith.cmpi eq, %c2_i32_59, %c0_i32_60 : i32
    %c1_i32_61 = arith.constant 1 : i32
    %113 = arith.select %112, %c1_i32_61, %c2_i32_59 : i32
    %114 = vector.broadcast %113 : i32 to vector<64x8xi32>
    %115 = arith.remsi %111, %114 : vector<64x8xi32>
    %c0_i32_62 = arith.constant 0 : i32
    %116 = vector.broadcast %c0_i32_62 : i32 to vector<64x8xi32>
    %117 = arith.cmpi ne, %115, %116 : vector<64x8xi32>
    %c0_i32_63 = arith.constant 0 : i32
    %118 = vector.broadcast %c0_i32_63 : i32 to vector<64x8xi32>
    %119 = arith.cmpi slt, %115, %118 : vector<64x8xi32>
    %c0_i32_64 = arith.constant 0 : i32
    %120 = arith.cmpi slt, %113, %c0_i32_64 : i32
    %121 = vector.broadcast %120 : i1 to vector<64x8xi1>
    %122 = vector.broadcast %121 : vector<64x8xi1> to vector<64x8xi1>
    %123 = arith.xori %119, %122 : vector<64x8xi1>
    %124 = arith.andi %123, %117 : vector<64x8xi1>
    %125 = vector.broadcast %113 : i32 to vector<64x8xi32>
    %126 = arith.addi %115, %125 : vector<64x8xi32>
    %127 = arith.select %124, %126, %115 : vector<64x8xi1>, vector<64x8xi32>
    %c0_i32_65 = arith.constant 0 : i32
    %128 = vector.broadcast %c0_i32_65 : i32 to vector<64x8xi32>
    %129 = arith.cmpi eq, %127, %128 : vector<64x8xi32>
    %cst_66 = arith.constant 0.000000e+00 : f32
    %130 = vector.broadcast %cst_66 : f32 to vector<64x8xf32>
    %131 = arith.subf %130, %107 : vector<64x8xf32>
    %132 = arith.select %129, %131, %110 : vector<64x8xi1>, vector<64x8xf32>
    %133 = arith.mulf %132, %102 : vector<64x8xf32>
    %134 = arith.addf %104, %133 : vector<64x8xf32>
    %c0_67 = arith.constant 0 : index
    %c0_68 = arith.constant 0 : index
    %c0_69 = arith.constant 0 : index
    %135 = vector.load %arg10[%c0_67, %c0_68, %c0_69] : memref<1x32x8xbf16, #tpu.memory_space<vmem>>, vector<1x32x8xbf16>
    %136 = vector.shape_cast %135 : vector<1x32x8xbf16> to vector<32x8xbf16>
    %cst_70 = arith.constant dense<0.000000e+00> : vector<64x8xf32>
    %137 = tpu.matmul %7, %136, %cst_70 {dimension_numbers = #tpu.dot_dimension_numbers<[1], [0], [0], [1], [0, 0, 1, 1], [], []>} : vector<64x32xbf16>, vector<32x8xbf16>, vector<64x8xf32> -> vector<64x8xf32>
    %c0_71 = arith.constant 0 : index
    %c0_72 = arith.constant 0 : index
    %c0_73 = arith.constant 0 : index
    %138 = vector.load %arg11[%c0_71, %c0_72, %c0_73] : memref<1x1x8xf32, #tpu.memory_space<vmem>>, vector<1x1x8xf32>
    %139 = vector.shape_cast %138 : vector<1x1x8xf32> to vector<1x8xf32>
    %140 = vector.broadcast %139 : vector<1x8xf32> to vector<64x8xf32>
    %141 = arith.addf %137, %140 : vector<64x8xf32>
    %c0_74 = arith.constant 0 : index
    %c0_75 = arith.constant 0 : index
    %142 = vector.load %arg6[%c0_74, %c0_75] : memref<64x8xf32, #tpu.memory_space<vmem>>, vector<64x8xf32>
    %c0_76 = arith.constant 0 : index
    %c0_77 = arith.constant 0 : index
    %143 = vector.load %arg7[%c0_76, %c0_77] : memref<64x8xf32, #tpu.memory_space<vmem>>, vector<64x8xf32>
    %144 = arith.mulf %141, %143 : vector<64x8xf32>
    %145 = vector.extract_strided_slice %141 {offsets = [0, 1], sizes = [64, 7], strides = [1, 1]} : vector<64x8xf32> to vector<64x7xf32>
    %146 = vector.extract_strided_slice %141 {offsets = [0, 0], sizes = [64, 1], strides = [1, 1]} : vector<64x8xf32> to vector<64x1xf32>
    %147 = tpu.concatenate %145, %146 in 1 : vector<64x7xf32>, vector<64x1xf32> -> vector<64x8xf32>
    %148 = vector.extract_strided_slice %141 {offsets = [0, 7], sizes = [64, 1], strides = [1, 1]} : vector<64x8xf32> to vector<64x1xf32>
    %149 = vector.extract_strided_slice %141 {offsets = [0, 0], sizes = [64, 7], strides = [1, 1]} : vector<64x8xf32> to vector<64x7xf32>
    %150 = tpu.concatenate %148, %149 in 1 : vector<64x1xf32>, vector<64x7xf32> -> vector<64x8xf32>
    %151 = tpu.iota {dimensions = array<i32: 1>} : vector<64x8xi32>
    %c2_i32_78 = arith.constant 2 : i32
    %c0_i32_79 = arith.constant 0 : i32
    %152 = arith.cmpi eq, %c2_i32_78, %c0_i32_79 : i32
    %c1_i32_80 = arith.constant 1 : i32
    %153 = arith.select %152, %c1_i32_80, %c2_i32_78 : i32
    %154 = vector.broadcast %153 : i32 to vector<64x8xi32>
    %155 = arith.remsi %151, %154 : vector<64x8xi32>
    %c0_i32_81 = arith.constant 0 : i32
    %156 = vector.broadcast %c0_i32_81 : i32 to vector<64x8xi32>
    %157 = arith.cmpi ne, %155, %156 : vector<64x8xi32>
    %c0_i32_82 = arith.constant 0 : i32
    %158 = vector.broadcast %c0_i32_82 : i32 to vector<64x8xi32>
    %159 = arith.cmpi slt, %155, %158 : vector<64x8xi32>
    %c0_i32_83 = arith.constant 0 : i32
    %160 = arith.cmpi slt, %153, %c0_i32_83 : i32
    %161 = vector.broadcast %160 : i1 to vector<64x8xi1>
    %162 = vector.broadcast %161 : vector<64x8xi1> to vector<64x8xi1>
    %163 = arith.xori %159, %162 : vector<64x8xi1>
    %164 = arith.andi %163, %157 : vector<64x8xi1>
    %165 = vector.broadcast %153 : i32 to vector<64x8xi32>
    %166 = arith.addi %155, %165 : vector<64x8xi32>
    %167 = arith.select %164, %166, %155 : vector<64x8xi1>, vector<64x8xi32>
    %c0_i32_84 = arith.constant 0 : i32
    %168 = vector.broadcast %c0_i32_84 : i32 to vector<64x8xi32>
    %169 = arith.cmpi eq, %167, %168 : vector<64x8xi32>
    %cst_85 = arith.constant 0.000000e+00 : f32
    %170 = vector.broadcast %cst_85 : f32 to vector<64x8xf32>
    %171 = arith.subf %170, %147 : vector<64x8xf32>
    %172 = arith.select %169, %171, %150 : vector<64x8xi1>, vector<64x8xf32>
    %173 = arith.mulf %172, %142 : vector<64x8xf32>
    %174 = arith.addf %144, %173 : vector<64x8xf32>
    %c0_86 = arith.constant 0 : index
    %c0_87 = arith.constant 0 : index
    %c0_88 = arith.constant 0 : index
    %175 = vector.load %arg12[%c0_86, %c0_87, %c0_88] : memref<1x32x8xbf16, #tpu.memory_space<vmem>>, vector<1x32x8xbf16>
    %176 = vector.shape_cast %175 : vector<1x32x8xbf16> to vector<32x8xbf16>
    %cst_89 = arith.constant dense<0.000000e+00> : vector<64x8xf32>
    %177 = tpu.matmul %7, %176, %cst_89 {dimension_numbers = #tpu.dot_dimension_numbers<[1], [0], [0], [1], [0, 0, 1, 1], [], []>} : vector<64x32xbf16>, vector<32x8xbf16>, vector<64x8xf32> -> vector<64x8xf32>
    %c0_90 = arith.constant 0 : index
    %c0_91 = arith.constant 0 : index
    %c0_92 = arith.constant 0 : index
    %178 = vector.load %arg13[%c0_90, %c0_91, %c0_92] : memref<1x1x8xf32, #tpu.memory_space<vmem>>, vector<1x1x8xf32>
    %179 = vector.shape_cast %178 : vector<1x1x8xf32> to vector<1x8xf32>
    %180 = vector.broadcast %179 : vector<1x8xf32> to vector<64x8xf32>
    %181 = arith.addf %177, %180 : vector<64x8xf32>
    %182 = vector.shape_cast %47 : vector<64x8xf32> to vector<8x8x8xf32>
    %183 = arith.truncf %182 : vector<8x8x8xf32> to vector<8x8x8xbf16>
    %184 = vector.shape_cast %87 : vector<64x8xf32> to vector<8x8x8xf32>
    %185 = arith.truncf %184 : vector<8x8x8xf32> to vector<8x8x8xbf16>
    %186 = vector.shape_cast %94 : vector<64x8xf32> to vector<8x8x8xf32>
    %187 = arith.truncf %186 : vector<8x8x8xf32> to vector<8x8x8xbf16>
    %cst_93 = arith.constant dense<0.000000e+00> : vector<8x8x8xf32>
    %188 = tpu.matmul %183, %185, %cst_93 {dimension_numbers = #tpu.dot_dimension_numbers<[2], [2], [1], [1], [0, 0, 0, 1, 1, 1], [0], [0]>} : vector<8x8x8xbf16>, vector<8x8x8xbf16>, vector<8x8x8xf32> -> vector<8x8x8xf32>
    %c0_94 = arith.constant 0 : index
    %c0_95 = arith.constant 0 : index
    %c0_96 = arith.constant 0 : index
    %189 = vector.load %arg16[%c0_94, %c0_95, %c0_96] : memref<1x8x8xf32, #tpu.memory_space<vmem>>, vector<1x8x8xf32>
    %190 = vector.shape_cast %189 : vector<1x8x8xf32> to vector<8x8xf32>
    %191 = vector.shape_cast %190 : vector<8x8xf32> to vector<1x8x8xf32>
    %192 = vector.broadcast %191 : vector<1x8x8xf32> to vector<8x8x8xf32>
    %193 = arith.addf %188, %192 : vector<8x8x8xf32>
    %cst_97 = arith.constant dense<0xFF800000> : vector<8x8xf32>
    %194 = vector.multi_reduction <maximumf>, %193, %cst_97 [2] : vector<8x8x8xf32> to vector<8x8xf32>
    %195 = vector.shape_cast %194 : vector<8x8xf32> to vector<8x8x1xf32>
    %196 = vector.broadcast %195 : vector<8x8x1xf32> to vector<8x8x8xf32>
    %197 = arith.subf %193, %196 : vector<8x8x8xf32>
    %198 = math.exp %197 : vector<8x8x8xf32>
    %cst_98 = arith.constant dense<0.000000e+00> : vector<8x8xf32>
    %199 = vector.multi_reduction <add>, %198, %cst_98 [2] : vector<8x8x8xf32> to vector<8x8xf32>
    %200 = vector.shape_cast %199 : vector<8x8xf32> to vector<8x8x1xf32>
    %201 = tpu.reciprocal %200 {approx = true} : vector<8x8x1xf32> -> vector<8x8x1xf32>
    %202 = vector.broadcast %201 : vector<8x8x1xf32> to vector<8x8x8xf32>
    %203 = arith.mulf %198, %202 : vector<8x8x8xf32>
    %204 = arith.truncf %203 : vector<8x8x8xf32> to vector<8x8x8xbf16>
    %cst_99 = arith.constant dense<0.000000e+00> : vector<8x8x8xf32>
    %205 = tpu.matmul %204, %187, %cst_99 {dimension_numbers = #tpu.dot_dimension_numbers<[2], [1], [1], [2], [0, 0, 0, 1, 1, 2], [0], [0]>} : vector<8x8x8xbf16>, vector<8x8x8xbf16>, vector<8x8x8xf32> -> vector<8x8x8xf32>
    %c0_100 = arith.constant 0 : index
    %c0_101 = arith.constant 0 : index
    %c0_102 = arith.constant 0 : index
    %206 = vector.load %arg21[%c0_100, %c0_101, %c0_102] : memref<8x8x8xf32, #tpu.memory_space<vmem>>, vector<8x8x8xf32>
    tpu.vector_store %arg21[%c0_100, %c0_101, %c0_102], %205 {strides = array<i32>} : memref<8x8x8xf32, #tpu.memory_space<vmem>>, vector<8x8x8xf32>,
    %cst_103 = arith.constant 0.000000e+00 : f32
    %207 = vector.broadcast %cst_103 : f32 to vector<12x12x8xf32>
    %c0_104 = arith.constant 0 : index
    %c0_105 = arith.constant 0 : index
    %c0_106 = arith.constant 0 : index
    %208 = vector.load %arg22[%c0_104, %c0_105, %c0_106] : memref<12x12x8xf32, #tpu.memory_space<vmem>>, vector<12x12x8xf32>
    tpu.vector_store %arg22[%c0_104, %c0_105, %c0_106], %207 {strides = array<i32>} : memref<12x12x8xf32, #tpu.memory_space<vmem>>, vector<12x12x8xf32>,
    %209 = vector.shape_cast %181 : vector<64x8xf32> to vector<8x8x8xf32>
    %c2 = arith.constant 2 : index
    %c2_107 = arith.constant 2 : index
    %c0_108 = arith.constant 0 : index
    %210 = vector.load %arg22[%c2, %c2_107, %c0_108] : memref<12x12x8xf32, #tpu.memory_space<vmem>>, vector<8x8x8xf32>
    tpu.vector_store %arg22[%c2, %c2_107, %c0_108], %209 {strides = array<i32>} : memref<12x12x8xf32, #tpu.memory_space<vmem>>, vector<8x8x8xf32>,
    %cst_109 = arith.constant 0.000000e+00 : f32
    %211 = vector.broadcast %cst_109 : f32 to vector<8x8x8xf32>
    %c0_110 = arith.constant 0 : index
    %c0_111 = arith.constant 0 : index
    %c0_112 = arith.constant 0 : index
    %212 = vector.load %arg22[%c0_110, %c0_111, %c0_112] : memref<12x12x8xf32, #tpu.memory_space<vmem>>, vector<8x8x8xf32>
    %c0_113 = arith.constant 0 : index
    %c0_114 = arith.constant 0 : index
    %c0_115 = arith.constant 0 : index
    %c0_116 = arith.constant 0 : index
    %213 = vector.load %arg14[%c0_113, %c0_114, %c0_115, %c0_116] : memref<1x5x5x8xf32, #tpu.memory_space<vmem>>, vector<1x1x1x8xf32>
    %214 = vector.shape_cast %213 : vector<1x1x1x8xf32> to vector<1x8xf32>
    %215 = vector.shape_cast %214 : vector<1x8xf32> to vector<1x1x8xf32>
    %216 = vector.broadcast %215 : vector<1x1x8xf32> to vector<8x8x8xf32>
    %217 = arith.mulf %212, %216 : vector<8x8x8xf32>
    %218 = arith.addf %211, %217 : vector<8x8x8xf32>
    %c1 = arith.constant 1 : index
    %c0_117 = arith.constant 0 : index
    %c0_118 = arith.constant 0 : index
    %219 = vector.load %arg22[%c1, %c0_117, %c0_118] : memref<12x12x8xf32, #tpu.memory_space<vmem>>, vector<8x8x8xf32>
    %c0_119 = arith.constant 0 : index
    %c0_120 = arith.constant 0 : index
    %c1_121 = arith.constant 1 : index
    %c0_122 = arith.constant 0 : index
    %220 = vector.load %arg14[%c0_119, %c0_120, %c1_121, %c0_122] : memref<1x5x5x8xf32, #tpu.memory_space<vmem>>, vector<1x1x1x8xf32>
    %221 = vector.shape_cast %220 : vector<1x1x1x8xf32> to vector<1x8xf32>
    %222 = vector.shape_cast %221 : vector<1x8xf32> to vector<1x1x8xf32>
    %223 = vector.broadcast %222 : vector<1x1x8xf32> to vector<8x8x8xf32>
    %224 = arith.mulf %219, %223 : vector<8x8x8xf32>
    %225 = arith.addf %218, %224 : vector<8x8x8xf32>
    %c2_123 = arith.constant 2 : index
    %c0_124 = arith.constant 0 : index
    %c0_125 = arith.constant 0 : index
    %226 = vector.load %arg22[%c2_123, %c0_124, %c0_125] : memref<12x12x8xf32, #tpu.memory_space<vmem>>, vector<8x8x8xf32>
    %c0_126 = arith.constant 0 : index
    %c0_127 = arith.constant 0 : index
    %c2_128 = arith.constant 2 : index
    %c0_129 = arith.constant 0 : index
    %227 = vector.load %arg14[%c0_126, %c0_127, %c2_128, %c0_129] : memref<1x5x5x8xf32, #tpu.memory_space<vmem>>, vector<1x1x1x8xf32>
    %228 = vector.shape_cast %227 : vector<1x1x1x8xf32> to vector<1x8xf32>
    %229 = vector.shape_cast %228 : vector<1x8xf32> to vector<1x1x8xf32>
    %230 = vector.broadcast %229 : vector<1x1x8xf32> to vector<8x8x8xf32>
    %231 = arith.mulf %226, %230 : vector<8x8x8xf32>
    %232 = arith.addf %225, %231 : vector<8x8x8xf32>
    %c3 = arith.constant 3 : index
    %c0_130 = arith.constant 0 : index
    %c0_131 = arith.constant 0 : index
    %233 = vector.load %arg22[%c3, %c0_130, %c0_131] : memref<12x12x8xf32, #tpu.memory_space<vmem>>, vector<8x8x8xf32>
    %c0_132 = arith.constant 0 : index
    %c0_133 = arith.constant 0 : index
    %c3_134 = arith.constant 3 : index
    %c0_135 = arith.constant 0 : index
    %234 = vector.load %arg14[%c0_132, %c0_133, %c3_134, %c0_135] : memref<1x5x5x8xf32, #tpu.memory_space<vmem>>, vector<1x1x1x8xf32>
    %235 = vector.shape_cast %234 : vector<1x1x1x8xf32> to vector<1x8xf32>
    %236 = vector.shape_cast %235 : vector<1x8xf32> to vector<1x1x8xf32>
    %237 = vector.broadcast %236 : vector<1x1x8xf32> to vector<8x8x8xf32>
    %238 = arith.mulf %233, %237 : vector<8x8x8xf32>
    %239 = arith.addf %232, %238 : vector<8x8x8xf32>
    %c4 = arith.constant 4 : index
    %c0_136 = arith.constant 0 : index
    %c0_137 = arith.constant 0 : index
    %240 = vector.load %arg22[%c4, %c0_136, %c0_137] : memref<12x12x8xf32, #tpu.memory_space<vmem>>, vector<8x8x8xf32>
    %c0_138 = arith.constant 0 : index
    %c0_139 = arith.constant 0 : index
    %c4_140 = arith.constant 4 : index
    %c0_141 = arith.constant 0 : index
    %241 = vector.load %arg14[%c0_138, %c0_139, %c4_140, %c0_141] : memref<1x5x5x8xf32, #tpu.memory_space<vmem>>, vector<1x1x1x8xf32>
    %242 = vector.shape_cast %241 : vector<1x1x1x8xf32> to vector<1x8xf32>
    %243 = vector.shape_cast %242 : vector<1x8xf32> to vector<1x1x8xf32>
    %244 = vector.broadcast %243 : vector<1x1x8xf32> to vector<8x8x8xf32>
    %245 = arith.mulf %240, %244 : vector<8x8x8xf32>
    %246 = arith.addf %239, %245 : vector<8x8x8xf32>
    %c0_142 = arith.constant 0 : index
    %c1_143 = arith.constant 1 : index
    %c0_144 = arith.constant 0 : index
    %247 = vector.load %arg22[%c0_142, %c1_143, %c0_144] : memref<12x12x8xf32, #tpu.memory_space<vmem>>, vector<8x8x8xf32>
    %c0_145 = arith.constant 0 : index
    %c1_146 = arith.constant 1 : index
    %c0_147 = arith.constant 0 : index
    %c0_148 = arith.constant 0 : index
    %248 = vector.load %arg14[%c0_145, %c1_146, %c0_147, %c0_148] : memref<1x5x5x8xf32, #tpu.memory_space<vmem>>, vector<1x1x1x8xf32>
    %249 = vector.shape_cast %248 : vector<1x1x1x8xf32> to vector<1x8xf32>
    %250 = vector.shape_cast %249 : vector<1x8xf32> to vector<1x1x8xf32>
    %251 = vector.broadcast %250 : vector<1x1x8xf32> to vector<8x8x8xf32>
    %252 = arith.mulf %247, %251 : vector<8x8x8xf32>
    %253 = arith.addf %246, %252 : vector<8x8x8xf32>
    %c1_149 = arith.constant 1 : index
    %c1_150 = arith.constant 1 : index
    %c0_151 = arith.constant 0 : index
    %254 = vector.load %arg22[%c1_149, %c1_150, %c0_151] : memref<12x12x8xf32, #tpu.memory_space<vmem>>, vector<8x8x8xf32>
    %c0_152 = arith.constant 0 : index
    %c1_153 = arith.constant 1 : index
    %c1_154 = arith.constant 1 : index
    %c0_155 = arith.constant 0 : index
    %255 = vector.load %arg14[%c0_152, %c1_153, %c1_154, %c0_155] : memref<1x5x5x8xf32, #tpu.memory_space<vmem>>, vector<1x1x1x8xf32>
    %256 = vector.shape_cast %255 : vector<1x1x1x8xf32> to vector<1x8xf32>
    %257 = vector.shape_cast %256 : vector<1x8xf32> to vector<1x1x8xf32>
    %258 = vector.broadcast %257 : vector<1x1x8xf32> to vector<8x8x8xf32>
    %259 = arith.mulf %254, %258 : vector<8x8x8xf32>
    %260 = arith.addf %253, %259 : vector<8x8x8xf32>
    %c2_156 = arith.constant 2 : index
    %c1_157 = arith.constant 1 : index
    %c0_158 = arith.constant 0 : index
    %261 = vector.load %arg22[%c2_156, %c1_157, %c0_158] : memref<12x12x8xf32, #tpu.memory_space<vmem>>, vector<8x8x8xf32>
    %c0_159 = arith.constant 0 : index
    %c1_160 = arith.constant 1 : index
    %c2_161 = arith.constant 2 : index
    %c0_162 = arith.constant 0 : index
    %262 = vector.load %arg14[%c0_159, %c1_160, %c2_161, %c0_162] : memref<1x5x5x8xf32, #tpu.memory_space<vmem>>, vector<1x1x1x8xf32>
    %263 = vector.shape_cast %262 : vector<1x1x1x8xf32> to vector<1x8xf32>
    %264 = vector.shape_cast %263 : vector<1x8xf32> to vector<1x1x8xf32>
    %265 = vector.broadcast %264 : vector<1x1x8xf32> to vector<8x8x8xf32>
    %266 = arith.mulf %261, %265 : vector<8x8x8xf32>
    %267 = arith.addf %260, %266 : vector<8x8x8xf32>
    %c3_163 = arith.constant 3 : index
    %c1_164 = arith.constant 1 : index
    %c0_165 = arith.constant 0 : index
    %268 = vector.load %arg22[%c3_163, %c1_164, %c0_165] : memref<12x12x8xf32, #tpu.memory_space<vmem>>, vector<8x8x8xf32>
    %c0_166 = arith.constant 0 : index
    %c1_167 = arith.constant 1 : index
    %c3_168 = arith.constant 3 : index
    %c0_169 = arith.constant 0 : index
    %269 = vector.load %arg14[%c0_166, %c1_167, %c3_168, %c0_169] : memref<1x5x5x8xf32, #tpu.memory_space<vmem>>, vector<1x1x1x8xf32>
    %270 = vector.shape_cast %269 : vector<1x1x1x8xf32> to vector<1x8xf32>
    %271 = vector.shape_cast %270 : vector<1x8xf32> to vector<1x1x8xf32>
    %272 = vector.broadcast %271 : vector<1x1x8xf32> to vector<8x8x8xf32>
    %273 = arith.mulf %268, %272 : vector<8x8x8xf32>
    %274 = arith.addf %267, %273 : vector<8x8x8xf32>
    %c4_170 = arith.constant 4 : index
    %c1_171 = arith.constant 1 : index
    %c0_172 = arith.constant 0 : index
    %275 = vector.load %arg22[%c4_170, %c1_171, %c0_172] : memref<12x12x8xf32, #tpu.memory_space<vmem>>, vector<8x8x8xf32>
    %c0_173 = arith.constant 0 : index
    %c1_174 = arith.constant 1 : index
    %c4_175 = arith.constant 4 : index
    %c0_176 = arith.constant 0 : index
    %276 = vector.load %arg14[%c0_173, %c1_174, %c4_175, %c0_176] : memref<1x5x5x8xf32, #tpu.memory_space<vmem>>, vector<1x1x1x8xf32>
    %277 = vector.shape_cast %276 : vector<1x1x1x8xf32> to vector<1x8xf32>
    %278 = vector.shape_cast %277 : vector<1x8xf32> to vector<1x1x8xf32>
    %279 = vector.broadcast %278 : vector<1x1x8xf32> to vector<8x8x8xf32>
    %280 = arith.mulf %275, %279 : vector<8x8x8xf32>
    %281 = arith.addf %274, %280 : vector<8x8x8xf32>
    %c0_177 = arith.constant 0 : index
    %c2_178 = arith.constant 2 : index
    %c0_179 = arith.constant 0 : index
    %282 = vector.load %arg22[%c0_177, %c2_178, %c0_179] : memref<12x12x8xf32, #tpu.memory_space<vmem>>, vector<8x8x8xf32>
    %c0_180 = arith.constant 0 : index
    %c2_181 = arith.constant 2 : index
    %c0_182 = arith.constant 0 : index
    %c0_183 = arith.constant 0 : index
    %283 = vector.load %arg14[%c0_180, %c2_181, %c0_182, %c0_183] : memref<1x5x5x8xf32, #tpu.memory_space<vmem>>, vector<1x1x1x8xf32>
    %284 = vector.shape_cast %283 : vector<1x1x1x8xf32> to vector<1x8xf32>
    %285 = vector.shape_cast %284 : vector<1x8xf32> to vector<1x1x8xf32>
    %286 = vector.broadcast %285 : vector<1x1x8xf32> to vector<8x8x8xf32>
    %287 = arith.mulf %282, %286 : vector<8x8x8xf32>
    %288 = arith.addf %281, %287 : vector<8x8x8xf32>
    %c1_184 = arith.constant 1 : index
    %c2_185 = arith.constant 2 : index
    %c0_186 = arith.constant 0 : index
    %289 = vector.load %arg22[%c1_184, %c2_185, %c0_186] : memref<12x12x8xf32, #tpu.memory_space<vmem>>, vector<8x8x8xf32>
    %c0_187 = arith.constant 0 : index
    %c2_188 = arith.constant 2 : index
    %c1_189 = arith.constant 1 : index
    %c0_190 = arith.constant 0 : index
    %290 = vector.load %arg14[%c0_187, %c2_188, %c1_189, %c0_190] : memref<1x5x5x8xf32, #tpu.memory_space<vmem>>, vector<1x1x1x8xf32>
    %291 = vector.shape_cast %290 : vector<1x1x1x8xf32> to vector<1x8xf32>
    %292 = vector.shape_cast %291 : vector<1x8xf32> to vector<1x1x8xf32>
    %293 = vector.broadcast %292 : vector<1x1x8xf32> to vector<8x8x8xf32>
    %294 = arith.mulf %289, %293 : vector<8x8x8xf32>
    %295 = arith.addf %288, %294 : vector<8x8x8xf32>
    %c2_191 = arith.constant 2 : index
    %c2_192 = arith.constant 2 : index
    %c0_193 = arith.constant 0 : index
    %296 = vector.load %arg22[%c2_191, %c2_192, %c0_193] : memref<12x12x8xf32, #tpu.memory_space<vmem>>, vector<8x8x8xf32>
    %c0_194 = arith.constant 0 : index
    %c2_195 = arith.constant 2 : index
    %c2_196 = arith.constant 2 : index
    %c0_197 = arith.constant 0 : index
    %297 = vector.load %arg14[%c0_194, %c2_195, %c2_196, %c0_197] : memref<1x5x5x8xf32, #tpu.memory_space<vmem>>, vector<1x1x1x8xf32>
    %298 = vector.shape_cast %297 : vector<1x1x1x8xf32> to vector<1x8xf32>
    %299 = vector.shape_cast %298 : vector<1x8xf32> to vector<1x1x8xf32>
    %300 = vector.broadcast %299 : vector<1x1x8xf32> to vector<8x8x8xf32>
    %301 = arith.mulf %296, %300 : vector<8x8x8xf32>
    %302 = arith.addf %295, %301 : vector<8x8x8xf32>
    %c3_198 = arith.constant 3 : index
    %c2_199 = arith.constant 2 : index
    %c0_200 = arith.constant 0 : index
    %303 = vector.load %arg22[%c3_198, %c2_199, %c0_200] : memref<12x12x8xf32, #tpu.memory_space<vmem>>, vector<8x8x8xf32>
    %c0_201 = arith.constant 0 : index
    %c2_202 = arith.constant 2 : index
    %c3_203 = arith.constant 3 : index
    %c0_204 = arith.constant 0 : index
    %304 = vector.load %arg14[%c0_201, %c2_202, %c3_203, %c0_204] : memref<1x5x5x8xf32, #tpu.memory_space<vmem>>, vector<1x1x1x8xf32>
    %305 = vector.shape_cast %304 : vector<1x1x1x8xf32> to vector<1x8xf32>
    %306 = vector.shape_cast %305 : vector<1x8xf32> to vector<1x1x8xf32>
    %307 = vector.broadcast %306 : vector<1x1x8xf32> to vector<8x8x8xf32>
    %308 = arith.mulf %303, %307 : vector<8x8x8xf32>
    %309 = arith.addf %302, %308 : vector<8x8x8xf32>
    %c4_205 = arith.constant 4 : index
    %c2_206 = arith.constant 2 : index
    %c0_207 = arith.constant 0 : index
    %310 = vector.load %arg22[%c4_205, %c2_206, %c0_207] : memref<12x12x8xf32, #tpu.memory_space<vmem>>, vector<8x8x8xf32>
    %c0_208 = arith.constant 0 : index
    %c2_209 = arith.constant 2 : index
    %c4_210 = arith.constant 4 : index
    %c0_211 = arith.constant 0 : index
    %311 = vector.load %arg14[%c0_208, %c2_209, %c4_210, %c0_211] : memref<1x5x5x8xf32, #tpu.memory_space<vmem>>, vector<1x1x1x8xf32>
    %312 = vector.shape_cast %311 : vector<1x1x1x8xf32> to vector<1x8xf32>
    %313 = vector.shape_cast %312 : vector<1x8xf32> to vector<1x1x8xf32>
    %314 = vector.broadcast %313 : vector<1x1x8xf32> to vector<8x8x8xf32>
    %315 = arith.mulf %310, %314 : vector<8x8x8xf32>
    %316 = arith.addf %309, %315 : vector<8x8x8xf32>
    %c0_212 = arith.constant 0 : index
    %c3_213 = arith.constant 3 : index
    %c0_214 = arith.constant 0 : index
    %317 = vector.load %arg22[%c0_212, %c3_213, %c0_214] : memref<12x12x8xf32, #tpu.memory_space<vmem>>, vector<8x8x8xf32>
    %c0_215 = arith.constant 0 : index
    %c3_216 = arith.constant 3 : index
    %c0_217 = arith.constant 0 : index
    %c0_218 = arith.constant 0 : index
    %318 = vector.load %arg14[%c0_215, %c3_216, %c0_217, %c0_218] : memref<1x5x5x8xf32, #tpu.memory_space<vmem>>, vector<1x1x1x8xf32>
    %319 = vector.shape_cast %318 : vector<1x1x1x8xf32> to vector<1x8xf32>
    %320 = vector.shape_cast %319 : vector<1x8xf32> to vector<1x1x8xf32>
    %321 = vector.broadcast %320 : vector<1x1x8xf32> to vector<8x8x8xf32>
    %322 = arith.mulf %317, %321 : vector<8x8x8xf32>
    %323 = arith.addf %316, %322 : vector<8x8x8xf32>
    %c1_219 = arith.constant 1 : index
    %c3_220 = arith.constant 3 : index
    %c0_221 = arith.constant 0 : index
    %324 = vector.load %arg22[%c1_219, %c3_220, %c0_221] : memref<12x12x8xf32, #tpu.memory_space<vmem>>, vector<8x8x8xf32>
    %c0_222 = arith.constant 0 : index
    %c3_223 = arith.constant 3 : index
    %c1_224 = arith.constant 1 : index
    %c0_225 = arith.constant 0 : index
    %325 = vector.load %arg14[%c0_222, %c3_223, %c1_224, %c0_225] : memref<1x5x5x8xf32, #tpu.memory_space<vmem>>, vector<1x1x1x8xf32>
    %326 = vector.shape_cast %325 : vector<1x1x1x8xf32> to vector<1x8xf32>
    %327 = vector.shape_cast %326 : vector<1x8xf32> to vector<1x1x8xf32>
    %328 = vector.broadcast %327 : vector<1x1x8xf32> to vector<8x8x8xf32>
    %329 = arith.mulf %324, %328 : vector<8x8x8xf32>
    %330 = arith.addf %323, %329 : vector<8x8x8xf32>
    %c2_226 = arith.constant 2 : index
    %c3_227 = arith.constant 3 : index
    %c0_228 = arith.constant 0 : index
    %331 = vector.load %arg22[%c2_226, %c3_227, %c0_228] : memref<12x12x8xf32, #tpu.memory_space<vmem>>, vector<8x8x8xf32>
    %c0_229 = arith.constant 0 : index
    %c3_230 = arith.constant 3 : index
    %c2_231 = arith.constant 2 : index
    %c0_232 = arith.constant 0 : index
    %332 = vector.load %arg14[%c0_229, %c3_230, %c2_231, %c0_232] : memref<1x5x5x8xf32, #tpu.memory_space<vmem>>, vector<1x1x1x8xf32>
    %333 = vector.shape_cast %332 : vector<1x1x1x8xf32> to vector<1x8xf32>
    %334 = vector.shape_cast %333 : vector<1x8xf32> to vector<1x1x8xf32>
    %335 = vector.broadcast %334 : vector<1x1x8xf32> to vector<8x8x8xf32>
    %336 = arith.mulf %331, %335 : vector<8x8x8xf32>
    %337 = arith.addf %330, %336 : vector<8x8x8xf32>
    %c3_233 = arith.constant 3 : index
    %c3_234 = arith.constant 3 : index
    %c0_235 = arith.constant 0 : index
    %338 = vector.load %arg22[%c3_233, %c3_234, %c0_235] : memref<12x12x8xf32, #tpu.memory_space<vmem>>, vector<8x8x8xf32>
    %c0_236 = arith.constant 0 : index
    %c3_237 = arith.constant 3 : index
    %c3_238 = arith.constant 3 : index
    %c0_239 = arith.constant 0 : index
    %339 = vector.load %arg14[%c0_236, %c3_237, %c3_238, %c0_239] : memref<1x5x5x8xf32, #tpu.memory_space<vmem>>, vector<1x1x1x8xf32>
    %340 = vector.shape_cast %339 : vector<1x1x1x8xf32> to vector<1x8xf32>
    %341 = vector.shape_cast %340 : vector<1x8xf32> to vector<1x1x8xf32>
    %342 = vector.broadcast %341 : vector<1x1x8xf32> to vector<8x8x8xf32>
    %343 = arith.mulf %338, %342 : vector<8x8x8xf32>
    %344 = arith.addf %337, %343 : vector<8x8x8xf32>
    %c4_240 = arith.constant 4 : index
    %c3_241 = arith.constant 3 : index
    %c0_242 = arith.constant 0 : index
    %345 = vector.load %arg22[%c4_240, %c3_241, %c0_242] : memref<12x12x8xf32, #tpu.memory_space<vmem>>, vector<8x8x8xf32>
    %c0_243 = arith.constant 0 : index
    %c3_244 = arith.constant 3 : index
    %c4_245 = arith.constant 4 : index
    %c0_246 = arith.constant 0 : index
    %346 = vector.load %arg14[%c0_243, %c3_244, %c4_245, %c0_246] : memref<1x5x5x8xf32, #tpu.memory_space<vmem>>, vector<1x1x1x8xf32>
    %347 = vector.shape_cast %346 : vector<1x1x1x8xf32> to vector<1x8xf32>
    %348 = vector.shape_cast %347 : vector<1x8xf32> to vector<1x1x8xf32>
    %349 = vector.broadcast %348 : vector<1x1x8xf32> to vector<8x8x8xf32>
    %350 = arith.mulf %345, %349 : vector<8x8x8xf32>
    %351 = arith.addf %344, %350 : vector<8x8x8xf32>
    %c0_247 = arith.constant 0 : index
    %c4_248 = arith.constant 4 : index
    %c0_249 = arith.constant 0 : index
    %352 = vector.load %arg22[%c0_247, %c4_248, %c0_249] : memref<12x12x8xf32, #tpu.memory_space<vmem>>, vector<8x8x8xf32>
    %c0_250 = arith.constant 0 : index
    %c4_251 = arith.constant 4 : index
    %c0_252 = arith.constant 0 : index
    %c0_253 = arith.constant 0 : index
    %353 = vector.load %arg14[%c0_250, %c4_251, %c0_252, %c0_253] : memref<1x5x5x8xf32, #tpu.memory_space<vmem>>, vector<1x1x1x8xf32>
    %354 = vector.shape_cast %353 : vector<1x1x1x8xf32> to vector<1x8xf32>
    %355 = vector.shape_cast %354 : vector<1x8xf32> to vector<1x1x8xf32>
    %356 = vector.broadcast %355 : vector<1x1x8xf32> to vector<8x8x8xf32>
    %357 = arith.mulf %352, %356 : vector<8x8x8xf32>
    %358 = arith.addf %351, %357 : vector<8x8x8xf32>
    %c1_254 = arith.constant 1 : index
    %c4_255 = arith.constant 4 : index
    %c0_256 = arith.constant 0 : index
    %359 = vector.load %arg22[%c1_254, %c4_255, %c0_256] : memref<12x12x8xf32, #tpu.memory_space<vmem>>, vector<8x8x8xf32>
    %c0_257 = arith.constant 0 : index
    %c4_258 = arith.constant 4 : index
    %c1_259 = arith.constant 1 : index
    %c0_260 = arith.constant 0 : index
    %360 = vector.load %arg14[%c0_257, %c4_258, %c1_259, %c0_260] : memref<1x5x5x8xf32, #tpu.memory_space<vmem>>, vector<1x1x1x8xf32>
    %361 = vector.shape_cast %360 : vector<1x1x1x8xf32> to vector<1x8xf32>
    %362 = vector.shape_cast %361 : vector<1x8xf32> to vector<1x1x8xf32>
    %363 = vector.broadcast %362 : vector<1x1x8xf32> to vector<8x8x8xf32>
    %364 = arith.mulf %359, %363 : vector<8x8x8xf32>
    %365 = arith.addf %358, %364 : vector<8x8x8xf32>
    %c2_261 = arith.constant 2 : index
    %c4_262 = arith.constant 4 : index
    %c0_263 = arith.constant 0 : index
    %366 = vector.load %arg22[%c2_261, %c4_262, %c0_263] : memref<12x12x8xf32, #tpu.memory_space<vmem>>, vector<8x8x8xf32>
    %c0_264 = arith.constant 0 : index
    %c4_265 = arith.constant 4 : index
    %c2_266 = arith.constant 2 : index
    %c0_267 = arith.constant 0 : index
    %367 = vector.load %arg14[%c0_264, %c4_265, %c2_266, %c0_267] : memref<1x5x5x8xf32, #tpu.memory_space<vmem>>, vector<1x1x1x8xf32>
    %368 = vector.shape_cast %367 : vector<1x1x1x8xf32> to vector<1x8xf32>
    %369 = vector.shape_cast %368 : vector<1x8xf32> to vector<1x1x8xf32>
    %370 = vector.broadcast %369 : vector<1x1x8xf32> to vector<8x8x8xf32>
    %371 = arith.mulf %366, %370 : vector<8x8x8xf32>
    %372 = arith.addf %365, %371 : vector<8x8x8xf32>
    %c3_268 = arith.constant 3 : index
    %c4_269 = arith.constant 4 : index
    %c0_270 = arith.constant 0 : index
    %373 = vector.load %arg22[%c3_268, %c4_269, %c0_270] : memref<12x12x8xf32, #tpu.memory_space<vmem>>, vector<8x8x8xf32>
    %c0_271 = arith.constant 0 : index
    %c4_272 = arith.constant 4 : index
    %c3_273 = arith.constant 3 : index
    %c0_274 = arith.constant 0 : index
    %374 = vector.load %arg14[%c0_271, %c4_272, %c3_273, %c0_274] : memref<1x5x5x8xf32, #tpu.memory_space<vmem>>, vector<1x1x1x8xf32>
    %375 = vector.shape_cast %374 : vector<1x1x1x8xf32> to vector<1x8xf32>
    %376 = vector.shape_cast %375 : vector<1x8xf32> to vector<1x1x8xf32>
    %377 = vector.broadcast %376 : vector<1x1x8xf32> to vector<8x8x8xf32>
    %378 = arith.mulf %373, %377 : vector<8x8x8xf32>
    %379 = arith.addf %372, %378 : vector<8x8x8xf32>
    %c4_275 = arith.constant 4 : index
    %c4_276 = arith.constant 4 : index
    %c0_277 = arith.constant 0 : index
    %380 = vector.load %arg22[%c4_275, %c4_276, %c0_277] : memref<12x12x8xf32, #tpu.memory_space<vmem>>, vector<8x8x8xf32>
    %c0_278 = arith.constant 0 : index
    %c4_279 = arith.constant 4 : index
    %c4_280 = arith.constant 4 : index
    %c0_281 = arith.constant 0 : index
    %381 = vector.load %arg14[%c0_278, %c4_279, %c4_280, %c0_281] : memref<1x5x5x8xf32, #tpu.memory_space<vmem>>, vector<1x1x1x8xf32>
    %382 = vector.shape_cast %381 : vector<1x1x1x8xf32> to vector<1x8xf32>
    %383 = vector.shape_cast %382 : vector<1x8xf32> to vector<1x1x8xf32>
    %384 = vector.broadcast %383 : vector<1x1x8xf32> to vector<8x8x8xf32>
    %385 = arith.mulf %380, %384 : vector<8x8x8xf32>
    %386 = arith.addf %379, %385 : vector<8x8x8xf32>
    %c0_282 = arith.constant 0 : index
    %c0_283 = arith.constant 0 : index
    %c0_284 = arith.constant 0 : index
    %387 = vector.load %arg15[%c0_282, %c0_283, %c0_284] : memref<1x1x8xf32, #tpu.memory_space<vmem>>, vector<1x1x8xf32>
    %388 = vector.shape_cast %387 : vector<1x1x8xf32> to vector<1x8xf32>
    %389 = vector.shape_cast %388 : vector<1x8xf32> to vector<1x1x8xf32>
    %390 = vector.broadcast %389 : vector<1x1x8xf32> to vector<8x8x8xf32>
    %391 = arith.addf %386, %390 : vector<8x8x8xf32>
    %392 = arith.truncf %134 : vector<64x8xf32> to vector<64x8xbf16>
    %393 = arith.truncf %174 : vector<64x8xf32> to vector<64x8xbf16>
    %394 = vector.extract_strided_slice %392 {offsets = [0, 0], sizes = [8, 8], strides = [1, 1]} : vector<64x8xbf16> to vector<8x8xbf16>
    %395 = vector.extract_strided_slice %393 {offsets = [0, 0], sizes = [8, 8], strides = [1, 1]} : vector<64x8xbf16> to vector<8x8xbf16>
    %cst_285 = arith.constant dense<0.000000e+00> : vector<8x8xf32>
    %396 = tpu.matmul %394, %395, %cst_285 {dimension_numbers = #tpu.dot_dimension_numbers<[1], [1], [0], [0], [0, 0, 1, 0], [], []>} : vector<8x8xbf16>, vector<8x8xbf16>, vector<8x8xf32> -> vector<8x8xf32>
    %c0_286 = arith.constant 0 : index
    %c0_287 = arith.constant 0 : index
    %c0_288 = arith.constant 0 : index
    %397 = vector.load %arg17[%c0_286, %c0_287, %c0_288] : memref<1x8x8xf32, #tpu.memory_space<vmem>>, vector<1x8x8xf32>
    %398 = vector.shape_cast %397 : vector<1x8x8xf32> to vector<8x8xf32>
    %399 = arith.addf %396, %398 : vector<8x8xf32>
    %cst_289 = arith.constant dense<0xFF800000> : vector<8xf32>
    %400 = vector.multi_reduction <maximumf>, %399, %cst_289 [1] : vector<8x8xf32> to vector<8xf32>
    %401 = vector.shape_cast %400 : vector<8xf32> to vector<8x1xf32>
    %402 = vector.broadcast %401 : vector<8x1xf32> to vector<8x8xf32>
    %403 = arith.subf %399, %402 : vector<8x8xf32>
    %404 = math.exp %403 : vector<8x8xf32>
    %cst_290 = arith.constant dense<0.000000e+00> : vector<8xf32>
    %405 = vector.multi_reduction <add>, %404, %cst_290 [1] : vector<8x8xf32> to vector<8xf32>
    %406 = vector.shape_cast %405 : vector<8xf32> to vector<8x1xf32>
    %407 = tpu.reciprocal %406 {approx = true} : vector<8x1xf32> -> vector<8x1xf32>
    %408 = vector.broadcast %407 : vector<8x1xf32> to vector<8x8xf32>
    %409 = arith.mulf %404, %408 : vector<8x8xf32>
    %410 = arith.truncf %409 : vector<8x8xf32> to vector<8x8xbf16>
    %c0_291 = arith.constant 0 : index
    %c0_292 = arith.constant 0 : index
    %c0_293 = arith.constant 0 : index
    %411 = vector.load %arg21[%c0_291, %c0_292, %c0_293] : memref<8x8x8xf32, #tpu.memory_space<vmem>>, vector<8x1x8xf32>
    %412 = vector.shape_cast %411 : vector<8x1x8xf32> to vector<8x8xf32>
    %413 = arith.truncf %412 : vector<8x8xf32> to vector<8x8xbf16>
    %cst_294 = arith.constant dense<0.000000e+00> : vector<8x8xf32>
    %414 = tpu.matmul %410, %413, %cst_294 {dimension_numbers = #tpu.dot_dimension_numbers<[1], [0], [0], [1], [0, 0, 1, 1], [], []>} : vector<8x8xbf16>, vector<8x8xbf16>, vector<8x8xf32> -> vector<8x8xf32>
    %415 = vector.extract_strided_slice %392 {offsets = [8, 0], sizes = [8, 8], strides = [1, 1]} : vector<64x8xbf16> to vector<8x8xbf16>
    %416 = vector.extract_strided_slice %393 {offsets = [8, 0], sizes = [8, 8], strides = [1, 1]} : vector<64x8xbf16> to vector<8x8xbf16>
    %cst_295 = arith.constant dense<0.000000e+00> : vector<8x8xf32>
    %417 = tpu.matmul %415, %416, %cst_295 {dimension_numbers = #tpu.dot_dimension_numbers<[1], [1], [0], [0], [0, 0, 1, 0], [], []>} : vector<8x8xbf16>, vector<8x8xbf16>, vector<8x8xf32> -> vector<8x8xf32>
    %c0_296 = arith.constant 0 : index
    %c0_297 = arith.constant 0 : index
    %c0_298 = arith.constant 0 : index
    %418 = vector.load %arg17[%c0_296, %c0_297, %c0_298] : memref<1x8x8xf32, #tpu.memory_space<vmem>>, vector<1x8x8xf32>
    %419 = vector.shape_cast %418 : vector<1x8x8xf32> to vector<8x8xf32>
    %420 = arith.addf %417, %419 : vector<8x8xf32>
    %cst_299 = arith.constant dense<0xFF800000> : vector<8xf32>
    %421 = vector.multi_reduction <maximumf>, %420, %cst_299 [1] : vector<8x8xf32> to vector<8xf32>
    %422 = vector.shape_cast %421 : vector<8xf32> to vector<8x1xf32>
    %423 = vector.broadcast %422 : vector<8x1xf32> to vector<8x8xf32>
    %424 = arith.subf %420, %423 : vector<8x8xf32>
    %425 = math.exp %424 : vector<8x8xf32>
    %cst_300 = arith.constant dense<0.000000e+00> : vector<8xf32>
    %426 = vector.multi_reduction <add>, %425, %cst_300 [1] : vector<8x8xf32> to vector<8xf32>
    %427 = vector.shape_cast %426 : vector<8xf32> to vector<8x1xf32>
    %428 = tpu.reciprocal %427 {approx = true} : vector<8x1xf32> -> vector<8x1xf32>
    %429 = vector.broadcast %428 : vector<8x1xf32> to vector<8x8xf32>
    %430 = arith.mulf %425, %429 : vector<8x8xf32>
    %431 = arith.truncf %430 : vector<8x8xf32> to vector<8x8xbf16>
    %c0_301 = arith.constant 0 : index
    %c1_302 = arith.constant 1 : index
    %c0_303 = arith.constant 0 : index
    %432 = vector.load %arg21[%c0_301, %c1_302, %c0_303] : memref<8x8x8xf32, #tpu.memory_space<vmem>>, vector<8x1x8xf32>
    %433 = vector.shape_cast %432 : vector<8x1x8xf32> to vector<8x8xf32>
    %434 = arith.truncf %433 : vector<8x8xf32> to vector<8x8xbf16>
    %cst_304 = arith.constant dense<0.000000e+00> : vector<8x8xf32>
    %435 = tpu.matmul %431, %434, %cst_304 {dimension_numbers = #tpu.dot_dimension_numbers<[1], [0], [0], [1], [0, 0, 1, 1], [], []>} : vector<8x8xbf16>, vector<8x8xbf16>, vector<8x8xf32> -> vector<8x8xf32>
    %436 = vector.extract_strided_slice %392 {offsets = [16, 0], sizes = [8, 8], strides = [1, 1]} : vector<64x8xbf16> to vector<8x8xbf16>
    %437 = vector.extract_strided_slice %393 {offsets = [16, 0], sizes = [8, 8], strides = [1, 1]} : vector<64x8xbf16> to vector<8x8xbf16>
    %cst_305 = arith.constant dense<0.000000e+00> : vector<8x8xf32>
    %438 = tpu.matmul %436, %437, %cst_305 {dimension_numbers = #tpu.dot_dimension_numbers<[1], [1], [0], [0], [0, 0, 1, 0], [], []>} : vector<8x8xbf16>, vector<8x8xbf16>, vector<8x8xf32> -> vector<8x8xf32>
    %c0_306 = arith.constant 0 : index
    %c0_307 = arith.constant 0 : index
    %c0_308 = arith.constant 0 : index
    %439 = vector.load %arg17[%c0_306, %c0_307, %c0_308] : memref<1x8x8xf32, #tpu.memory_space<vmem>>, vector<1x8x8xf32>
    %440 = vector.shape_cast %439 : vector<1x8x8xf32> to vector<8x8xf32>
    %441 = arith.addf %438, %440 : vector<8x8xf32>
    %cst_309 = arith.constant dense<0xFF800000> : vector<8xf32>
    %442 = vector.multi_reduction <maximumf>, %441, %cst_309 [1] : vector<8x8xf32> to vector<8xf32>
    %443 = vector.shape_cast %442 : vector<8xf32> to vector<8x1xf32>
    %444 = vector.broadcast %443 : vector<8x1xf32> to vector<8x8xf32>
    %445 = arith.subf %441, %444 : vector<8x8xf32>
    %446 = math.exp %445 : vector<8x8xf32>
    %cst_310 = arith.constant dense<0.000000e+00> : vector<8xf32>
    %447 = vector.multi_reduction <add>, %446, %cst_310 [1] : vector<8x8xf32> to vector<8xf32>
    %448 = vector.shape_cast %447 : vector<8xf32> to vector<8x1xf32>
    %449 = tpu.reciprocal %448 {approx = true} : vector<8x1xf32> -> vector<8x1xf32>
    %450 = vector.broadcast %449 : vector<8x1xf32> to vector<8x8xf32>
    %451 = arith.mulf %446, %450 : vector<8x8xf32>
    %452 = arith.truncf %451 : vector<8x8xf32> to vector<8x8xbf16>
    %c0_311 = arith.constant 0 : index
    %c2_312 = arith.constant 2 : index
    %c0_313 = arith.constant 0 : index
    %453 = vector.load %arg21[%c0_311, %c2_312, %c0_313] : memref<8x8x8xf32, #tpu.memory_space<vmem>>, vector<8x1x8xf32>
    %454 = vector.shape_cast %453 : vector<8x1x8xf32> to vector<8x8xf32>
    %455 = arith.truncf %454 : vector<8x8xf32> to vector<8x8xbf16>
    %cst_314 = arith.constant dense<0.000000e+00> : vector<8x8xf32>
    %456 = tpu.matmul %452, %455, %cst_314 {dimension_numbers = #tpu.dot_dimension_numbers<[1], [0], [0], [1], [0, 0, 1, 1], [], []>} : vector<8x8xbf16>, vector<8x8xbf16>, vector<8x8xf32> -> vector<8x8xf32>
    %457 = vector.extract_strided_slice %392 {offsets = [24, 0], sizes = [8, 8], strides = [1, 1]} : vector<64x8xbf16> to vector<8x8xbf16>
    %458 = vector.extract_strided_slice %393 {offsets = [24, 0], sizes = [8, 8], strides = [1, 1]} : vector<64x8xbf16> to vector<8x8xbf16>
    %cst_315 = arith.constant dense<0.000000e+00> : vector<8x8xf32>
    %459 = tpu.matmul %457, %458, %cst_315 {dimension_numbers = #tpu.dot_dimension_numbers<[1], [1], [0], [0], [0, 0, 1, 0], [], []>} : vector<8x8xbf16>, vector<8x8xbf16>, vector<8x8xf32> -> vector<8x8xf32>
    %c0_316 = arith.constant 0 : index
    %c0_317 = arith.constant 0 : index
    %c0_318 = arith.constant 0 : index
    %460 = vector.load %arg17[%c0_316, %c0_317, %c0_318] : memref<1x8x8xf32, #tpu.memory_space<vmem>>, vector<1x8x8xf32>
    %461 = vector.shape_cast %460 : vector<1x8x8xf32> to vector<8x8xf32>
    %462 = arith.addf %459, %461 : vector<8x8xf32>
    %cst_319 = arith.constant dense<0xFF800000> : vector<8xf32>
    %463 = vector.multi_reduction <maximumf>, %462, %cst_319 [1] : vector<8x8xf32> to vector<8xf32>
    %464 = vector.shape_cast %463 : vector<8xf32> to vector<8x1xf32>
    %465 = vector.broadcast %464 : vector<8x1xf32> to vector<8x8xf32>
    %466 = arith.subf %462, %465 : vector<8x8xf32>
    %467 = math.exp %466 : vector<8x8xf32>
    %cst_320 = arith.constant dense<0.000000e+00> : vector<8xf32>
    %468 = vector.multi_reduction <add>, %467, %cst_320 [1] : vector<8x8xf32> to vector<8xf32>
    %469 = vector.shape_cast %468 : vector<8xf32> to vector<8x1xf32>
    %470 = tpu.reciprocal %469 {approx = true} : vector<8x1xf32> -> vector<8x1xf32>
    %471 = vector.broadcast %470 : vector<8x1xf32> to vector<8x8xf32>
    %472 = arith.mulf %467, %471 : vector<8x8xf32>
    %473 = arith.truncf %472 : vector<8x8xf32> to vector<8x8xbf16>
    %c0_321 = arith.constant 0 : index
    %c3_322 = arith.constant 3 : index
    %c0_323 = arith.constant 0 : index
    %474 = vector.load %arg21[%c0_321, %c3_322, %c0_323] : memref<8x8x8xf32, #tpu.memory_space<vmem>>, vector<8x1x8xf32>
    %475 = vector.shape_cast %474 : vector<8x1x8xf32> to vector<8x8xf32>
    %476 = arith.truncf %475 : vector<8x8xf32> to vector<8x8xbf16>
    %cst_324 = arith.constant dense<0.000000e+00> : vector<8x8xf32>
    %477 = tpu.matmul %473, %476, %cst_324 {dimension_numbers = #tpu.dot_dimension_numbers<[1], [0], [0], [1], [0, 0, 1, 1], [], []>} : vector<8x8xbf16>, vector<8x8xbf16>, vector<8x8xf32> -> vector<8x8xf32>
    %478 = vector.extract_strided_slice %392 {offsets = [32, 0], sizes = [8, 8], strides = [1, 1]} : vector<64x8xbf16> to vector<8x8xbf16>
    %479 = vector.extract_strided_slice %393 {offsets = [32, 0], sizes = [8, 8], strides = [1, 1]} : vector<64x8xbf16> to vector<8x8xbf16>
    %cst_325 = arith.constant dense<0.000000e+00> : vector<8x8xf32>
    %480 = tpu.matmul %478, %479, %cst_325 {dimension_numbers = #tpu.dot_dimension_numbers<[1], [1], [0], [0], [0, 0, 1, 0], [], []>} : vector<8x8xbf16>, vector<8x8xbf16>, vector<8x8xf32> -> vector<8x8xf32>
    %c0_326 = arith.constant 0 : index
    %c0_327 = arith.constant 0 : index
    %c0_328 = arith.constant 0 : index
    %481 = vector.load %arg17[%c0_326, %c0_327, %c0_328] : memref<1x8x8xf32, #tpu.memory_space<vmem>>, vector<1x8x8xf32>
    %482 = vector.shape_cast %481 : vector<1x8x8xf32> to vector<8x8xf32>
    %483 = arith.addf %480, %482 : vector<8x8xf32>
    %cst_329 = arith.constant dense<0xFF800000> : vector<8xf32>
    %484 = vector.multi_reduction <maximumf>, %483, %cst_329 [1] : vector<8x8xf32> to vector<8xf32>
    %485 = vector.shape_cast %484 : vector<8xf32> to vector<8x1xf32>
    %486 = vector.broadcast %485 : vector<8x1xf32> to vector<8x8xf32>
    %487 = arith.subf %483, %486 : vector<8x8xf32>
    %488 = math.exp %487 : vector<8x8xf32>
    %cst_330 = arith.constant dense<0.000000e+00> : vector<8xf32>
    %489 = vector.multi_reduction <add>, %488, %cst_330 [1] : vector<8x8xf32> to vector<8xf32>
    %490 = vector.shape_cast %489 : vector<8xf32> to vector<8x1xf32>
    %491 = tpu.reciprocal %490 {approx = true} : vector<8x1xf32> -> vector<8x1xf32>
    %492 = vector.broadcast %491 : vector<8x1xf32> to vector<8x8xf32>
    %493 = arith.mulf %488, %492 : vector<8x8xf32>
    %494 = arith.truncf %493 : vector<8x8xf32> to vector<8x8xbf16>
    %c0_331 = arith.constant 0 : index
    %c4_332 = arith.constant 4 : index
    %c0_333 = arith.constant 0 : index
    %495 = vector.load %arg21[%c0_331, %c4_332, %c0_333] : memref<8x8x8xf32, #tpu.memory_space<vmem>>, vector<8x1x8xf32>
    %496 = vector.shape_cast %495 : vector<8x1x8xf32> to vector<8x8xf32>
    %497 = arith.truncf %496 : vector<8x8xf32> to vector<8x8xbf16>
    %cst_334 = arith.constant dense<0.000000e+00> : vector<8x8xf32>
    %498 = tpu.matmul %494, %497, %cst_334 {dimension_numbers = #tpu.dot_dimension_numbers<[1], [0], [0], [1], [0, 0, 1, 1], [], []>} : vector<8x8xbf16>, vector<8x8xbf16>, vector<8x8xf32> -> vector<8x8xf32>
    %499 = vector.extract_strided_slice %392 {offsets = [40, 0], sizes = [8, 8], strides = [1, 1]} : vector<64x8xbf16> to vector<8x8xbf16>
    %500 = vector.extract_strided_slice %393 {offsets = [40, 0], sizes = [8, 8], strides = [1, 1]} : vector<64x8xbf16> to vector<8x8xbf16>
    %cst_335 = arith.constant dense<0.000000e+00> : vector<8x8xf32>
    %501 = tpu.matmul %499, %500, %cst_335 {dimension_numbers = #tpu.dot_dimension_numbers<[1], [1], [0], [0], [0, 0, 1, 0], [], []>} : vector<8x8xbf16>, vector<8x8xbf16>, vector<8x8xf32> -> vector<8x8xf32>
    %c0_336 = arith.constant 0 : index
    %c0_337 = arith.constant 0 : index
    %c0_338 = arith.constant 0 : index
    %502 = vector.load %arg17[%c0_336, %c0_337, %c0_338] : memref<1x8x8xf32, #tpu.memory_space<vmem>>, vector<1x8x8xf32>
    %503 = vector.shape_cast %502 : vector<1x8x8xf32> to vector<8x8xf32>
    %504 = arith.addf %501, %503 : vector<8x8xf32>
    %cst_339 = arith.constant dense<0xFF800000> : vector<8xf32>
    %505 = vector.multi_reduction <maximumf>, %504, %cst_339 [1] : vector<8x8xf32> to vector<8xf32>
    %506 = vector.shape_cast %505 : vector<8xf32> to vector<8x1xf32>
    %507 = vector.broadcast %506 : vector<8x1xf32> to vector<8x8xf32>
    %508 = arith.subf %504, %507 : vector<8x8xf32>
    %509 = math.exp %508 : vector<8x8xf32>
    %cst_340 = arith.constant dense<0.000000e+00> : vector<8xf32>
    %510 = vector.multi_reduction <add>, %509, %cst_340 [1] : vector<8x8xf32> to vector<8xf32>
    %511 = vector.shape_cast %510 : vector<8xf32> to vector<8x1xf32>
    %512 = tpu.reciprocal %511 {approx = true} : vector<8x1xf32> -> vector<8x1xf32>
    %513 = vector.broadcast %512 : vector<8x1xf32> to vector<8x8xf32>
    %514 = arith.mulf %509, %513 : vector<8x8xf32>
    %515 = arith.truncf %514 : vector<8x8xf32> to vector<8x8xbf16>
    %c0_341 = arith.constant 0 : index
    %c5 = arith.constant 5 : index
    %c0_342 = arith.constant 0 : index
    %516 = vector.load %arg21[%c0_341, %c5, %c0_342] : memref<8x8x8xf32, #tpu.memory_space<vmem>>, vector<8x1x8xf32>
    %517 = vector.shape_cast %516 : vector<8x1x8xf32> to vector<8x8xf32>
    %518 = arith.truncf %517 : vector<8x8xf32> to vector<8x8xbf16>
    %cst_343 = arith.constant dense<0.000000e+00> : vector<8x8xf32>
    %519 = tpu.matmul %515, %518, %cst_343 {dimension_numbers = #tpu.dot_dimension_numbers<[1], [0], [0], [1], [0, 0, 1, 1], [], []>} : vector<8x8xbf16>, vector<8x8xbf16>, vector<8x8xf32> -> vector<8x8xf32>
    %520 = vector.extract_strided_slice %392 {offsets = [48, 0], sizes = [8, 8], strides = [1, 1]} : vector<64x8xbf16> to vector<8x8xbf16>
    %521 = vector.extract_strided_slice %393 {offsets = [48, 0], sizes = [8, 8], strides = [1, 1]} : vector<64x8xbf16> to vector<8x8xbf16>
    %cst_344 = arith.constant dense<0.000000e+00> : vector<8x8xf32>
    %522 = tpu.matmul %520, %521, %cst_344 {dimension_numbers = #tpu.dot_dimension_numbers<[1], [1], [0], [0], [0, 0, 1, 0], [], []>} : vector<8x8xbf16>, vector<8x8xbf16>, vector<8x8xf32> -> vector<8x8xf32>
    %c0_345 = arith.constant 0 : index
    %c0_346 = arith.constant 0 : index
    %c0_347 = arith.constant 0 : index
    %523 = vector.load %arg17[%c0_345, %c0_346, %c0_347] : memref<1x8x8xf32, #tpu.memory_space<vmem>>, vector<1x8x8xf32>
    %524 = vector.shape_cast %523 : vector<1x8x8xf32> to vector<8x8xf32>
    %525 = arith.addf %522, %524 : vector<8x8xf32>
    %cst_348 = arith.constant dense<0xFF800000> : vector<8xf32>
    %526 = vector.multi_reduction <maximumf>, %525, %cst_348 [1] : vector<8x8xf32> to vector<8xf32>
    %527 = vector.shape_cast %526 : vector<8xf32> to vector<8x1xf32>
    %528 = vector.broadcast %527 : vector<8x1xf32> to vector<8x8xf32>
    %529 = arith.subf %525, %528 : vector<8x8xf32>
    %530 = math.exp %529 : vector<8x8xf32>
    %cst_349 = arith.constant dense<0.000000e+00> : vector<8xf32>
    %531 = vector.multi_reduction <add>, %530, %cst_349 [1] : vector<8x8xf32> to vector<8xf32>
    %532 = vector.shape_cast %531 : vector<8xf32> to vector<8x1xf32>
    %533 = tpu.reciprocal %532 {approx = true} : vector<8x1xf32> -> vector<8x1xf32>
    %534 = vector.broadcast %533 : vector<8x1xf32> to vector<8x8xf32>
    %535 = arith.mulf %530, %534 : vector<8x8xf32>
    %536 = arith.truncf %535 : vector<8x8xf32> to vector<8x8xbf16>
    %c0_350 = arith.constant 0 : index
    %c6 = arith.constant 6 : index
    %c0_351 = arith.constant 0 : index
    %537 = vector.load %arg21[%c0_350, %c6, %c0_351] : memref<8x8x8xf32, #tpu.memory_space<vmem>>, vector<8x1x8xf32>
    %538 = vector.shape_cast %537 : vector<8x1x8xf32> to vector<8x8xf32>
    %539 = arith.truncf %538 : vector<8x8xf32> to vector<8x8xbf16>
    %cst_352 = arith.constant dense<0.000000e+00> : vector<8x8xf32>
    %540 = tpu.matmul %536, %539, %cst_352 {dimension_numbers = #tpu.dot_dimension_numbers<[1], [0], [0], [1], [0, 0, 1, 1], [], []>} : vector<8x8xbf16>, vector<8x8xbf16>, vector<8x8xf32> -> vector<8x8xf32>
    %541 = vector.extract_strided_slice %392 {offsets = [56, 0], sizes = [8, 8], strides = [1, 1]} : vector<64x8xbf16> to vector<8x8xbf16>
    %542 = vector.extract_strided_slice %393 {offsets = [56, 0], sizes = [8, 8], strides = [1, 1]} : vector<64x8xbf16> to vector<8x8xbf16>
    %cst_353 = arith.constant dense<0.000000e+00> : vector<8x8xf32>
    %543 = tpu.matmul %541, %542, %cst_353 {dimension_numbers = #tpu.dot_dimension_numbers<[1], [1], [0], [0], [0, 0, 1, 0], [], []>} : vector<8x8xbf16>, vector<8x8xbf16>, vector<8x8xf32> -> vector<8x8xf32>
    %c0_354 = arith.constant 0 : index
    %c0_355 = arith.constant 0 : index
    %c0_356 = arith.constant 0 : index
    %544 = vector.load %arg17[%c0_354, %c0_355, %c0_356] : memref<1x8x8xf32, #tpu.memory_space<vmem>>, vector<1x8x8xf32>
    %545 = vector.shape_cast %544 : vector<1x8x8xf32> to vector<8x8xf32>
    %546 = arith.addf %543, %545 : vector<8x8xf32>
    %cst_357 = arith.constant dense<0xFF800000> : vector<8xf32>
    %547 = vector.multi_reduction <maximumf>, %546, %cst_357 [1] : vector<8x8xf32> to vector<8xf32>
    %548 = vector.shape_cast %547 : vector<8xf32> to vector<8x1xf32>
    %549 = vector.broadcast %548 : vector<8x1xf32> to vector<8x8xf32>
    %550 = arith.subf %546, %549 : vector<8x8xf32>
    %551 = math.exp %550 : vector<8x8xf32>
    %cst_358 = arith.constant dense<0.000000e+00> : vector<8xf32>
    %552 = vector.multi_reduction <add>, %551, %cst_358 [1] : vector<8x8xf32> to vector<8xf32>
    %553 = vector.shape_cast %552 : vector<8xf32> to vector<8x1xf32>
    %554 = tpu.reciprocal %553 {approx = true} : vector<8x1xf32> -> vector<8x1xf32>
    %555 = vector.broadcast %554 : vector<8x1xf32> to vector<8x8xf32>
    %556 = arith.mulf %551, %555 : vector<8x8xf32>
    %557 = arith.truncf %556 : vector<8x8xf32> to vector<8x8xbf16>
    %c0_359 = arith.constant 0 : index
    %c7 = arith.constant 7 : index
    %c0_360 = arith.constant 0 : index
    %558 = vector.load %arg21[%c0_359, %c7, %c0_360] : memref<8x8x8xf32, #tpu.memory_space<vmem>>, vector<8x1x8xf32>
    %559 = vector.shape_cast %558 : vector<8x1x8xf32> to vector<8x8xf32>
    %560 = arith.truncf %559 : vector<8x8xf32> to vector<8x8xbf16>
    %cst_361 = arith.constant dense<0.000000e+00> : vector<8x8xf32>
    %561 = tpu.matmul %557, %560, %cst_361 {dimension_numbers = #tpu.dot_dimension_numbers<[1], [0], [0], [1], [0, 0, 1, 1], [], []>} : vector<8x8xbf16>, vector<8x8xbf16>, vector<8x8xf32> -> vector<8x8xf32>
    %562 = vector.shape_cast %414 : vector<8x8xf32> to vector<1x8x8xf32>
    %563 = vector.shape_cast %435 : vector<8x8xf32> to vector<1x8x8xf32>
    %564 = vector.shape_cast %456 : vector<8x8xf32> to vector<1x8x8xf32>
    %565 = vector.shape_cast %477 : vector<8x8xf32> to vector<1x8x8xf32>
    %566 = vector.shape_cast %498 : vector<8x8xf32> to vector<1x8x8xf32>
    %567 = vector.shape_cast %519 : vector<8x8xf32> to vector<1x8x8xf32>
    %568 = vector.shape_cast %540 : vector<8x8xf32> to vector<1x8x8xf32>
    %569 = vector.shape_cast %561 : vector<8x8xf32> to vector<1x8x8xf32>
    %570 = tpu.concatenate %562, %563, %564, %565, %566, %567, %568, %569 in 0 : vector<1x8x8xf32>, vector<1x8x8xf32>, vector<1x8x8xf32>, vector<1x8x8xf32>, vector<1x8x8xf32>, vector<1x8x8xf32>, vector<1x8x8xf32>, vector<1x8x8xf32> -> vector<8x8x8xf32>
    %571 = arith.addf %570, %391 : vector<8x8x8xf32>
    %572 = vector.shape_cast %571 : vector<8x8x8xf32> to vector<64x8xf32>
    %573 = arith.truncf %572 : vector<64x8xf32> to vector<64x8xbf16>
    %c0_362 = arith.constant 0 : index
    %c0_363 = arith.constant 0 : index
    %c0_364 = arith.constant 0 : index
    %574 = vector.load %arg18[%c0_362, %c0_363, %c0_364] : memref<1x8x32xbf16, #tpu.memory_space<vmem>>, vector<1x8x32xbf16>
    %575 = vector.shape_cast %574 : vector<1x8x32xbf16> to vector<8x32xbf16>
    %cst_365 = arith.constant dense<0.000000e+00> : vector<64x32xf32>
    %576 = tpu.matmul %573, %575, %cst_365 {dimension_numbers = #tpu.dot_dimension_numbers<[1], [0], [0], [1], [0, 0, 1, 1], [], []>} : vector<64x8xbf16>, vector<8x32xbf16>, vector<64x32xf32> -> vector<64x32xf32>
    %577 = vector.shape_cast %576 : vector<64x32xf32> to vector<8x8x32xf32>
    %c0_i32_366 = arith.constant 0 : i32
    %578 = arith.cmpi eq, %arg1, %c0_i32_366 : i32
    %579 = arith.extui %578 : i1 to i32
    %c0_i32_367 = arith.constant 0 : i32
    %580 = arith.cmpi ne, %579, %c0_i32_367 : i32
    scf.if %580 {
      %c0_376 = arith.constant 0 : index
      %c0_377 = arith.constant 0 : index
      %c0_378 = arith.constant 0 : index
      %587 = vector.load %arg19[%c0_376, %c0_377, %c0_378] : memref<1x1x32xf32, #tpu.memory_space<vmem>>, vector<1x1x32xf32>
      %588 = vector.shape_cast %587 : vector<1x1x32xf32> to vector<1x32xf32>
      %589 = vector.shape_cast %588 : vector<1x32xf32> to vector<1x1x32xf32>
      %590 = vector.broadcast %589 : vector<1x1x32xf32> to vector<8x8x32xf32>
      %c0_379 = arith.constant 0 : index
      %c0_380 = arith.constant 0 : index
      %c0_381 = arith.constant 0 : index
      %c0_382 = arith.constant 0 : index
      %591 = vector.load %arg20[%c0_379, %c0_380, %c0_381, %c0_382] : memref<1x8x8x32xf32, #tpu.memory_space<vmem>>, vector<1x8x8x32xf32>
      %592 = vector.shape_cast %591 : vector<1x8x8x32xf32> to vector<8x8x32xf32>
      %593 = vector.shape_cast %590 : vector<8x8x32xf32> to vector<1x8x8x32xf32>
      tpu.vector_store %arg20[%c0_379, %c0_380, %c0_381, %c0_382], %593 {strides = array<i32>} : memref<1x8x8x32xf32, #tpu.memory_space<vmem>>, vector<1x8x8x32xf32>,
    } else {
    }
    %c0_368 = arith.constant 0 : index
    %c0_369 = arith.constant 0 : index
    %c0_370 = arith.constant 0 : index
    %c0_371 = arith.constant 0 : index
    %581 = vector.load %arg20[%c0_368, %c0_369, %c0_370, %c0_371] : memref<1x8x8x32xf32, #tpu.memory_space<vmem>>, vector<1x8x8x32xf32>
    %582 = vector.shape_cast %581 : vector<1x8x8x32xf32> to vector<8x8x32xf32>
    %583 = arith.addf %582, %577 : vector<8x8x32xf32>
    %c0_372 = arith.constant 0 : index
    %c0_373 = arith.constant 0 : index
    %c0_374 = arith.constant 0 : index
    %c0_375 = arith.constant 0 : index
    %584 = vector.load %arg20[%c0_372, %c0_373, %c0_374, %c0_375] : memref<1x8x8x32xf32, #tpu.memory_space<vmem>>, vector<1x8x8x32xf32>
    %585 = vector.shape_cast %584 : vector<1x8x8x32xf32> to vector<8x8x32xf32>
    %586 = vector.shape_cast %583 : vector<8x8x32xf32> to vector<1x8x8x32xf32>
    tpu.vector_store %arg20[%c0_372, %c0_373, %c0_374, %c0_375], %586 {strides = array<i32>} : memref<1x8x8x32xf32, #tpu.memory_space<vmem>>, vector<1x8x8x32xf32>,
    return
  }
  func.func @transform_0(%arg0: i32, %arg1: i32) -> (i32, i32, i32, i32) {
    %c0_i32 = arith.constant 0 : i32
    %c0_i32_0 = arith.constant 0 : i32
    %c0_i32_1 = arith.constant 0 : i32
    %c0_i32_2 = arith.constant 0 : i32
    return %arg0, %c0_i32, %c0_i32_0, %c0_i32_1 : i32, i32, i32, i32
  }
  func.func @transform_1(%arg0: i32, %arg1: i32) -> (i32, i32, i32, i32) {
    %c0_i32 = arith.constant 0 : i32
    %c0_i32_0 = arith.constant 0 : i32
    %c0_i32_1 = arith.constant 0 : i32
    %c0_i32_2 = arith.constant 0 : i32
    return %arg0, %c0_i32, %c0_i32_0, %c0_i32_1 : i32, i32, i32, i32
  }
  func.func @transform_2(%arg0: i32, %arg1: i32) -> (i32, i32) {
    %c0_i32 = arith.constant 0 : i32
    %c0_i32_0 = arith.constant 0 : i32
    %c0_i32_1 = arith.constant 0 : i32
    return %c0_i32, %c0_i32_0 : i32, i32
  }
  func.func @transform_3(%arg0: i32, %arg1: i32) -> (i32, i32) {
    %c0_i32 = arith.constant 0 : i32
    %c0_i32_0 = arith.constant 0 : i32
    %c0_i32_1 = arith.constant 0 : i32
    return %c0_i32, %c0_i32_0 : i32, i32
  }
  func.func @transform_4(%arg0: i32, %arg1: i32) -> (i32, i32) {
    %c0_i32 = arith.constant 0 : i32
    %c0_i32_0 = arith.constant 0 : i32
    %c0_i32_1 = arith.constant 0 : i32
    return %c0_i32, %c0_i32_0 : i32, i32
  }
  func.func @transform_5(%arg0: i32, %arg1: i32) -> (i32, i32) {
    %c0_i32 = arith.constant 0 : i32
    %c0_i32_0 = arith.constant 0 : i32
    %c0_i32_1 = arith.constant 0 : i32
    return %c0_i32, %c0_i32_0 : i32, i32
  }
  func.func @transform_6(%arg0: i32, %arg1: i32) -> (i32, i32, i32) {
    %c0_i32 = arith.constant 0 : i32
    %c0_i32_0 = arith.constant 0 : i32
    %c0_i32_1 = arith.constant 0 : i32
    return %arg1, %c0_i32, %c0_i32_0 : i32, i32, i32
  }
  func.func @transform_7(%arg0: i32, %arg1: i32) -> (i32, i32, i32) {
    %c0_i32 = arith.constant 0 : i32
    %c0_i32_0 = arith.constant 0 : i32
    %c0_i32_1 = arith.constant 0 : i32
    return %arg1, %c0_i32, %c0_i32_0 : i32, i32, i32
  }
  func.func @transform_8(%arg0: i32, %arg1: i32) -> (i32, i32, i32) {
    %c0_i32 = arith.constant 0 : i32
    %c0_i32_0 = arith.constant 0 : i32
    %c0_i32_1 = arith.constant 0 : i32
    return %arg1, %c0_i32, %c0_i32_0 : i32, i32, i32
  }
  func.func @transform_9(%arg0: i32, %arg1: i32) -> (i32, i32, i32) {
    %c0_i32 = arith.constant 0 : i32
    %c0_i32_0 = arith.constant 0 : i32
    %c0_i32_1 = arith.constant 0 : i32
    return %arg1, %c0_i32, %c0_i32_0 : i32, i32, i32
  }
  func.func @transform_10(%arg0: i32, %arg1: i32) -> (i32, i32, i32) {
    %c0_i32 = arith.constant 0 : i32
    %c0_i32_0 = arith.constant 0 : i32
    %c0_i32_1 = arith.constant 0 : i32
    return %arg1, %c0_i32, %c0_i32_0 : i32, i32, i32
  }
  func.func @transform_11(%arg0: i32, %arg1: i32) -> (i32, i32, i32) {
    %c0_i32 = arith.constant 0 : i32
    %c0_i32_0 = arith.constant 0 : i32
    %c0_i32_1 = arith.constant 0 : i32
    return %arg1, %c0_i32, %c0_i32_0 : i32, i32, i32
  }
  func.func @transform_12(%arg0: i32, %arg1: i32) -> (i32, i32, i32, i32) {
    %c0_i32 = arith.constant 0 : i32
    %c0_i32_0 = arith.constant 0 : i32
    %c0_i32_1 = arith.constant 0 : i32
    %c0_i32_2 = arith.constant 0 : i32
    return %arg1, %c0_i32, %c0_i32_0, %c0_i32_1 : i32, i32, i32, i32
  }
  func.func @transform_13(%arg0: i32, %arg1: i32) -> (i32, i32, i32) {
    %c0_i32 = arith.constant 0 : i32
    %c0_i32_0 = arith.constant 0 : i32
    %c0_i32_1 = arith.constant 0 : i32
    return %arg1, %c0_i32, %c0_i32_0 : i32, i32, i32
  }
  func.func @transform_14(%arg0: i32, %arg1: i32) -> (i32, i32, i32) {
    %c0_i32 = arith.constant 0 : i32
    %c0_i32_0 = arith.constant 0 : i32
    %c0_i32_1 = arith.constant 0 : i32
    return %arg1, %c0_i32, %c0_i32_0 : i32, i32, i32
  }
  func.func @transform_15(%arg0: i32, %arg1: i32) -> (i32, i32, i32) {
    %c0_i32 = arith.constant 0 : i32
    %c0_i32_0 = arith.constant 0 : i32
    %c0_i32_1 = arith.constant 0 : i32
    return %arg1, %c0_i32, %c0_i32_0 : i32, i32, i32
  }
  func.func @transform_16(%arg0: i32, %arg1: i32) -> (i32, i32, i32) {
    %c0_i32 = arith.constant 0 : i32
    %c0_i32_0 = arith.constant 0 : i32
    %c0_i32_1 = arith.constant 0 : i32
    return %arg1, %c0_i32, %c0_i32_0 : i32, i32, i32
  }
  func.func @transform_17(%arg0: i32, %arg1: i32) -> (i32, i32, i32) {
    %c0_i32 = arith.constant 0 : i32
    %c0_i32_0 = arith.constant 0 : i32
    %c0_i32_1 = arith.constant 0 : i32
    %c0_i32_2 = arith.constant 0 : i32
    return %c0_i32, %c0_i32_0, %c0_i32_1 : i32, i32, i32
  }
  func.func @transform_18(%arg0: i32, %arg1: i32) -> (i32, i32, i32, i32) {
    %c0_i32 = arith.constant 0 : i32
    %c0_i32_0 = arith.constant 0 : i32
    %c0_i32_1 = arith.constant 0 : i32
    %c0_i32_2 = arith.constant 0 : i32
    return %arg0, %c0_i32, %c0_i32_0, %c0_i32_1 : i32, i32, i32, i32
  }
}

</mosaic_0001>

<bundles_post_ra>
// kernel: vision_retention_chunk_forward.1
= control target key start
LH: loop header
LB: loop body
LE: loop exit
PB: predicated region body
PF: predicated region fallthrough
CT: control target
= control target key end

     0   :  { %s6006_s27 = smov 0   ;;  %s6008_s28 = smov 0   ;;  %s8018_s0 = inlined_call_operand.vmem [shape: f32[2,8,8,32], index: 0, kind: input, shape index: {}]   ;;  %s8019_s1 = inlined_call_operand.vmem [shape: f32[2,8,8,32], index: 1, kind: input, shape index: {}]   ;;  %s8020_s2 = inlined_call_operand.vmem [shape: f32[64,8], index: 2, kind: input, shape index: {}]   ;;  %s8021_s3 = inlined_call_operand.vmem [shape: f32[64,8], index: 3, kind: input, shape index: {}]   ;;  %s8022_s4 = inlined_call_operand.vmem [shape: f32[64,8], index: 4, kind: input, shape index: {}]   ;;  %s8023_s5 = inlined_call_operand.vmem [shape: f32[64,8], index: 5, kind: input, shape index: {}]   ;;  %s8024_s6 = inlined_call_operand.vmem [shape: bf16[4,32,8], index: 6, kind: input, shape index: {}]   ;;  %s8025_s7 = inlined_call_operand.vmem [shape: f32[4,1,8], index: 7, kind: input, shape index: {}]   ;;  %s8026_s8 = inlined_call_operand.vmem [shape: bf16[4,32,8], index: 8, kind: input, shape index: {}]   ;;  %s8027_s9 = inlined_call_operand.vmem [shape: f32[4,1,8], index: 9, kind: input, shape index: {}]   ;;  %s8028_s10 = inlined_call_operand.vmem [shape: bf16[4,32,8], index: 10, kind: input, shape index: {}]   ;;  %s8029_s11 = inlined_call_operand.vmem [shape: f32[4,1,8], index: 11, kind: input, shape index: {}]   ;;  %s8030_s12 = inlined_call_operand.vmem [shape: f32[4,5,5,8], index: 12, kind: input, shape index: {}]   ;;  %s8031_s13 = inlined_call_operand.vmem [shape: f32[4,1,8], index: 13, kind: input, shape index: {}]   ;;  %s8032_s14 = inlined_call_operand.vmem [shape: f32[4,8,8], index: 14, kind: input, shape index: {}]   ;;  %s8033_s15 = inlined_call_operand.vmem [shape: f32[4,8,8], index: 15, kind: input, shape index: {}]   ;;  %s8034_s16 = inlined_call_operand.vmem [shape: bf16[4,8,32], index: 16, kind: input, shape index: {}]   ;;  %s8035_s17 = inlined_call_operand.vmem [shape: f32[1,1,32], index: 17, kind: input, shape index: {}]   ;;  %s8036_s18 = inlined_call_operand.vmem [shape: f32[2,8,8,32], index: 18, kind: output, shape index: {}]  }
   0x1   :  { %8050 = sst [smem:[#allocation9_spill]] %s8018_s0  ;;  %s6010_s29 = smov 0  }
   0x2   :  { %8051 = sst [smem:[#allocation10_spill]] %s8019_s1  ;;  %s6012_s30 = smov 0  }
   0x3   :  { %8052 = sst [smem:[#allocation11_spill]] %s8020_s2  ;;  %s6014_s0 = smov 0  }
   0x4   :  { %8053 = sst [smem:[#allocation12_spill]] %s8021_s3 }
   0x5   :  { %8054 = sst [smem:[#allocation13_spill]] %s8024_s6 }
   0x6 LB: > { %8055 = sst [smem:[#allocation4_spill]] %s5895_s29  ;;  %s37_s19 = sadd.s32 1, %s5895_s29  ;;  %s5903_s0 = sphi %s6014_s0, %s28_s0   ;;  %s5899_s30 = sphi %s6012_s30, %s8077_s30   ;;  %s5895_s29 = sphi %s6010_s29, %s8076_s29   ;;  %s5891_s28 = sphi %s6008_s28, %s8075_s28   ;;  %s5887_s27 = sphi %s6006_s27, %s8074_s27  }
   0x7   : > { %8056 = sst [smem:[#allocation5_spill]] %s5899_s30  ;;  %s40_s1 = sadd.s32 1, %s5899_s30 }
   0x8   : > { %8057 = sst [smem:[#allocation6_spill]] %s5903_s0  ;;  %p38_p0 = scmp.ge.s32.totalorder %s37_s19, 4 }
   0x9   : > { %p5219_p1 = scmp.ge.s32.totalorder %s5903_s0, 1  ;;  %p633_p2 = scmp.lt.s32.totalorder %s5903_s0, 9 }
   0xa   : > { %s8079_s19 = smov (%p38_p0, %s37_s19), 0  ;;  %s8081_s1 = smov (!%p38_p0, %s40_s1), %s5899_s30 }
   0xb   : > { %8058 = sst [smem:[#allocation7_spill]] %s8079_s19  ;;  %p634_p3 = pnand %p5219_p1, %p633_p2 }
   0xc   : > { %p42_p4 = scmp.ge.s32.totalorder %s8081_s1, 2  ;;  %p746_p5 = scmp.lt.s32.totalorder (!%p634_p3), %s5887_s27, 3  ;;  %vm843_vm0 = vcmask (!%p634_p3), 261120   ;;  %vm2018_vm1 = vcmask (!%p634_p3), 64512   ;;  %v5909_v63 = vmov (!%p634_p3), 0.0   ;;  %vm5910_vm2 = vmmov (!%p634_p3), 0  }
   0xd   : > { %637 = sbr.rel (%p634_p3) target bundleno = 2062 (0x80e), region = 92  ;;  %p736_p6 = scmp.lt.s32.totalorder (!%p634_p3), %s5891_s28, 1  ;;  %2860 = vst.msk [vmem:[#allocation3] sm:$0xff] (!%p634_p3), %vm2018_vm1, %v5909_v63  ;;  %2863 = vst.msk [vmem:[#allocation3 + $0x10] sm:$0xff] (!%p634_p3), %vm2018_vm1, %v5909_v63  ;;  %vm1001_vm3 = vcmask (!%p634_p3), 56320   ;;  %vm1058_vm4 = vcmask (!%p634_p3), 7168  }
   0xe   : > { %s8083_s1 = smov (%p42_p4, %s8081_s1), 0  ;;  %s8060_s6 = sld [smem:[#allocation13_spill]] (!%p634_p3)  ;;  %2865 = vst.msk [vmem:[#allocation3 + $0x20] sm:$0xff] (!%p634_p3), %vm2018_vm1, %v5909_v63  ;;  %2867 = vst.msk [vmem:[#allocation3 + $0x30] sm:$0xff] (!%p634_p3), %vm2018_vm1, %v5909_v63  ;;  %vm2486_vm6 = vcmask (!%p634_p3), 1043456   ;;  %vm2861_vm7 = vcmask (!%p634_p3), 60416  }
   0xf   : > { %8059 = sst [smem:[#allocation8_spill]] %s8083_s1  ;;  %s8061_s1 = sld [smem:[#allocation9_spill]] (!%p634_p3)  ;;  %2869 = vst.msk [vmem:[#allocation3 + $0x40] sm:$0xff] (!%p634_p3), %vm2018_vm1, %v5909_v63  ;;  %2871 = vst.msk [vmem:[#allocation3 + $0x50] sm:$0xff] (!%p634_p3), %vm2018_vm1, %v5909_v63  ;;  %vm3741_vm8 = vcmask (!%p634_p3), 1041409   ;;  %vm3744_vm9 = vcmask (!%p634_p3), 1042434  }
  0x10   : > { %s8043_s22 = smov (!%p634_p3), 7   ;;  %2873 = vst.msk [vmem:[#allocation3 + $0x60] sm:$0xff] (!%p634_p3), %vm2018_vm1, %v5909_v63  ;;  %2875 = vst.msk [vmem:[#allocation3 + $0x70] sm:$0xff] (!%p634_p3), %vm2018_vm1, %v5909_v63  ;;  %s8063_s3 = sld [smem:[#allocation12_spill]] (!%p634_p3)  ;;  %vm3747_vm10 = vcmask (!%p634_p3), 1043459   ;;  %vm3750_vm11 = vcmask (!%p634_p3), 1044484  }
  0x11   : > { %2877 = vst.msk [vmem:[#allocation3 + $0x80] sm:$0xff] (!%p634_p3), %vm2018_vm1, %v5909_v63  ;;  %2879 = vst.msk [vmem:[#allocation3 + $0x90] sm:$0xff] (!%p634_p3), %vm2018_vm1, %v5909_v63  ;;  %s8066_s29 = sld [smem:[#allocation11_spill]] (!%p634_p3)  ;;  %s8071_s26 = smov (!%p634_p3), 127   ;;  %vm3753_vm12 = vcmask (!%p634_p3), 1045509   ;;  %vm3756_vm13 = vcmask (!%p634_p3), 1046534  }
  0x12   : > { %2881 = vst.msk [vmem:[#allocation3 + $0xa0] sm:$0xff] (!%p634_p3), %vm2018_vm1, %v5909_v63  ;;  %2883 = vst.msk [vmem:[#allocation3 + $0xb0] sm:$0xff] (!%p634_p3), %vm2018_vm1, %v5909_v63  ;;  %vm3759_vm14 = vcmask (!%p634_p3), 1047559   ;;  %p5351_p7 = scmp.ne.s32.totalorder (!%p634_p3), %s5887_s27, 0 }
  0x13   : > { %2870 = vst.msk [vmem:[#allocation3 + $0x48] sm:$0xf] (!%p634_p3), %vm2861_vm7, %v5909_v63  ;;  %2862 = vst.msk [vmem:[#allocation3 + $0x8] sm:$0xf] (!%p634_p3), %vm2861_vm7, %v5909_v63 }
  0x14   : > { %s6040_s20 = scalar_select %p746_p5, %s5887_s27, 3  ;;  %2864 = vst.msk [vmem:[#allocation3 + $0x18] sm:$0xf] %vm2861_vm7, %v5909_v63  ;;  %2866 = vst.msk [vmem:[#allocation3 + $0x28] sm:$0xf] %vm2861_vm7, %v5909_v63 }
  0x15   : > { %s8085_s28 = smov (!%p736_p6, %s5891_s28), 1  ;;  %2868 = vst.msk [vmem:[#allocation3 + $0x38] sm:$0xf] %vm2861_vm7, %v5909_v63  ;;  %2872 = vst.msk [vmem:[#allocation3 + $0x58] sm:$0xf] %vm2861_vm7, %v5909_v63 }
  0x16   : > { %s5357_s21 = sshll.u32 %s6040_s20, 4  ;;  %s6046_s24 = sshll.u32 %s8085_s28, 6  ;;  %2874 = vst.msk [vmem:[#allocation3 + $0x68] sm:$0xf] %vm2861_vm7, %v5909_v63  ;;  %2876 = vst.msk [vmem:[#allocation3 + $0x78] sm:$0xf] %vm2861_vm7, %v5909_v63 }
  0x17   : > { %s750_s23 = scalar_lea.vmem %s8060_s6, %s5357_s21  ;;  %s740_s19 = scalar_lea.vmem %s8061_s1, %s6046_s24  ;;  %2878 = vst.msk [vmem:[#allocation3 + $0x88] sm:$0xf] %vm2861_vm7, %v5909_v63  ;;  %2880 = vst.msk [vmem:[#allocation3 + $0x98] sm:$0xf] %vm2861_vm7, %v5909_v63 }
  0x18   : > { %v5792_v0 = vld [vmem:[%s750_s23] sm:$0xff]   ;;  %v5793_v1 = vld [vmem:[%s750_s23 + $0x8] sm:$0xff]   ;;  %s6056_s0 = scalar_lea.vmem %s8036_s18, %s6046_s24  ;;  %v798_v4 = vld [vmem:[%s740_s19 + $0x10] sm:$0xff]  ;;  %s758_s2 = scalar_lea.vmem %s8026_s8, %s5357_s21  ;;  %2882 = vst.msk [vmem:[#allocation3 + $0xa8] sm:$0xf] %vm2861_vm7, %v5909_v63 }
  0x19   : > { %5466 = vmatprep.subr.bf16.mxu0 %v5792_v0  ;;  %5740 = vmatprep.subr.bf16.mxu1 %v5792_v0  ;;  %v796_v2 = vld [vmem:[%s740_s19] sm:$0xff]  ;;  %v797_v3 = vld [vmem:[%s740_s19 + $0x8] sm:$0xff]  ;;  %v799_v6 = vld [vmem:[%s740_s19 + $0x18] sm:$0xff]  ;;  %s766_s1 = scalar_lea.vmem %s8028_s10, %s5357_s21  ;;  %s8062_s23 = sld [smem:[#allocation10_spill]]  ;;  %2884 = vst.msk [vmem:[#allocation3 + $0xb8] sm:$0xf] %vm2861_vm7, %v5909_v63 }
  0x1a   : > { %5467 = vmatpush3.bf16.msra.mxu0 %v5792_v0  ;;  %5742 = vmatpush3.bf16.msra.mxu1 %v5792_v0  ;;  %v804_v5 = vpack.c.bf16 %v797_v3, %v796_v2  ;;  %v800_v7 = vld [vmem:[%s740_s19 + $0x20] sm:$0xff]  ;;  %v801_v8 = vld [vmem:[%s740_s19 + $0x28] sm:$0xff]  ;;  %v802_v10 = vld [vmem:[%s740_s19 + $0x30] sm:$0xff]  ;;  %v805_v13 = vpack.c.bf16 %v799_v6, %v798_v4  ;;  %s6102_s28 = scalar_lea.vmem %s8025_s7, %s6040_s20  ;;  %s8047_s21 = smov 121  }
  0x1b   : > { %5468 = vmatprep.subr.bf16.mxu0 %v5793_v1  ;;  %5741 = vmatprep.subr.bf16.mxu1 %v5793_v1  ;;  %v806_v9 = vpack.c.bf16 %v801_v8, %v800_v7  ;;  %v803_v11 = vld [vmem:[%s740_s19 + $0x38] sm:$0xff]  ;;  %v5794_v12 = vld [vmem:[%s758_s2] sm:$0xff]   ;;  %v5795_v16 = vld [vmem:[%s758_s2 + $0x8] sm:$0xff]   ;;  %s8045_s2 = smov 127   ;;  %s8041_s19 = smov 1  }
  0x1c   : > { %5470 = vmatprep.mubr.msk.bf16.mxu0 %vm843_vm0, %v804_v5  ;;  %v807_v14 = vpack.c.bf16 %v803_v11, %v802_v10  ;;  %v5796_v15 = vld [vmem:[%s766_s1] sm:$0xff]   ;;  %v5797_v17 = vld [vmem:[%s766_s1 + $0x8] sm:$0xff]   ;;  %s6133_s1 = scalar_lea.vmem %s8027_s9, %s6040_s20 }
  0x1d   : > { %5474 = vmatprep.mubr.msk.bf16.mxu1 %vm843_vm0, %v806_v9  ;;  %v6105_v24 = vld [vmem:[%s6102_s28] ss:$0 sm:$0xff] }
  0x1e   : > { %5469 = vmatpush3.bf16.msra.mxu0 %v5793_v1  ;;  %5743 = vmatpush3.bf16.msra.mxu1 %v5793_v1  ;;  %v6140_v36 = vld [vmem:[%s6133_s1] ss:$0 sm:$0xff] }
  0x1f   : > { %5478 = vmatprep.subr.bf16.mxu1 %v5794_v12  ;;  %5490 = vmatprep.subr.bf16.mxu0 %v5796_v15  ;;  %s6075_s25 = scalar_lea.vmem %s8062_s23, %s6046_s24  ;;  %s8069_s24 = smov 1  }
  0x20   : > { %v808_v18 = vld [vmem:[%s6075_s25] sm:$0xff]  ;;  %v809_v19 = vld [vmem:[%s6075_s25 + $0x8] sm:$0xff]  ;;  %v810_v21 = vld [vmem:[%s6075_s25 + $0x10] sm:$0xff]  ;;  %s8070_s23 = smov 121  }
  0x21   : > { %5471 = vmatmul.mubr.msk.bf16.vlgmr.msra.gmra.mrb[0].mxu0 %vm843_vm0, %v805_v13  ;;  %5475 = vmatmul.mubr.msk.bf16.vlgmr.msra.gmra.mrb[0].mxu1 %vm843_vm0, %v807_v14  ;;  %v6082_v20 = vpack.c.bf16 %v809_v19, %v808_v18  ;;  %v811_v22 = vld [vmem:[%s6075_s25 + $0x18] sm:$0xff]  ;;  %v812_v52 = vld [vmem:[%s6075_s25 + $0x20] sm:$0xff]  ;;  %v813_v53 = vld [vmem:[%s6075_s25 + $0x28] sm:$0xff] }
  0x22   : > { %5479 = vmatpush3.bf16.msra.mxu1 %v5794_v12  ;;  %5482 = vmatprep.mubr.msk.bf16.mxu1 %vm843_vm0, %v804_v5  ;;  %v6092_v23 = vpack.c.bf16 %v811_v22, %v810_v21  ;;  %v818_v55 = vpack.c.bf16 %v813_v53, %v812_v52  ;;  %v814_v56 = vld [vmem:[%s6075_s25 + $0x30] sm:$0xff]  ;;  %v815_v57 = vld [vmem:[%s6075_s25 + $0x38] sm:$0xff]  ;;  %s8068_s25 = smov 7  }
  0x23   : > { %5480 = vmatprep.subr.bf16.mxu1 %v5795_v16  ;;  %5491 = vmatpush3.bf16.msra.mxu0 %v5796_v15  ;;  %v819_v59 = vpack.c.bf16 %v815_v57, %v814_v56 }
  0x24   : > { %5492 = vmatprep.subr.bf16.mxu0 %v5797_v17  ;;  %5494 = vmatprep.mubr.msk.bf16.mxu0 %vm843_vm0, %v804_v5 }
  0x26   : > { %5481 = vmatpush3.bf16.msra.mxu1 %v5795_v16 }
  0x27   : > { %5493 = vmatpush3.bf16.msra.mxu0 %v5797_v17  ;;  %5502 = vmatprep.subr.bf16.mxu1 %v5792_v0 }
  0x28   : > { %5514 = vmatprep.subr.bf16.mxu0 %v5794_v12 }
  0x29   : > { %5483 = vmatmul.mubr.msk.bf16.vlgmr.msra.gmra.mrb[4].mxu1 %vm843_vm0, %v805_v13 }
  0x2a   : > { %5486 = vmatprep.mubr.msk.bf16.mxu1 %vm843_vm0, %v806_v9  ;;  %5495 = vmatmul.mubr.msk.bf16.vlgmr.msra.gmra.mrb[4].mxu0 %vm843_vm0, %v805_v13 }
  0x2b   : > { %5498 = vmatprep.mubr.msk.bf16.mxu0 %vm843_vm0, %v806_v9  ;;  %5515 = vmatpush3.bf16.msra.mxu0 %v5794_v12 }
  0x2c   : > { %5516 = vmatprep.subr.bf16.mxu0 %v5795_v16  ;;  %5503 = vmatpush3.bf16.msra.mxu1 %v5792_v0 }
  0x2d   : > { %5504 = vmatprep.subr.bf16.mxu1 %v5793_v1 }
  0x2f   : > { %5517 = vmatpush3.bf16.msra.mxu0 %v5795_v16 }
  0x30   : > { %5505 = vmatpush3.bf16.msra.mxu1 %v5793_v1  ;;  %5538 = vmatprep.subr.bf16.mxu0 %v5909_v63 }
  0x31   : > { %5487 = vmatmul.mubr.msk.bf16.gmra.mrb[8].mxu1 %vm843_vm0, %v807_v14  ;;  %5526 = vmatprep.subr.bf16.mxu1 %v5796_v15 }
  0x32   : > { %5499 = vmatmul.mubr.msk.bf16.gmra.mrb[8].mxu0 %vm843_vm0, %v807_v14  ;;  %5506 = vmatprep.mubr.msk.bf16.mxu1 %vm843_vm0, %v6082_v20 }
  0x33   : > { %5518 = vmatprep.mubr.msk.bf16.mxu0 %vm843_vm0, %v6082_v20 }
  0x39   : > { %5507 = vmatmul.mubr.msk.bf16.vlgmr.msra.gmra.mrb[12].mxu1 %vm843_vm0, %v6092_v23 }
  0x3a   : > { %5519 = vmatmul.mubr.msk.bf16.vlgmr.msra.gmra.mrb[12].mxu0 %vm843_vm0, %v6092_v23  ;;  %5527 = vmatpush3.bf16.msra.mxu1 %v5796_v15 }
  0x3b   : > { %5528 = vmatprep.subr.bf16.mxu1 %v5797_v17  ;;  %5522 = vmatprep.mubr.msk.bf16.mxu0 %vm843_vm0, %v818_v55 }
  0x3c   : > { %5510 = vmatprep.mubr.msk.bf16.mxu1 %vm843_vm0, %v818_v55 }
  0x3e   : > { %5529 = vmatpush3.bf16.msra.mxu1 %v5797_v17 }
  0x3f   : > { %5544 = vmatprep.subr.bf16.mxu1 %v5909_v63 }
  0x41   : > { %5511 = vmatmul.mubr.msk.bf16.gmra.mrb[16].mxu1 %vm843_vm0, %v819_v59 }
  0x42   : > { %5523 = vmatmul.mubr.msk.bf16.gmra.mrb[16].mxu0 %vm843_vm0, %v819_v59  ;;  %5530 = vmatprep.mubr.msk.bf16.mxu1 %vm843_vm0, %v6082_v20 }
  0x43   : > { %5540 = vmatprep.mubr.msk.bf16.mxu0 %vm5910_vm2, %v5909_v63 }
  0x49   : > { %5531 = vmatmul.mubr.msk.bf16.vlgmr.msra.gmra.mrb[20].mxu1 %vm843_vm0, %v6092_v23 }
  0x4a   : > { %5534 = vmatprep.mubr.msk.bf16.mxu1 %vm843_vm0, %v818_v55 }
  0x51   : > { %5535 = vmatmul.mubr.msk.bf16.gmra.mrb[24].mxu1 %vm843_vm0, %v819_v59 }
  0x52   : > { %5546 = vmatprep.mubr.msk.bf16.mxu1 %vm5910_vm2, %v5909_v63 }
  0xf4   : > { %v5472_v25 = vpop.f32.mrb[0].mxu0  ;;  %v6107_v26 = vpop.f32.mrb[0].mxu1 }
  0xf5   : > { %v6110_v27 = vadd.f32 %v5472_v25, %v6105_v24  ;;  %v890_v28 = vpop.f32.mrb[1].mxu0  ;;  %v6112_v29 = vpop.f32.mrb[1].mxu1  ;;  %v6292_v8 = vadd.f32 %v6107_v26, %v6105_v24 }
  0xf6   : > { %v6114_v30 = vpop.f32.mrb[2].mxu0  ;;  %v6116_v31 = vpop.f32.mrb[2].mxu1  ;;  %v6127_v34 = vadd.f32 %v6105_v24, %v890_v28  ;;  %v6248_v2 = vadd.f32 %v6105_v24, %v6112_v29 }
  0xf7   : > { %981 = vrot.lane.b32.xlu1 %v6110_v27, %s8043_s22  ;;  %957 = vrot.lane.b32.xlu0 %v6110_v27, %s8045_s2  ;;  %v6122_v32 = vpop.f32.mrb[3].mxu0  ;;  %v6124_v33 = vpop.f32.mrb[3].mxu1  ;;  %v6340_v12 = vadd.f32 %v6114_v30, %v6105_v24  ;;  %v6364_v14 = vadd.f32 %v6116_v31, %v6105_v24  ;;  %v1067_v31 = vlaneseq }
  0xf8   : > { %v6316_v10 = vadd.f32 %v6105_v24, %v6122_v32  ;;  %v6352_v13 = vadd.f32 %v6105_v24, %v6124_v33 }
  0xfb   : > { %977 = vrot.lane.b32.xlu1 %v6127_v34, %s8043_s22  ;;  %953 = vrot.lane.b32.xlu0 %v6127_v34, %s8045_s2 }
  0xfc   : > { %v5484_v35 = vpop.f32.mrb[4].mxu1 }
  0xfd   : > { %v1171_v37 = vpop.f32.mrb[5].mxu1  ;;  %v6142_v38 = vpop.f32.mrb[4].mxu0  ;;  %v6149_v41 = vadd.f32 %v5484_v35, %v6140_v36 }
  0xfe   : > { %v6144_v39 = vpop.f32.mrb[6].mxu1  ;;  %v6146_v40 = vpop.f32.mrb[5].mxu0  ;;  %v6186_v58 = vadd.f32 %v6140_v36, %v1171_v37  ;;  %v1068_v37 = vand.u32 127, %v1067_v31 }
  0xff   : > { %1034 = vrot.lane.b32.xlu1 %v6127_v34, %s8041_s19  ;;  %1010 = vrot.lane.b32.xlu0 %v6127_v34, %s8047_s21  ;;  %v6155_v42 = vpop.f32.mrb[7].mxu1  ;;  %v6157_v43 = vpop.f32.mrb[6].mxu0  ;;  %v6324_v11 = vadd.f32 %v6144_v39, %v6140_v36 }
 0x100   : > { %v6159_v44 = vpop.f32.mrb[7].mxu0  ;;  %v6304_v9 = vadd.f32 %v6140_v36, %v6155_v42 }
 0x103   : > { %1246 = vrot.lane.b32.xlu1 %v6149_v41, %s8043_s22  ;;  %1222 = vrot.lane.b32.xlu0 %v6149_v41, %s8045_s2 }
 0x104   : > { %v5488_v45 = vpop.f32.mrb[8].mxu1 }
 0x105   : > { %v1187_v46 = vpop.f32.mrb[9].mxu1  ;;  %v6165_v47 = vpop.f32.mrb[8].mxu0  ;;  %v6258_v4 = vadd.f32 %v5488_v45, %v6140_v36  ;;  %v1073_v45 = vand.u32 1, %v1068_v37 }
 0x106   : > { %v6167_v48 = vpop.f32.mrb[10].mxu1  ;;  %v6169_v49 = vpop.f32.mrb[9].mxu0  ;;  %v6265_v5 = vadd.f32 %v6140_v36, %v1187_v46 }
 0x107   : > { %1302 = vrot.lane.b32.xlu1 %v6149_v41, %s8041_s19  ;;  %1278 = vrot.lane.b32.xlu0 %v6149_v41, %s8047_s21  ;;  %v6175_v50 = vpop.f32.mrb[11].mxu1  ;;  %v6177_v51 = vpop.f32.mrb[10].mxu0  ;;  %v6372_v15 = vadd.f32 %v6167_v48, %v6140_v36  ;;  %vm6441_vm5 = vcmp.eq.s32.totalorder %v1073_v45, 0 }
 0x108   : > { %v6181_v54 = vpop.f32.mrb[11].mxu0  ;;  %v6384_v16 = vadd.f32 %v6140_v36, %v6175_v50 }
 0x10b   : > { %1038 = vrot.lane.b32.xlu1 %v6110_v27, %s8041_s19  ;;  %1218 = vrot.lane.b32.xlu0 %v6186_v58, %s8045_s2 }
 0x10c   : > { %v6194_v60 = vpop.f32.mrb[12].mxu1 }
 0x10d   : > { %v6198_v61 = vpop.f32.mrb[12].mxu0  ;;  %v6242_v1 = vpop.f32.mrb[13].mxu1  ;;  %v6432_v50 = vadd.f32 %v6194_v60, %v6105_v24 }
 0x10e   : > { %v6202_v62 = vpop.f32.mrb[13].mxu0  ;;  %v6251_v3 = vpop.f32.mrb[14].mxu1  ;;  %v6404_v23 = vadd.f32 %v6198_v61, %v6140_v36  ;;  %v929_v61 = vld [vmem:[%s8063_s3] sm:$0xff] }
 0x10f   : > { %1274 = vrot.lane.b32.xlu1 %v6186_v58, %s8047_s21  ;;  %1242 = vrot.lane.b32.xlu0 %v6186_v58, %s8043_s22  ;;  %v6234_v0 = vpop.f32.mrb[14].mxu0  ;;  %v6288_v7 = vpop.f32.mrb[15].mxu1  ;;  %v6408_v25 = vadd.f32 %v6140_v36, %v6202_v62 }
 0x110   : > { %v6274_v6 = vpop.f32.mrb[15].mxu0  ;;  %v6420_v32 = vadd.f32 %v6234_v0, %v6140_v36 }
 0x113   : > { %1298 = vrot.lane.b32.xlu1 %v6186_v58, %s8041_s19  ;;  %1014 = vrot.lane.b32.xlu0 %v6110_v27, %s8047_s21 }
 0x117   : > { %985 = vrot.lane.b32.xlu1 %v6248_v2, %s8043_s22  ;;  %961 = vrot.lane.b32.xlu0 %v6248_v2, %s8045_s2 }
 0x11b   : > { %1254 = vrot.lane.b32.xlu1 %v6258_v4, %s8043_s22  ;;  %1230 = vrot.lane.b32.xlu0 %v6258_v4, %s8045_s2 }
 0x11f   : > { %1250 = vrot.lane.b32.xlu1 %v6265_v5, %s8043_s22  ;;  %1226 = vrot.lane.b32.xlu0 %v6265_v5, %s8045_s2 }
 0x123   : > { %1306 = vrot.lane.b32.xlu1 %v6265_v5, %s8041_s19  ;;  %1282 = vrot.lane.b32.xlu0 %v6265_v5, %s8047_s21 }
 0x127   : > { %1042 = vrot.lane.b32.xlu1 %v6248_v2, %s8041_s19  ;;  %1018 = vrot.lane.b32.xlu0 %v6248_v2, %s8047_s21 }
 0x12b   : > { %1310 = vrot.lane.b32.xlu1 %v6258_v4, %s8041_s19  ;;  %1286 = vrot.lane.b32.xlu0 %v6258_v4, %s8047_s21 }
 0x12f   : > { %989 = vrot.lane.b32.xlu1 %v6292_v8, %s8043_s22  ;;  %965 = vrot.lane.b32.xlu0 %v6292_v8, %s8045_s2 }
 0x133   : > { %1046 = vrot.lane.b32.xlu1 %v6292_v8, %s8041_s19  ;;  %1022 = vrot.lane.b32.xlu0 %v6292_v8, %s8047_s21 }
 0x137   : > { %1244 = vrot.lane.b32.xlu1 %v6304_v9, %s8043_s22  ;;  %1220 = vrot.lane.b32.xlu0 %v6304_v9, %s8045_s2 }
 0x13b   : > { %1300 = vrot.lane.b32.xlu1 %v6304_v9, %s8041_s19  ;;  %1276 = vrot.lane.b32.xlu0 %v6304_v9, %s8047_s21 }
 0x13f   : > { %979 = vrot.lane.b32.xlu1 %v6316_v10, %s8043_s22  ;;  %955 = vrot.lane.b32.xlu0 %v6316_v10, %s8045_s2 }
 0x143   : > { %1248 = vrot.lane.b32.xlu1 %v6324_v11, %s8043_s22  ;;  %1224 = vrot.lane.b32.xlu0 %v6324_v11, %s8045_s2 }
 0x147   : > { %1036 = vrot.lane.b32.xlu1 %v6316_v10, %s8041_s19  ;;  %1012 = vrot.lane.b32.xlu0 %v6316_v10, %s8047_s21 }
 0x14b   : > { %1304 = vrot.lane.b32.xlu1 %v6324_v11, %s8041_s19  ;;  %1280 = vrot.lane.b32.xlu0 %v6324_v11, %s8047_s21 }
 0x14f   : > { %983 = vrot.lane.b32.xlu1 %v6340_v12, %s8043_s22  ;;  %959 = vrot.lane.b32.xlu0 %v6340_v12, %s8045_s2 }
 0x153   : > { %1040 = vrot.lane.b32.xlu1 %v6340_v12, %s8041_s19  ;;  %1016 = vrot.lane.b32.xlu0 %v6340_v12, %s8047_s21 }
 0x157   : > { %987 = vrot.lane.b32.xlu1 %v6352_v13, %s8043_s22  ;;  %963 = vrot.lane.b32.xlu0 %v6352_v13, %s8045_s2 }
 0x15b   : > { %1044 = vrot.lane.b32.xlu1 %v6352_v13, %s8041_s19  ;;  %1020 = vrot.lane.b32.xlu0 %v6352_v13, %s8047_s21 }
 0x15f   : > { %991 = vrot.lane.b32.xlu1 %v6364_v14, %s8043_s22  ;;  %967 = vrot.lane.b32.xlu0 %v6364_v14, %s8045_s2 }
 0x163   : > { %1256 = vrot.lane.b32.xlu1 %v6372_v15, %s8043_s22  ;;  %1232 = vrot.lane.b32.xlu0 %v6372_v15, %s8045_s2 }
 0x167   : > { %1312 = vrot.lane.b32.xlu1 %v6372_v15, %s8041_s19  ;;  %1288 = vrot.lane.b32.xlu0 %v6372_v15, %s8047_s21 }
 0x169   : > { %v6386_v17 = vpop.permute.xlu1 %981  ;;  %v6388_v18 = vpop.permute.xlu0 %957 }
 0x16b   : > { %1252 = vrot.lane.b32.xlu1 %v6384_v16, %s8043_s22  ;;  %1228 = vrot.lane.b32.xlu0 %v6384_v16, %s8045_s2 }
 0x16d   : > { %v978_v19 = vpop.permute.xlu1 %977  ;;  %v954_v20 = vpop.permute.xlu0 %953 }
 0x16e   : > { %v1002_v52 = vsel %vm1001_vm3, %v954_v20, %v978_v19  ;;  %v921_v19 = vld [vmem:[%s8066_s29] sm:$0xff] }
 0x16f   : > { %1048 = vrot.lane.b32.xlu1 %v6364_v14, %s8041_s19  ;;  %1284 = vrot.lane.b32.xlu0 %v6384_v16, %s8047_s21 }
 0x171   : > { %v1035_v21 = vpop.permute.xlu1 %1034  ;;  %v1011_v22 = vpop.permute.xlu0 %1010 }
 0x172   : > { %v1059_v60 = vsel %vm1058_vm4, %v1011_v22, %v1035_v21  ;;  %v1202_v22 = vmul.f32 %v6186_v58, %v929_v61  ;;  %v1004_v58 = vsel %vm1001_vm3, %v6388_v18, %v6386_v17 }
 0x173   : > { %1308 = vrot.lane.b32.xlu1 %v6384_v16, %s8041_s19  ;;  %1024 = vrot.lane.b32.xlu0 %v6364_v14, %s8047_s21 }
 0x175   : > { %v1247_v26 = vpop.permute.xlu1 %1246  ;;  %v1223_v28 = vpop.permute.xlu0 %1222 }
 0x176   : > { %v1268_v46 = vsel %vm1001_vm3, %v1223_v28, %v1247_v26  ;;  %v1082_v26 = vsub.f32 0.0, %v1002_v52  ;;  %v6477_v52 = vadd.f32 %v6251_v3, %v6105_v24 }
 0x177   : > { %1788 = vrot.lane.b32.xlu0 %v6404_v23, %s8045_s2  ;;  %1784 = vrot.lane.b32.xlu1 %v6408_v25, %s8045_s2  ;;  %v1332_v55 = vsub.f32 0.0, %v1268_v46 }
 0x179   : > { %v1303_v29 = vpop.permute.xlu1 %1302  ;;  %v1279_v30 = vpop.permute.xlu0 %1278 }
 0x17a   : > { %v1324_v53 = vsel %vm1058_vm4, %v1279_v30, %v1303_v29  ;;  %v1090_v30 = vsel %vm6441_vm5, %v1082_v26, %v1059_v60 }
 0x17b   : > { %1812 = vrot.lane.b32.xlu0 %v6404_v23, %s8043_s22  ;;  %1808 = vrot.lane.b32.xlu1 %v6408_v25, %s8043_s22  ;;  %v1340_v28 = vsel %vm6441_vm5, %v1332_v55, %v1324_v53  ;;  %v1098_v46 = vmul.f32 %v1090_v30, %v921_v19  ;;  %v6503_v30 = vadd.f32 %v6140_v36, %v6274_v6 }
 0x17d   : > { %v1039_v33 = vpop.permute.xlu1 %1038  ;;  %v1219_v35 = vpop.permute.xlu0 %1218 }
 0x17f   : > { %1844 = vrot.lane.b32.xlu0 %v6404_v23, %s8047_s21  ;;  %1790 = vrot.lane.b32.xlu1 %v6420_v32, %s8045_s2 }
 0x181   : > { %v1275_v39 = vpop.permute.xlu1 %1274  ;;  %v1243_v42 = vpop.permute.xlu0 %1242 }
 0x182   : > { %v1266_v48 = vsel %vm1001_vm3, %v1219_v35, %v1243_v42 }
 0x183   : > { %1868 = vrot.lane.b32.xlu0 %v6404_v23, %s8041_s19  ;;  %1814 = vrot.lane.b32.xlu1 %v6420_v32, %s8043_s22  ;;  %v1330_v56 = vsub.f32 0.0, %v1266_v48  ;;  %s8067_s19 = smov %s8066_s29  ;;  %s6538_s22 = scalar_lea.vmem %s8029_s11, %s6040_s20 }
 0x184   : > { %v923_v20 = vld [vmem:[%s8067_s19 + $0x10] sm:$0xff]  ;;  %s8049_s29 = sshll.u32 %s6040_s20, 3 }
 0x185   : > { %v1299_v57 = vpop.permute.xlu1 %1298  ;;  %v1015_v59 = vpop.permute.xlu0 %1014  ;;  %v1348_v37 = vmul.f32 %v1340_v28, %v923_v20  ;;  %v6494_v28 = vadd.f32 %v6105_v24, %v6242_v1 }
 0x186   : > { %v1322_v0 = vsel %vm1058_vm4, %v1275_v39, %v1299_v57  ;;  %v931_v39 = vld [vmem:[%s8063_s3 + $0x10] sm:$0xff]  ;;  %v1061_v57 = vsel %vm1058_vm4, %v1015_v59, %v1039_v33 }
 0x187   : > { %v1338_v29 = vsel %vm6441_vm5, %v1330_v56, %v1322_v0  ;;  %1563 = vrot.lane.b32.xlu0 %v6432_v50, %s8045_s2  ;;  %1846 = vrot.lane.b32.xlu1 %v6420_v32, %s8047_s21  ;;  %v1204_v45 = vmul.f32 %v6149_v41, %v931_v39  ;;  %v937_v56 = vmul.f32 %v929_v61, %v6127_v34  ;;  %v1084_v0 = vsub.f32 0.0, %v1004_v58 }
 0x188   : > { %v1346_v21 = vmul.f32 %v1338_v29, %v921_v19 }
 0x189   : > { %v986_v31 = vpop.permute.xlu1 %985  ;;  %v962_v35 = vpop.permute.xlu0 %961  ;;  %v1356_v60 = vadd.f32 %v1348_v37, %v1204_v45  ;;  %v1106_v17 = vadd.f32 %v1098_v46, %v937_v56  ;;  %v1092_v3 = vsel %vm6441_vm5, %v1084_v0, %v1061_v57  ;;  %v939_v37 = vmul.f32 %v931_v39, %v6110_v27  ;;  %v933_v45 = vld [vmem:[%s8063_s3 + $0x20] sm:$0xff]  ;;  %v927_v0 = vld [vmem:[%s8067_s19 + $0x30] sm:$0xff] }
 0x18a   : > { %v1354_v42 = vadd.f32 %v1346_v21, %v1202_v22  ;;  %v1100_v19 = vmul.f32 %v1092_v3, %v923_v20  ;;  %v925_v21 = vld [vmem:[%s8067_s19 + $0x20] sm:$0xff]  ;;  %v1006_v20 = vsel %vm1001_vm3, %v962_v35, %v986_v31  ;;  %v1206_v27 = vmul.f32 %v6265_v5, %v933_v45 }
 0x18b   : > { %1587 = vrot.lane.b32.xlu0 %v6432_v50, %s8068_s25  ;;  %1870 = vrot.lane.b32.xlu1 %v6420_v32, %s8069_s24  ;;  %v2003_v59 = vpack.c.bf16 %v1356_v60, %v1356_v60  ;;  %v1993_v26 = vpack.c.bf16 %v1106_v17, %v1106_v17  ;;  %v1086_v35 = vsub.f32 0.0, %v1006_v20  ;;  %v941_v3 = vmul.f32 %v933_v45, %v6248_v2 }
 0x18c   : > { %v2001_v48 = vpack.c.bf16 %v1354_v42, %v1354_v42  ;;  %v1108_v36 = vadd.f32 %v1100_v19, %v939_v37  ;;  %v6556_v19 = vld [vmem:[%s6538_s22] ss:$0 sm:$0xff] }
 0x18d   : > { %v1255_v53 = vpop.permute.xlu1 %1254  ;;  %v1231_v55 = vpop.permute.xlu0 %1230  ;;  %v2115_v42 = vsel %vm2018_vm1, %v2003_v59, 0  ;;  %v935_v59 = vld [vmem:[%s8063_s3 + $0x30] sm:$0xff] }
 0x18e   : > { %v2023_v41 = vsel %vm2018_vm1, %v2001_v48, 0  ;;  %v1272_v6 = vsel %vm1001_vm3, %v1231_v55, %v1255_v53  ;;  %v1995_v55 = vpack.c.bf16 %v1108_v36, %v1108_v36  ;;  %v1208_v2 = vmul.f32 %v6258_v4, %v935_v59 }
 0x18f   : > { %5539 = vmatpush3.bf16.xpose.msra.mxu0 %v2023_v41  ;;  %1840 = vrot.lane.b32.xlu0 %v6408_v25, %s8047_s21  ;;  %v1336_v5 = vsub.f32 0.0, %v1272_v6  ;;  %v943_v6 = vmul.f32 %v935_v59, %v6292_v8 }
 0x190   : > { %5550 = vmatprep.subr.bf16.mxu0 %v5909_v63  ;;  %1565 = vrot.lane.b32.xlu1 %v6477_v52, %s8045_s2 }
 0x191   : > { %v1251_v34 = vpop.permute.xlu1 %1250  ;;  %v1227_v18 = vpop.permute.xlu0 %1226 }
 0x192   : > { %v1270_v33 = vsel %vm1001_vm3, %v1227_v18, %v1251_v34 }
 0x193   : > { %v1334_v61 = vsub.f32 0.0, %v1270_v33  ;;  %1864 = vrot.lane.b32.xlu0 %v6408_v25, %s8069_s24 }
 0x194   : > { %1589 = vrot.lane.b32.xlu1 %v6477_v52, %s8068_s25 }
 0x195   : > { %v1307_v29 = vpop.permute.xlu1 %1306  ;;  %v1283_v22 = vpop.permute.xlu0 %1282 }
 0x196   : > { %v1326_v1 = vsel %vm1058_vm4, %v1283_v22, %v1307_v29  ;;  %5541 = vmatmul.mubr.msk.bf16.vlgmr.msra.gmra.mrb[20].mxu0 %vm2018_vm1, %v1993_v26  ;;  %v6562_v22 = vadd.f32 %v6105_v24, %v6288_v7 }
 0x197   : > { %v1342_v58 = vsel %vm6441_vm5, %v1334_v61, %v1326_v1  ;;  %5551 = vmatpush3.bf16.xpose.msra.mxu0 %v2115_v42  ;;  %5552 = vmatprep.mubr.msk.bf16.mxu0 %vm5910_vm2, %v5909_v63  ;;  %v1420_v1 = vadd.f32 %v6556_v19, %v6146_v40 }
 0x198   : > { %v1350_v31 = vmul.f32 %v1342_v58, %v925_v21  ;;  %5562 = vmatprep.subr.bf16.mxu0 %v5909_v63  ;;  %1559 = vrot.lane.b32.xlu0 %v6494_v28, %s8045_s2 }
 0x199   : > { %v1043_v39 = vpop.permute.xlu1 %1042  ;;  %v1019_v46 = vpop.permute.xlu0 %1018  ;;  %1810 = vrot.lane.b32.xlu1 %v6503_v30, %s8068_s25  ;;  %v2009_v36 = vpack.c.bf16 %v1420_v1, %v1420_v1 }
 0x19a   : > { %v1063_v48 = vsel %vm1058_vm4, %v1019_v46, %v1043_v39  ;;  %v1358_v56 = vadd.f32 %v1350_v31, %v1206_v27 }
 0x19b   : > { %v1094_v53 = vsel %vm6441_vm5, %v1086_v35, %v1063_v48 }
 0x19c   : > { %v1102_v57 = vmul.f32 %v1094_v53, %v925_v21  ;;  %v2005_v41 = vpack.c.bf16 %v1358_v56, %v1358_v56  ;;  %1583 = vrot.lane.b32.xlu0 %v6494_v28, %s8068_s25  ;;  %v2488_v56 = vsel %vm2486_vm6, %v2009_v36, 0 }
 0x19d   : > { %v1311_v60 = vpop.permute.xlu1 %1310  ;;  %v1287_v17 = vpop.permute.xlu0 %1286  ;;  %1842 = vrot.lane.b32.xlu1 %v6503_v30, %s8047_s21 }
 0x19e   : > { %v1328_v34 = vsel %vm1058_vm4, %v1287_v17, %v1311_v60  ;;  %5553 = vmatmul.mubr.msk.bf16.vlgmr.msra.gmra.mrb[24].mxu0 %vm2018_vm1, %v1995_v55  ;;  %v2207_v18 = vsel %vm2018_vm1, %v2005_v41, 0  ;;  %v1110_v61 = vadd.f32 %v1102_v57, %v941_v3  ;;  %v922_v55 = vld [vmem:[%s8067_s19 + $0x8] sm:$0xff] }
 0x19f   : > { %v1344_v33 = vsel %vm6441_vm5, %v1336_v5, %v1328_v34  ;;  %5563 = vmatpush3.bf16.xpose.msra.mxu0 %v2207_v18  ;;  %5564 = vmatprep.mubr.msk.bf16.mxu0 %vm5910_vm2, %v5909_v63 }
 0x1a0   : > { %v1352_v26 = vmul.f32 %v1344_v33, %v927_v0  ;;  %5574 = vmatprep.subr.bf16.mxu0 %v5909_v63  ;;  %1615 = vrot.lane.b32.xlu0 %v6494_v28, %s8047_s21  ;;  %v1997_v42 = vpack.c.bf16 %v1110_v61, %v1110_v61 }
 0x1a1   : > { %v990_v29 = vpop.permute.xlu1 %989  ;;  %v966_v21 = vpop.permute.xlu0 %965  ;;  %1866 = vrot.lane.b32.xlu1 %v6503_v30, %s8069_s24 }
 0x1a2   : > { %v1008_v37 = vsel %vm1001_vm3, %v966_v21, %v990_v29  ;;  %v1360_v20 = vadd.f32 %v1352_v26, %v1208_v2 }
 0x1a3   : > { %v1088_v4 = vsub.f32 0.0, %v1008_v37 }
 0x1a4   : > { %v2007_v45 = vpack.c.bf16 %v1360_v20, %v1360_v20  ;;  %1639 = vrot.lane.b32.xlu0 %v6494_v28, %s8069_s24 }
 0x1a5   : > { %v1047_v58 = vpop.permute.xlu1 %1046  ;;  %v1023_v27 = vpop.permute.xlu0 %1022  ;;  %1561 = vrot.lane.b32.xlu1 %v6562_v22, %s8045_s2 }
 0x1a6   : > { %v1065_v24 = vsel %vm1058_vm4, %v1023_v27, %v1047_v58  ;;  %5565 = vmatmul.mubr.msk.bf16.vlgmr.msra.gmra.mrb[28].mxu0 %vm2018_vm1, %v1997_v42  ;;  %v2299_v7 = vsel %vm2018_vm1, %v2007_v45, 0 }
 0x1a7   : > { %v1096_v40 = vsel %vm6441_vm5, %v1088_v4, %v1065_v24  ;;  %5575 = vmatpush3.bf16.xpose.msra.mxu0 %v2299_v7  ;;  %5576 = vmatprep.mubr.msk.bf16.mxu0 %vm5910_vm2, %v5909_v63  ;;  %v924_v24 = vld [vmem:[%s8067_s19 + $0x18] sm:$0xff] }
 0x1a8   : > { %v1104_v31 = vmul.f32 %v1096_v40, %v927_v0  ;;  %1786 = vrot.lane.b32.xlu0 %v6503_v30, %s8045_s2  ;;  %5586 = vmatprep.subr.bf16.mxu0 %v5909_v63  ;;  %v930_v0 = vld [vmem:[%s8063_s3 + $0x8] sm:$0xff] }
 0x1a9   : > { %v1245_v35 = vpop.permute.xlu1 %1244  ;;  %v1221_v39 = vpop.permute.xlu0 %1220  ;;  %1585 = vrot.lane.b32.xlu1 %v6562_v22, %s8068_s25  ;;  %v1203_v3 = vmul.f32 %v6304_v9, %v930_v0  ;;  %v938_v45 = vmul.f32 %v930_v0, %v6316_v10 }
 0x1aa   : > { %v1112_v46 = vadd.f32 %v1104_v31, %v943_v6  ;;  %v1267_v48 = vsel %vm1001_vm3, %v1221_v39, %v1245_v35  ;;  %v932_v31 = vld [vmem:[%s8063_s3 + $0x18] sm:$0xff] }
 0x1ab   : > { %v1331_v53 = vsub.f32 0.0, %v1267_v48  ;;  %v1205_v39 = vmul.f32 %v6324_v11, %v932_v31  ;;  %v940_v0 = vmul.f32 %v932_v31, %v6340_v12 }
 0x1ac   : > { %v1999_v5 = vpack.c.bf16 %v1112_v46, %v1112_v46 }
 0x1ad   : > { %v1301_v8 = vpop.permute.xlu1 %1300  ;;  %v1277_v57 = vpop.permute.xlu0 %1276  ;;  %1617 = vrot.lane.b32.xlu1 %v6562_v22, %s8047_s21  ;;  %s781_s21 = scalar_lea.vmem %s8032_s14, %s8049_s29 }
 0x1ae   : > { %v1323_v41 = vsel %vm1058_vm4, %v1277_v57, %v1301_v8  ;;  %5577 = vmatmul.mubr.msk.bf16.vlgmr.msra.gmra.mrb[32].mxu0 %vm2018_vm1, %v1999_v5 }
 0x1af   : > { %v1339_v60 = vsel %vm6441_vm5, %v1331_v53, %v1323_v41  ;;  %5587 = vmatpush3.bf16.msra.mxu0 %v2488_v56  ;;  %5588 = vmatprep.mubr.msk.bf16.mxu0 %vm5910_vm2, %v5909_v63 }
 0x1b0   : > { %v1347_v17 = vmul.f32 %v1339_v60, %v922_v55  ;;  %5598 = vmatprep.subr.bf16.mxu0 %v5909_v63 }
 0x1b1   : > { %v980_v34 = vpop.permute.xlu1 %979  ;;  %v956_v18 = vpop.permute.xlu0 %955  ;;  %1641 = vrot.lane.b32.xlu1 %v6562_v22, %s8069_s24 }
 0x1b2   : > { %v1355_v33 = vadd.f32 %v1347_v17, %v1203_v3  ;;  %v1003_v2 = vsel %vm1001_vm3, %v956_v18, %v980_v34 }
 0x1b3   : > { %v1083_v21 = vsub.f32 0.0, %v1003_v2 }
 0x1b4   : > { %v2002_v59 = vpack.c.bf16 %v1355_v33, %v1355_v33 }
 0x1b5   : > { %v1249_v61 = vpop.permute.xlu1 %1248  ;;  %v1225_v26 = vpop.permute.xlu0 %1224 }
 0x1b6   : > { %v2069_v29 = vsel %vm2018_vm1, %v2002_v59, 0  ;;  %v1269_v20 = vsel %vm1001_vm3, %v1225_v26, %v1249_v61 }
 0x1b7   : > { %5545 = vmatpush3.bf16.xpose.msra.mxu1 %v2069_v29  ;;  %v1333_v58 = vsub.f32 0.0, %v1269_v20 }
 0x1b8   : > { %5556 = vmatprep.subr.bf16.mxu1 %v5909_v63 }
 0x1b9   : > { %v1037_v9 = vpop.permute.xlu1 %1036  ;;  %v1013_v37 = vpop.permute.xlu0 %1012 }
 0x1ba   : > { %v1060_v1 = vsel %vm1058_vm4, %v1013_v37, %v1037_v9 }
 0x1bb   : > { %v1091_v42 = vsel %vm6441_vm5, %v1083_v21, %v1060_v1  ;;  %v6635_v1 = vpop.f32.mrb[16].mxu0 }
 0x1bc   : > { %v1099_v4 = vmul.f32 %v1091_v42, %v922_v55  ;;  %v6637_v42 = vpop.f32.mrb[17].mxu0 }
 0x1bd   : > { %v1305_v27 = vpop.permute.xlu1 %1304  ;;  %v1281_v7 = vpop.permute.xlu0 %1280 }
 0x1be   : > { %v1107_v40 = vadd.f32 %v1099_v4, %v938_v45  ;;  %v1325_v36 = vsel %vm1058_vm4, %v1281_v7, %v1305_v27 }
 0x1bf   : > { %v1341_v6 = vsel %vm6441_vm5, %v1333_v58, %v1325_v36 }
 0x1c0   : > { %v1994_v35 = vpack.c.bf16 %v1107_v40, %v1107_v40  ;;  %v1349_v10 = vmul.f32 %v1341_v6, %v924_v24 }
 0x1c1   : > { %v984_v46 = vpop.permute.xlu1 %983  ;;  %v960_v48 = vpop.permute.xlu0 %959 }
 0x1c2   : > { %v1005_v56 = vsel %vm1001_vm3, %v960_v48, %v984_v46  ;;  %5547 = vmatmul.mubr.msk.bf16.vlgmr.msra.gmra.mrb[28].mxu1 %vm2018_vm1, %v1994_v35  ;;  %v1357_v5 = vadd.f32 %v1349_v10, %v1205_v39 }
 0x1c3   : > { %5558 = vmatprep.mubr.msk.bf16.mxu1 %vm5910_vm2, %v5909_v63  ;;  %v1085_v8 = vsub.f32 0.0, %v1005_v56  ;;  %v926_v56 = vld [vmem:[%s8067_s19 + $0x28] sm:$0xff] }
 0x1c4   : > { %v2004_v53 = vpack.c.bf16 %v1357_v5, %v1357_v5  ;;  %v934_v5 = vld [vmem:[%s8063_s3 + $0x28] sm:$0xff] }
 0x1c5   : > { %v1041_v55 = vpop.permute.xlu1 %1040  ;;  %v1017_v57 = vpop.permute.xlu0 %1016 }
 0x1c6   : > { %v1062_v41 = vsel %vm1058_vm4, %v1017_v57, %v1041_v55  ;;  %v2161_v60 = vsel %vm2018_vm1, %v2004_v53, 0  ;;  %v928_v53 = vld [vmem:[%s8067_s19 + $0x38] sm:$0xff] }
 0x1c7   : > { %v1093_v11 = vsel %vm6441_vm5, %v1085_v8, %v1062_v41  ;;  %5557 = vmatpush3.bf16.xpose.msra.mxu1 %v2161_v60  ;;  %v1207_v41 = vmul.f32 %v6384_v16, %v934_v5 }
 0x1c8   : > { %v1101_v17 = vmul.f32 %v1093_v11, %v924_v24  ;;  %5568 = vmatprep.subr.bf16.mxu1 %v5909_v63  ;;  %v6641_v24 = vpop.f32.mrb[18].mxu0 }
 0x1c9   : > { %v988_v3 = vpop.permute.xlu1 %987  ;;  %v964_v34 = vpop.permute.xlu0 %963 }
 0x1ca   : > { %v1109_v18 = vadd.f32 %v1101_v17, %v940_v0  ;;  %v6643_v7 = vpop.f32.mrb[19].mxu0  ;;  %v1007_v40 = vsel %vm1001_vm3, %v964_v34, %v988_v3  ;;  %v936_v34 = vld [vmem:[%s8063_s3 + $0x38] sm:$0xff] }
 0x1cb   : > { %v1087_v48 = vsub.f32 0.0, %v1007_v40  ;;  %v1423_v40 = vadd.f32 %v6556_v19, %v6159_v44 }
 0x1cc   : > { %v1996_v33 = vpack.c.bf16 %v1109_v18, %v1109_v18 }
 0x1cd   : > { %v1045_v59 = vpop.permute.xlu1 %1044  ;;  %v1021_v61 = vpop.permute.xlu0 %1020 }
 0x1ce   : > { %5559 = vmatmul.mubr.msk.bf16.vlgmr.msra.gmra.mrb[32].mxu1 %vm2018_vm1, %v1996_v33  ;;  %v1064_v39 = vsel %vm1058_vm4, %v1021_v61, %v1045_v59  ;;  %v1209_v61 = vmul.f32 %v6372_v15, %v936_v34 }
 0x1cf   : > { %5570 = vmatprep.mubr.msk.bf16.mxu1 %vm5910_vm2, %v5909_v63  ;;  %v1095_v60 = vsel %vm6441_vm5, %v1087_v48, %v1064_v39  ;;  %v944_v39 = vmul.f32 %v936_v34, %v6364_v14  ;;  %v6711_v34 = vld [vmem:[%s8022_s4 + $0x18] sm:$0xff] }
 0x1d0   : > { %v1103_v18 = vmul.f32 %v1095_v60, %v926_v56  ;;  %v6705_v60 = vld [vmem:[%s8023_s5 + $0x18] sm:$0xff] }
 0x1d1   : > { %v992_v26 = vpop.permute.xlu1 %991  ;;  %v968_v2 = vpop.permute.xlu0 %967 }
 0x1d2   : > { %v1009_v33 = vsel %vm1001_vm3, %v968_v2, %v992_v26 }
 0x1d5   : > { %v1257_v29 = vpop.permute.xlu1 %1256  ;;  %v1233_v21 = vpop.permute.xlu0 %1232 }
 0x1d6   : > { %v1273_v58 = vsel %vm1001_vm3, %v1233_v21, %v1257_v29  ;;  %v942_v29 = vmul.f32 %v934_v5, %v6352_v13  ;;  %v2010_v5 = vpack.c.bf16 %v1423_v40, %v1423_v40 }
 0x1d7   : > { %v1337_v6 = vsub.f32 0.0, %v1273_v58 }
 0x1d8   : > { %v1111_v58 = vadd.f32 %v1103_v18, %v942_v29 }
 0x1d9   : > { %v1313_v9 = vpop.permute.xlu1 %1312  ;;  %v1289_v12 = vpop.permute.xlu0 %1288 }
 0x1da   : > { %v1329_v36 = vsel %vm1058_vm4, %v1289_v12, %v1313_v9 }
 0x1db   : > { %v1345_v8 = vsel %vm6441_vm5, %v1337_v6, %v1329_v36  ;;  %v1998_v36 = vpack.c.bf16 %v1111_v58, %v1111_v58 }
 0x1dc   : > { %v1353_v17 = vmul.f32 %v1345_v8, %v928_v53 }
 0x1dd   : > { %v1253_v37 = vpop.permute.xlu1 %1252  ;;  %v1229_v20 = vpop.permute.xlu0 %1228 }
 0x1de   : > { %v1271_v27 = vsel %vm1001_vm3, %v1229_v20, %v1253_v37  ;;  %v1361_v20 = vadd.f32 %v1353_v17, %v1209_v61 }
 0x1df   : > { %v1335_v31 = vsub.f32 0.0, %v1271_v27 }
 0x1e0   : > { %v2008_v13 = vpack.c.bf16 %v1361_v20, %v1361_v20 }
 0x1e1   : > { %v1049_v45 = vpop.permute.xlu1 %1048  ;;  %v1285_v4 = vpop.permute.xlu0 %1284 }
 0x1e5   : > { %v1309_v35 = vpop.permute.xlu1 %1308  ;;  %v1025_v10 = vpop.permute.xlu0 %1024 }
 0x1e6   : > { %v1327_v46 = vsel %vm1058_vm4, %v1285_v4, %v1309_v35  ;;  %v1066_v9 = vsel %vm1058_vm4, %v1025_v10, %v1049_v45  ;;  %v1089_v4 = vsub.f32 0.0, %v1009_v33  ;;  %v6680_v45 = vld [vmem:[%s8023_s5 + $0x10] sm:$0xff] }
 0x1e7   : > { %v1343_v55 = vsel %vm6441_vm5, %v1335_v31, %v1327_v46  ;;  %v6687_v31 = vld [vmem:[%s8022_s4 + $0x10] sm:$0xff]  ;;  %v2345_v46 = vsel %vm2018_vm1, %v2008_v13, 0  ;;  %v1770_v48 = vmul.f32 %v6404_v23, %v6680_v45  ;;  %v6743_v13 = vpop.f32.mrb[16].mxu1 }
 0x1e8   : > { %v1351_v57 = vmul.f32 %v1343_v55, %v926_v56  ;;  %v1097_v26 = vsel %vm6441_vm5, %v1089_v4, %v1066_v9  ;;  %v1535_v4 = vld [vmem:[%s8023_s5] sm:$0xff]  ;;  %v6747_v40 = vpop.f32.mrb[17].mxu1 }
 0x1e9   : > { %v1789_v11 = vpop.permute.xlu0 %1788  ;;  %v1785_v0 = vpop.permute.xlu1 %1784  ;;  %v1105_v6 = vmul.f32 %v1097_v26, %v928_v53  ;;  %v6737_v26 = vld [vmem:[%s8022_s4] sm:$0xff] }
 0x1ea   : > { %v1359_v3 = vadd.f32 %v1351_v57, %v1207_v41 }
 0x1eb   : > { %v1113_v53 = vadd.f32 %v1105_v6, %v944_v39 }
 0x1ec   : > { %v2006_v59 = vpack.c.bf16 %v1359_v3, %v1359_v3 }
 0x1ed   : > { %v1813_v16 = vpop.permute.xlu0 %1812  ;;  %v1809_v21 = vpop.permute.xlu1 %1808  ;;  %v2000_v17 = vpack.c.bf16 %v1113_v53, %v1113_v53 }
 0x1ee   : > { %v2253_v12 = vsel %vm2018_vm1, %v2006_v59, 0  ;;  %v1834_v37 = vsel %vm1001_vm3, %v1789_v11, %v1813_v16  ;;  %v2534_v11 = vsel %vm2486_vm6, %v2010_v5, 0  ;;  %v1771_v59 = vmul.f32 %v6420_v32, %v6705_v60 }
 0x1ef   : > { %5569 = vmatpush3.bf16.xpose.msra.mxu1 %v2253_v12  ;;  %v1898_v27 = vsub.f32 0.0, %v1834_v37  ;;  %v1832_v16 = vsel %vm1001_vm3, %v1785_v0, %v1809_v21  ;;  %v1768_v21 = vmul.f32 %v6408_v25, %v1535_v4 }
 0x1f0   : > { %5580 = vmatprep.subr.bf16.mxu1 %v5909_v63  ;;  %v1896_v32 = vsub.f32 0.0, %v1832_v16 }
 0x1f1   : > { %v1845_v15 = vpop.permute.xlu0 %1844  ;;  %v1791_v2 = vpop.permute.xlu1 %1790 }
 0x1f5   : > { %v1869_v35 = vpop.permute.xlu0 %1868  ;;  %v1815_v10 = vpop.permute.xlu1 %1814 }
 0x1f6   : > { %5571 = vmatmul.mubr.msk.bf16.vlgmr.msra.gmra.mrb[36].mxu1 %vm2018_vm1, %v1998_v36  ;;  %v1890_v44 = vsel %vm1058_vm4, %v1845_v15, %v1869_v35  ;;  %v1835_v8 = vsel %vm1001_vm3, %v1791_v2, %v1815_v10  ;;  %v6752_v10 = vpop.f32.mrb[18].mxu1 }
 0x1f7   : > { %5581 = vmatpush3.bf16.xpose.msra.mxu1 %v2345_v46  ;;  %5582 = vmatprep.mubr.msk.bf16.mxu1 %vm5910_vm2, %v5909_v63  ;;  %v1906_v56 = vsel %vm6441_vm5, %v1898_v27, %v1890_v44  ;;  %v1899_v41 = vsub.f32 0.0, %v1835_v8  ;;  %v6754_v39 = vpop.f32.mrb[19].mxu1 }
 0x1f8   : > { %v1914_v14 = vmul.f32 %v1906_v56, %v6687_v31  ;;  %5592 = vmatprep.subr.bf16.mxu1 %v5909_v63  ;;  %v5532_v46 = vpop.f32.mrb[20].mxu1 }
 0x1f9   : > { %v1564_v55 = vpop.permute.xlu0 %1563  ;;  %v1847_v57 = vpop.permute.xlu1 %1846 }
 0x1fa   : > { %v1922_v23 = vadd.f32 %v1914_v14, %v1770_v48  ;;  %v1971_v48 = vadd.f32 %v5532_v46, %v6556_v19  ;;  %v1962_v44 = vpop.f32.mrb[21].mxu1 }
 0x1fb   : > { %v1963_v5 = vadd.f32 %v6556_v19, %v1962_v44  ;;  %v5533_v53 = vpop.f32.mrb[22].mxu1 }
 0x1fc   : > { %2888 = vst.msk [vmem:[#allocation3 + $0x42] sm:$0xff] %vm2018_vm1, %v1971_v48 }
 0x1fd   : > { %v1588_v3 = vpop.permute.xlu0 %1587  ;;  %v1871_v18 = vpop.permute.xlu1 %1870  ;;  %2886 = vst.msk [vmem:[#allocation3 + $0x22] sm:$0xff] %vm2018_vm1, %v1963_v5 }
 0x1fe   : > { %5583 = vmatmul.mubr.msk.bf16.vlgmr.msra.gmra.mrb[40].mxu1 %vm2018_vm1, %v2000_v17  ;;  %v6715_v33 = vsel %vm1001_vm3, %v1564_v55, %v1588_v3  ;;  %v1891_v61 = vsel %vm1058_vm4, %v1847_v57, %v1871_v18  ;;  %v1974_v55 = vadd.f32 %v5533_v53, %v6556_v19  ;;  %v1965_v57 = vpop.f32.mrb[23].mxu1 }
 0x1ff   : > { %v1907_v29 = vsel %vm6441_vm5, %v1899_v41, %v1891_v61  ;;  %5593 = vmatpush3.bf16.msra.mxu1 %v2534_v11  ;;  %5594 = vmatprep.mubr.msk.bf16.mxu1 %vm5910_vm2, %v5909_v63  ;;  %v5536_v41 = vpop.f32.mrb[24].mxu1 }
 0x200   : > { %v1915_v9 = vmul.f32 %v1907_v29, %v6711_v34  ;;  %5604 = vmatprep.subr.bf16.mxu1 %v5909_v63  ;;  %2889 = vst.msk [vmem:[#allocation3 + $0x52] sm:$0xff] %vm2018_vm1, %v1974_v55  ;;  %v1987_v11 = vadd.f32 %v5536_v41, %v6556_v19  ;;  %v1978_v17 = vpop.f32.mrb[25].mxu1 }
 0x201   : > { %v1841_v12 = vpop.permute.xlu0 %1840  ;;  %v1979_v18 = vadd.f32 %v6556_v19, %v1978_v17 }
 0x202   : > { %v1923_v37 = vadd.f32 %v1915_v9, %v1771_v59  ;;  %v6727_v20 = vpop.permute.xlu1 %1565  ;;  %v5537_v59 = vpop.f32.mrb[26].mxu1  ;;  %2892 = vst.msk [vmem:[#allocation3 + $0x82] sm:$0xff] %vm2018_vm1, %v1987_v11 }
 0x203   : > { %v1990_v29 = vadd.f32 %v5537_v59, %v6556_v19  ;;  %v1981_v16 = vpop.f32.mrb[27].mxu1  ;;  %2890 = vst.msk [vmem:[#allocation3 + $0x62] sm:$0xff] %vm2018_vm1, %v1979_v18  ;;  %v6817_v59 = vld [vmem:[%s781_s21] sm:$0xff]  ;;  %s5745_s21 = smul.u32 40, %s6040_s20 }
 0x204   : > { %v6732_v58 = vpack.c.bf16 %v1923_v37, %v1922_v23  ;;  %v1966_v23 = vadd.f32 %v6556_v19, %v1965_v57 }
 0x205   : > { %v1865_v0 = vpop.permute.xlu0 %1864  ;;  %2893 = vst.msk [vmem:[#allocation3 + $0x92] sm:$0xff] %vm2018_vm1, %v1990_v29 }
 0x206   : > { %v1888_v15 = vsel %vm1058_vm4, %v1841_v12, %v1865_v0  ;;  %v6741_v2 = vpop.permute.xlu1 %1589  ;;  %2887 = vst.msk [vmem:[#allocation3 + $0x32] sm:$0xff] %vm2018_vm1, %v1966_v23  ;;  %v1982_v12 = vadd.f32 %v6556_v19, %v1981_v16 }
 0x207   : > { %v1904_v27 = vsel %vm6441_vm5, %v1896_v32, %v1888_v15  ;;  %v1543_v32 = vmul.f32 %v1535_v4, %v6494_v28  ;;  %v1528_v4 = vld [vmem:[%s8022_s4 + $0x8] sm:$0xff] }
 0x208   : > { %v1912_v36 = vmul.f32 %v1904_v27, %v6737_v26  ;;  %2891 = vst.msk [vmem:[#allocation3 + $0x72] sm:$0xff] %vm2018_vm1, %v1982_v12 }
 0x20a   : > { %v6750_v6 = vadd.f32 %v1912_v36, %v1768_v21  ;;  %v1560_v35 = vpop.permute.xlu0 %1559 }
 0x20b   : > { %v1811_v25 = vpop.permute.xlu1 %1810 }
 0x20e   : > { %v1584_v56 = vpop.permute.xlu0 %1583 }
 0x20f   : > { %v1607_v14 = vsel %vm1001_vm3, %v1560_v35, %v1584_v56  ;;  %v1843_v8 = vpop.permute.xlu1 %1842  ;;  %v1536_v35 = vld [vmem:[%s8023_s5 + $0x8] sm:$0xff] }
 0x210   : > { %v1671_v9 = vsub.f32 0.0, %v1607_v14  ;;  %v1544_v23 = vmul.f32 %v1536_v35, %v6562_v22 }
 0x212   : > { %v1616_v3 = vpop.permute.xlu0 %1615 }
 0x213   : > { %v1867_v61 = vpop.permute.xlu1 %1866 }
 0x214   : > { %v1889_v44 = vsel %vm1058_vm4, %v1843_v8, %v1867_v61 }
 0x216   : > { %v1640_v37 = vpop.permute.xlu0 %1639 }
 0x217   : > { %v1663_v0 = vsel %vm1058_vm4, %v1616_v3, %v1640_v37  ;;  %v1562_v21 = vpop.permute.xlu1 %1561 }
 0x218   : > { %v1679_v15 = vsel %vm6441_vm5, %v1671_v9, %v1663_v0 }
 0x219   : > { %v1687_v27 = vmul.f32 %v1679_v15, %v6737_v26  ;;  %v1769_v26 = vmul.f32 %v6503_v30, %v1536_v35 }
 0x21a   : > { %v1787_v36 = vpop.permute.xlu0 %1786 }
 0x21b   : > { %v1695_v46 = vadd.f32 %v1687_v27, %v1543_v32  ;;  %v1833_v48 = vsel %vm1001_vm3, %v1787_v36, %v1811_v25  ;;  %v1586_v56 = vpop.permute.xlu1 %1585 }
 0x21c   : > { %v1897_v28 = vsub.f32 0.0, %v1833_v48  ;;  %v1608_v5 = vsel %vm1001_vm3, %v1562_v21, %v1586_v56 }
 0x21d   : > { %v1672_v57 = vsub.f32 0.0, %v1608_v5 }
 0x21e   : > { %v1905_v53 = vsel %vm6441_vm5, %v1897_v28, %v1889_v44 }
 0x21f   : > { %v1913_v14 = vmul.f32 %v1905_v53, %v1528_v4  ;;  %v1618_v55 = vpop.permute.xlu1 %1617 }
 0x221   : > { %v1921_v25 = vadd.f32 %v1913_v14, %v1769_v26  ;;  %v6833_v26 = vld [vmem:[%s6133_s1] ss:$0 sm:$0xff]  ;;  %s777_s1 = scalar_lea.vmem %s8031_s13, %s6040_s20 }
 0x222   : > { %v6837_v53 = vadd.f32 %v6833_v26, %v6643_v7 }
 0x223   : > { %v1642_v8 = vpop.permute.xlu1 %1641  ;;  %v6809_v30 = vpack.c.bf16 %v1921_v25, %v6750_v6 }
 0x224   : > { %v1664_v41 = vsel %vm1058_vm4, %v1618_v55, %v1642_v8 }
 0x225   : > { %v1680_v11 = vsel %vm6441_vm5, %v1672_v57, %v1664_v41 }
 0x226   : > { %v1688_v17 = vmul.f32 %v1680_v11, %v1528_v4 }
 0x228   : > { %v1696_v3 = vadd.f32 %v1688_v17, %v1544_v23 }
 0x22a   : > { %v6806_v18 = vpack.c.bf16 %v1696_v3, %v1695_v46 }
 0x269   : > { %v2059_v22 = vpop.f32.mrb[20].mxu0 }
 0x26a   : > { %v2060_v61 = vadd.f32 %v2059_v22, %v6817_v59  ;;  %v5542_v29 = vpop.f32.mrb[21].mxu0  ;;  %v6860_v22 = vadd.f32 %v6833_v26, %v6637_v42 }
 0x26b   : > { %v2062_v16 = vpop.f32.mrb[22].mxu0 }
 0x26c   : > { %v5543_v9 = vpop.f32.mrb[23].mxu0  ;;  %v2387_v12 = vsel %vm2018_vm1, %v2060_v61, -inf }
 0x26d   : > { %2388 = vmax.xlane.f32.xlu0 %v2387_v12 }
 0x271   : > { %v2151_v37 = vpop.f32.mrb[24].mxu0 }
 0x272   : > { %v2152_v6 = vadd.f32 %v2151_v37, %v6817_v59  ;;  %v5554_v32 = vpop.f32.mrb[25].mxu0 }
 0x273   : > { %v2154_v0 = vpop.f32.mrb[26].mxu0 }
 0x274   : > { %v5555_v21 = vpop.f32.mrb[27].mxu0  ;;  %v2393_v15 = vsel %vm2018_vm1, %v2152_v6, -inf }
 0x275   : > { %2394 = vmax.xlane.f32.xlu1 %v2393_v15 }
 0x279   : > { %v2243_v27 = vpop.f32.mrb[28].mxu0 }
 0x27a   : > { %v6824_v36 = vadd.f32 %v2243_v27, %v6817_v59  ;;  %v5566_v35 = vpop.f32.mrb[29].mxu0 }
 0x27b   : > { %v2246_v46 = vpop.f32.mrb[30].mxu0 }
 0x27c   : > { %v5567_v48 = vpop.f32.mrb[31].mxu0  ;;  %v2399_v44 = vsel %vm2018_vm1, %v6824_v36, -inf }
 0x27d   : > { %2400 = vmax.xlane.f32.xlu0 %v2399_v44 }
 0x281   : > { %v2335_v56 = vpop.f32.mrb[32].mxu0 }
 0x282   : > { %v5578_v28 = vpop.f32.mrb[33].mxu0  ;;  %v6850_v11 = vadd.f32 %v2335_v56, %v6817_v59 }
 0x283   : > { %v2338_v4 = vpop.f32.mrb[34].mxu0 }
 0x284   : > { %v5579_v5 = vpop.f32.mrb[35].mxu0  ;;  %v2405_v17 = vsel %vm2018_vm1, %v6850_v11, -inf }
 0x286   : > { %1621 = vrot.lane.b32.xlu1 %v6477_v52, %s8070_s23 }
 0x28a   : > { %1645 = vrot.lane.b32.xlu1 %v6477_v52, %s8069_s24 }
 0x28e   : > { %1794 = vrot.lane.b32.xlu1 %v6837_v53, %s8071_s26 }
 0x292   : > { %1818 = vrot.lane.b32.xlu1 %v6837_v53, %s8068_s25 }
 0x293   : > { %1619 = vrot.lane.b32.xlu0 %v6432_v50, %s8070_s23 }
 0x295   : > { %v2105_v14 = vpop.f32.mrb[28].mxu1 }
 0x296   : > { %v5548_v55 = vpop.f32.mrb[29].mxu1  ;;  %1850 = vrot.lane.b32.xlu1 %v6837_v53, %s8070_s23 }
 0x297   : > { %v2108_v25 = vpop.f32.mrb[30].mxu1 }
 0x298   : > { %v5549_v57 = vpop.f32.mrb[31].mxu1 }
 0x29a   : > { %1874 = vrot.lane.b32.xlu1 %v6837_v53, %s8069_s24 }
 0x2a1   : > { %v2197_v7 = vpop.f32.mrb[32].mxu1 }
 0x2a2   : > { %v5560_v8 = vpop.f32.mrb[33].mxu1 }
 0x2a3   : > { %v2200_v23 = vpop.f32.mrb[34].mxu1  ;;  %v6886_v8 = vadd.f32 %v2197_v7, %v6817_v59 }
 0x2a4   : > { %v5561_v41 = vpop.f32.mrb[35].mxu1 }
 0x2b2   : > { %2406 = vmax.xlane.f32.xlu0 %v2405_v17  ;;  %v6891_v17 = vld [vmem:[%s6102_s28] ss:$0 sm:$0xff]  ;;  %s8072_s28 = sshll.u32 %s6040_s20, 3 }
 0x2b3   : > { %s785_s2 = scalar_lea.vmem %s8033_s15, %s8072_s28 }
 0x2c8   : > { %1643 = vrot.lane.b32.xlu0 %v6432_v50, %s8069_s24 }
 0x2c9   : > { %v6856_v3 = vpop.f32.mrb[36].mxu1 }
 0x2ca   : > { %v5572_v29 = vpop.f32.mrb[37].mxu1 }
 0x2cb   : > { %v2292_v16 = vpop.f32.mrb[38].mxu1 }
 0x2cc   : > { %v5573_v9 = vpop.f32.mrb[39].mxu1  ;;  %1792 = vrot.lane.b32.xlu0 %v6860_v22, %s8071_s26 }
 0x2cd   : > { %v2396_v9 = vsel %vm2018_vm1, %v6886_v8, -inf }
 0x2d0   : > { %1816 = vrot.lane.b32.xlu0 %v6860_v22, %s8068_s25 }
 0x2d1   : > { %v6866_v12 = vpop.f32.mrb[40].mxu1 }
 0x2d2   : > { %v5584_v37 = vpop.f32.mrb[41].mxu1 }
 0x2d3   : > { %v2384_v32 = vpop.f32.mrb[42].mxu1 }
 0x2d4   : > { %v5585_v0 = vpop.f32.mrb[43].mxu1  ;;  %1848 = vrot.lane.b32.xlu0 %v6860_v22, %s8070_s23  ;;  %v6906_v32 = vadd.f32 %v6891_v17, %v6754_v39  ;;  %v6924_v39 = vadd.f32 %v6833_v26, %v6635_v1 }
 0x2d8   : > { %1872 = vrot.lane.b32.xlu0 %v6860_v22, %s8069_s24 }
 0x2fa   : > { %v2389_v42 = vpop.xlane.xlu0 %2388 }
 0x2fb   : > { %v2411_v21 = vsub.f32 %v2060_v61, %v2389_v42  ;;  %v6880_v61 = vadd.f32 %v2105_v14, %v6817_v59  ;;  %v6895_v14 = vadd.f32 %v6891_v17, %v6747_v40  ;;  %v1610_v42 = vsel %vm1001_vm3, %v6727_v20, %v6741_v2 }
 0x2fc   : > { %v1546_v2 = vmul.f32 %v6705_v60, %v6477_v52  ;;  %v6965_v60 = vld [vmem:[%s8022_s4 + $0x20] sm:$0xff] }
 0x2fd   : > { %v2419_v15 = vmul.f32 1.442695, %v2411_v21  ;;  %v2390_v41 = vsel %vm2018_vm1, %v6880_v61, -inf  ;;  %v1674_v21 = vsub.f32 0.0, %v1610_v42 }
 0x2ff   : > { %5798 = vpow2.f32 %v2419_v15 }
 0x302   : > { %v2395_v27 = vpop.xlane.xlu1 %2394 }
 0x303   : > { %v2413_v35 = vsub.f32 %v2152_v6, %v2395_v27 }
 0x305   : > { %v2423_v46 = vmul.f32 1.442695, %v2413_v35 }
 0x306   : > { %v1622_v48 = vpop.permute.xlu1 %1621 }
 0x307   : > { %5800 = vpow2.f32 %v2423_v46 }
 0x309   : > { %v6872_v44 = vpop.eup %5798 }
 0x30a   : > { %v1646_v56 = vpop.permute.xlu1 %1645  ;;  %v2435_v28 = vsel %vm2018_vm1, %v6872_v44, 0.0  ;;  %v2401_v40 = vpop.xlane.xlu0 %2400 }
 0x30b   : > { %v1666_v4 = vsel %vm1058_vm4, %v1622_v48, %v1646_v56  ;;  %2436 = vadd.xlane.f32.xlu1 %v2435_v28  ;;  %v1673_v48 = vsub.f32 0.0, %v6715_v33 }
 0x30c   : > { %v1682_v35 = vsel %vm6441_vm5, %v1674_v21, %v1666_v4 }
 0x30d   : > { %v1690_v56 = vmul.f32 %v1682_v35, %v6711_v34 }
 0x30e   : > { %v1795_v5 = vpop.permute.xlu1 %1794  ;;  %v1620_v0 = vpop.permute.xlu0 %1619 }
 0x311   : > { %v6877_v55 = vpop.eup %5800 }
 0x312   : > { %v1819_v6 = vpop.permute.xlu1 %1818  ;;  %v2441_v25 = vsel %vm2018_vm1, %v6877_v55, 0.0 }
 0x313   : > { %v1837_v57 = vsel %vm1001_vm3, %v1795_v5, %v1819_v6  ;;  %2442 = vadd.xlane.f32.xlu0 %v2441_v25  ;;  %v1698_v6 = vadd.f32 %v1690_v56, %v1546_v2  ;;  %v2415_v25 = vsub.f32 %v6824_v36, %v2401_v40  ;;  %v6970_v36 = vld [vmem:[%s8023_s5 + $0x20] sm:$0xff] }
 0x314   : > { %v1901_v29 = vsub.f32 0.0, %v1837_v57  ;;  %v1772_v21 = vmul.f32 %v6860_v22, %v6970_v36 }
 0x316   : > { %v1851_v23 = vpop.permute.xlu1 %1850 }
 0x317   : > { %2391 = vmax.xlane.f32.xlu0 %v2390_v41 }
 0x31a   : > { %v1875_v16 = vpop.permute.xlu1 %1874 }
 0x31b   : > { %v1893_v37 = vsel %vm1058_vm4, %v1851_v23, %v1875_v16  ;;  %2397 = vmax.xlane.f32.xlu0 %v2396_v9 }
 0x31c   : > { %v1909_v7 = vsel %vm6441_vm5, %v1901_v29, %v1893_v37  ;;  %1567 = vrot.lane.b32.xlu1 %v6895_v14, %s8071_s26  ;;  %v2427_v29 = vmul.f32 1.442695, %v2415_v25 }
 0x320   : > { %1569 = vrot.lane.b32.xlu1 %v6906_v32, %s8071_s26 }
 0x324   : > { %1591 = vrot.lane.b32.xlu1 %v6895_v14, %s8068_s25 }
 0x328   : > { %1593 = vrot.lane.b32.xlu1 %v6906_v32, %s8068_s25 }
 0x32c   : > { %1623 = vrot.lane.b32.xlu1 %v6895_v14, %s8070_s23 }
 0x330   : > { %1625 = vrot.lane.b32.xlu1 %v6906_v32, %s8070_s23 }
 0x334   : > { %1647 = vrot.lane.b32.xlu1 %v6895_v14, %s8069_s24 }
 0x338   : > { %1649 = vrot.lane.b32.xlu1 %v6906_v32, %s8069_s24 }
 0x33c   : > { %1796 = vrot.lane.b32.xlu1 %v6924_v39, %s8071_s26 }
 0x33f   : > { %v2407_v15 = vpop.xlane.xlu0 %2406 }
 0x340   : > { %v2417_v27 = vsub.f32 %v6850_v11, %v2407_v15  ;;  %v1545_v11 = vmul.f32 %v6680_v45, %v6432_v50  ;;  %v6955_v50 = vld [vmem:[%s8022_s4 + $0x28] sm:$0xff] }
 0x341   : > { %v6960_v45 = vld [vmem:[%s8023_s5 + $0x28] sm:$0xff]  ;;  %v1917_v37 = vmul.f32 %v1909_v7, %v6955_v50 }
 0x342   : > { %v2431_v46 = vmul.f32 1.442695, %v2417_v27  ;;  %v1773_v42 = vmul.f32 %v6837_v53, %v6960_v45  ;;  %v7003_v53 = vadd.f32 %v6856_v3, %v6817_v59  ;;  %v7019_v3 = vadd.f32 %v6891_v17, %v6752_v10 }
 0x343   : > { %v1644_v1 = vpop.permute.xlu0 %1643  ;;  %v1428_v10 = vadd.f32 %v6142_v38, %v6556_v19  ;;  %v1436_v38 = vadd.f32 %v6556_v19, %v6169_v49 }
 0x344   : > { %5802 = vpow2.f32 %v2431_v46  ;;  %v1665_v28 = vsel %vm1058_vm4, %v1620_v0, %v1644_v1  ;;  %v1925_v27 = vadd.f32 %v1917_v37, %v1773_v42  ;;  %v6989_v1 = vadd.f32 %v6833_v26, %v6641_v24 }
 0x345   : > { %v1681_v20 = vsel %vm6441_vm5, %v1673_v48, %v1665_v28  ;;  %5804 = vpow2.f32 %v2427_v29  ;;  %v2402_v24 = vsel %vm2018_vm1, %v7003_v53, -inf  ;;  %v7013_v26 = vadd.f32 %v6891_v17, %v6743_v13 }
 0x346   : > { %v1689_v4 = vmul.f32 %v1681_v20, %v6687_v31  ;;  %v2011_v20 = vpack.c.bf16 %v1428_v10, %v1428_v10  ;;  %v1548_v10 = vmul.f32 %v6960_v45, %v6906_v32 }
 0x347   : > { %v1793_v5 = vpop.permute.xlu0 %1792 }
 0x348   : > { %v1697_v33 = vadd.f32 %v1689_v4, %v1545_v11  ;;  %v2580_v25 = vsel %vm2486_vm6, %v2011_v20, 0  ;;  %v7075_v20 = vadd.f32 %v6866_v12, %v6817_v59 }
 0x34a   : > { %v6945_v34 = vpack.c.bf16 %v1698_v6, %v1697_v33 }
 0x34b   : > { %v1817_v57 = vpop.permute.xlu0 %1816 }
 0x34c   : > { %v1836_v23 = vsel %vm1001_vm3, %v1793_v5, %v1817_v57 }
 0x34d   : > { %v1900_v31 = vsub.f32 0.0, %v1836_v23 }
 0x34e   : > { %v6948_v41 = vpop.eup %5802 }
 0x34f   : > { %v1849_v16 = vpop.permute.xlu0 %1848  ;;  %v2453_v52 = vsel %vm2018_vm1, %v6948_v41, 0.0  ;;  %v6983_v48 = vpop.eup %5804 }
 0x350   : > { %2454 = vadd.xlane.f32.xlu0 %v2453_v52  ;;  %v2447_v7 = vsel %vm2018_vm1, %v6983_v48, 0.0 }
 0x353   : > { %v1873_v9 = vpop.permute.xlu0 %1872 }
 0x354   : > { %v1892_v40 = vsel %vm1058_vm4, %v1849_v16, %v1873_v9 }
 0x355   : > { %v1908_v0 = vsel %vm6441_vm5, %v1900_v31, %v1892_v40 }
 0x356   : > { %v1916_v15 = vmul.f32 %v1908_v0, %v6965_v60 }
 0x358   : > { %v1924_v35 = vadd.f32 %v1916_v15, %v1772_v21 }
 0x35a   : > { %v6981_v46 = vpack.c.bf16 %v1925_v27, %v1924_v35 }
 0x360   : > { %2448 = vadd.xlane.f32.xlu1 %v2447_v7 }
 0x366   : > { %1798 = vrot.lane.b32.xlu0 %v6989_v1, %s8071_s26 }
 0x371   : > { %1820 = vrot.lane.b32.xlu1 %v6924_v39, %s8068_s25 }
 0x375   : > { %1822 = vrot.lane.b32.xlu1 %v6989_v1, %s8068_s25 }
 0x379   : > { %1852 = vrot.lane.b32.xlu1 %v6924_v39, %s8070_s23 }
 0x37d   : > { %1854 = vrot.lane.b32.xlu1 %v6989_v1, %s8070_s23 }
 0x381   : > { %1876 = vrot.lane.b32.xlu1 %v6924_v39, %s8069_s24 }
 0x385   : > { %1878 = vrot.lane.b32.xlu1 %v6989_v1, %s8069_s24  ;;  %2403 = vmax.xlane.f32.xlu0 %v2402_v24 }
 0x389   : > { %1571 = vrot.lane.b32.xlu1 %v7013_v26, %s8071_s26 }
 0x38d   : > { %1573 = vrot.lane.b32.xlu1 %v7019_v3, %s8071_s26 }
 0x391   : > { %1595 = vrot.lane.b32.xlu1 %v7013_v26, %s8068_s25 }
 0x395   : > { %1597 = vrot.lane.b32.xlu1 %v7019_v3, %s8068_s25  ;;  %s7473_s25 = scalar_lea.vmem %s8030_s12, %s5745_s21 }
 0x398   : > { %v2437_v22 = vpop.xlane.xlu1 %2436 }
 0x399   : > { %5806 = vrcp.f32 %v2437_v22  ;;  %1627 = vrot.lane.b32.xlu1 %v7013_v26, %s8070_s23 }
 0x39b   : > { %1653 = vrot.lane.b32.xlu0 %v7019_v3, %s8069_s24 }
 0x39c   : > { %v1568_v13 = vpop.permute.xlu1 %1567 }
 0x39d   : > { %1629 = vrot.lane.b32.xlu1 %v7019_v3, %s8070_s23 }
 0x3a0   : > { %v1570_v17 = vpop.permute.xlu1 %1569  ;;  %v2443_v56 = vpop.xlane.xlu0 %2442 }
 0x3a1   : > { %5808 = vrcp.f32 %v2443_v56  ;;  %1651 = vrot.lane.b32.xlu1 %v7013_v26, %s8069_s24  ;;  %s5233_s24 = sshll.u32 %s6040_s20, 2 }
 0x3a2   : > { %s789_s23 = scalar_lea.vmem %s8034_s16, %s5233_s24 }
 0x3a3   : > { %v5807_v28 = vpop.eup %5806 }
 0x3a4   : > { %v2467_v2 = vmul.f32 %v5807_v28, %v6872_v44  ;;  %v1592_v11 = vpop.permute.xlu1 %1591  ;;  %v2392_v4 = vpop.xlane.xlu0 %2391 }
 0x3a5   : > { %v1611_v5 = vsel %vm1001_vm3, %v1568_v13, %v1592_v11  ;;  %v2412_v6 = vsub.f32 %v6880_v61, %v2392_v4  ;;  %v2013_v61 = vpack.c.bf16 %v1436_v38, %v1436_v38  ;;  %v1547_v13 = vmul.f32 %v6970_v36, %v6895_v14  ;;  %v7086_v4 = vld [vmem:[%s6538_s22] ss:$0 sm:$0xff] }
 0x3a6   : > { %v2475_v33 = vpack.c.bf16 %v2467_v2, %v2467_v2  ;;  %v1675_v40 = vsub.f32 0.0, %v1611_v5  ;;  %v2408_v2 = vsel %vm2018_vm1, %v7075_v20, -inf  ;;  %v1444_v59 = vadd.f32 %v7086_v4, %v6165_v47 }
 0x3a7   : > { %v2421_v57 = vmul.f32 1.442695, %v2412_v6  ;;  %v2672_v49 = vsel %vm2486_vm6, %v2013_v61, 0 }
 0x3a8   : > { %5589 = vmatmul.mubr.msk.bf16.vlgmr.msra.gmra.mrb[36].mxu0 %vm2018_vm1, %v2475_v33  ;;  %v1594_v23 = vpop.permute.xlu1 %1593  ;;  %v2398_v19 = vpop.xlane.xlu0 %2397  ;;  %v2015_v6 = vpack.c.bf16 %v1444_v59, %v1444_v59 }
 0x3a9   : > { %5599 = vmatpush3.bf16.msra.mxu0 %v2580_v25  ;;  %v1612_v29 = vsel %vm1001_vm3, %v1570_v17, %v1594_v23  ;;  %5600 = vmatprep.mubr.msk.bf16.mxu0 %vm5910_vm2, %v5909_v63  ;;  %5810 = vpow2.f32 %v2421_v57  ;;  %v2414_v37 = vsub.f32 %v6886_v8, %v2398_v19 }
 0x3aa   : > { %5610 = vmatprep.subr.bf16.mxu0 %v5909_v63  ;;  %v1676_v27 = vsub.f32 0.0, %v1612_v29  ;;  %v2764_v23 = vsel %vm2486_vm6, %v2015_v6, 0 }
 0x3ab   : > { %v5809_v44 = vpop.eup %5808  ;;  %v2425_v15 = vmul.f32 1.442695, %v2414_v37 }
 0x3ac   : > { %v2469_v16 = vmul.f32 %v5809_v44, %v6877_v55  ;;  %v1624_v52 = vpop.permute.xlu1 %1623 }
 0x3ad   : > { %5812 = vpow2.f32 %v2425_v15  ;;  %v4117_v15 = vrot.slane %v6732_v58, 4 }
 0x3ae   : > { %v2477_v31 = vpack.c.bf16 %v2469_v16, %v2469_v16 }
 0x3b0   : > { %v1626_v9 = vpop.permute.xlu1 %1625  ;;  %5601 = vmatmul.mubr.msk.bf16.vlgmr.msra.gmra.mrb[40].mxu0 %vm2018_vm1, %v2477_v31  ;;  %v3811_v31 = vrot.slane %v6809_v30, 4 }
 0x3b1   : > { %5611 = vmatpush3.bf16.msra.mxu0 %v2672_v49  ;;  %5612 = vmatprep.mubr.msk.bf16.mxu0 %vm5910_vm2, %v5909_v63 }
 0x3b2   : > { %5622 = vmatprep.subr.bf16.mxu0 %v5909_v63  ;;  %v3816_v19 = vsel %vm2018_vm1, %v3811_v31, 0 }
 0x3b3   : > { %v7056_v42 = vpop.eup %5810 }
 0x3b4   : > { %v1648_v0 = vpop.permute.xlu1 %1647  ;;  %v2438_v22 = vsel %vm2018_vm1, %v7056_v42, 0.0 }
 0x3b5   : > { %v1667_v55 = vsel %vm1058_vm4, %v1624_v52, %v1648_v0  ;;  %v3809_v0 = vrot.slane %v6806_v18, 4 }
 0x3b6   : > { %v1683_v21 = vsel %vm6441_vm5, %v1675_v40, %v1667_v55  ;;  %v3967_v55 = vsel %vm2018_vm1, %v6732_v58, 0  ;;  %v4115_v58 = vrot.slane %v6945_v34, 4 }
 0x3b7   : > { %v1691_v7 = vmul.f32 %v1683_v21, %v6965_v60  ;;  %v7079_v11 = vpop.eup %5812 }
 0x3b8   : > { %v1650_v35 = vpop.permute.xlu1 %1649  ;;  %v2444_v14 = vsel %vm2018_vm1, %v7079_v11, 0.0 }
 0x3b9   : > { %v1668_v24 = vsel %vm1058_vm4, %v1626_v9, %v1650_v35  ;;  %v1699_v60 = vadd.f32 %v1691_v7, %v1547_v13 }
 0x3ba   : > { %v1684_v8 = vsel %vm6441_vm5, %v1676_v27, %v1668_v24  ;;  %2439 = vadd.xlane.f32.xlu0 %v2438_v22 }
 0x3bb   : > { %v1692_v17 = vmul.f32 %v1684_v8, %v6955_v50 }
 0x3bc   : > { %v7083_v32 = vpop.permute.xlu1 %1796 }
 0x3bd   : > { %v1700_v56 = vadd.f32 %v1692_v17, %v1548_v10  ;;  %v4273_v17 = vsel %vm2018_vm1, %v6981_v46, 0 }
 0x3bf   : > { %v7071_v28 = vpack.c.bf16 %v1700_v56, %v1699_v60  ;;  %v1534_v56 = vld [vmem:[%s8022_s4 + $0x38] sm:$0xff] }
 0x3c5   : > { %2409 = vmax.xlane.f32.xlu1 %v2408_v2  ;;  %v1533_v2 = vld [vmem:[%s8022_s4 + $0x30] sm:$0xff] }
 0x3c9   : > { %2445 = vadd.xlane.f32.xlu1 %v2444_v14 }
 0x3dd   : > { %v2455_v45 = vpop.xlane.xlu0 %2454 }
 0x3e1   : > { %v1799_v49 = vpop.permute.xlu0 %1798 }
 0x3ed   : > { %v2449_v50 = vpop.xlane.xlu1 %2448 }
 0x3ee   : > { %5814 = vrcp.f32 %v2449_v50  ;;  %v1541_v50 = vld [vmem:[%s8023_s5 + $0x30] sm:$0xff] }
 0x3ef   : > { %5816 = vrcp.f32 %v2455_v45 }
 0x3f1   : > { %v1821_v36 = vpop.permute.xlu1 %1820 }
 0x3f2   : > { %v1838_v24 = vsel %vm1001_vm3, %v7083_v32, %v1821_v36  ;;  %v1542_v32 = vld [vmem:[%s8023_s5 + $0x38] sm:$0xff]  ;;  %v4423_v36 = vrot.slane %v6981_v46, 4 }
 0x3f3   : > { %v1902_v60 = vsub.f32 0.0, %v1838_v24 }
 0x3f5   : > { %v1823_v12 = vpop.permute.xlu1 %1822 }
 0x3f6   : > { %v1839_v35 = vsel %vm1001_vm3, %v1799_v49, %v1823_v12 }
 0x3f7   : > { %v1903_v8 = vsub.f32 0.0, %v1839_v35 }
 0x3f8   : > { %v5815_v5 = vpop.eup %5814 }
 0x3f9   : > { %v2471_v33 = vmul.f32 %v5815_v5, %v6983_v48  ;;  %v1853_v25 = vpop.permute.xlu1 %1852  ;;  %v5817_v57 = vpop.eup %5816  ;;  %v3654_v48 = vsel %vm2018_vm1, %v6809_v30, 0  ;;  %v1775_v5 = vmul.f32 %v6989_v1, %v1542_v32 }
 0x3fa   : > { %v2473_v44 = vmul.f32 %v5817_v57, %v6948_v41 }
 0x3fb   : > { %v2479_v38 = vpack.c.bf16 %v2471_v33, %v2471_v33  ;;  %v1774_v33 = vmul.f32 %v6924_v39, %v1541_v50 }
 0x3fc   : > { %v2481_v61 = vpack.c.bf16 %v2473_v44, %v2473_v44 }
 0x3fd   : > { %v1855_v29 = vpop.permute.xlu1 %1854  ;;  %5613 = vmatmul.mubr.msk.bf16.vlgmr.msra.gmra.mrb[44].mxu0 %vm2018_vm1, %v2479_v38 }
 0x3fe   : > { %5623 = vmatpush3.bf16.msra.mxu0 %v2764_v23  ;;  %5624 = vmatprep.mubr.msk.bf16.mxu0 %vm5910_vm2, %v5909_v63  ;;  %v4428_v23 = vsel %vm2018_vm1, %v4423_v36, 0 }
 0x3ff   : > { %5634 = vmatprep.subr.bf16.mxu0 %v5909_v63 }
 0x401   : > { %v1877_v47 = vpop.permute.xlu1 %1876 }
 0x402   : > { %v1894_v10 = vsel %vm1058_vm4, %v1853_v25, %v1877_v47 }
 0x403   : > { %v1910_v14 = vsel %vm6441_vm5, %v1902_v60, %v1894_v10 }
 0x404   : > { %v1918_v12 = vmul.f32 %v1910_v14, %v1533_v2 }
 0x405   : > { %v1879_v16 = vpop.permute.xlu1 %1878  ;;  %5625 = vmatmul.mubr.msk.bf16.vlgmr.msra.gmra.mrb[48].mxu0 %vm2018_vm1, %v2481_v61 }
 0x406   : > { %5636 = vmatprep.mubr.msk.bf16.mxu0 %vm5910_vm2, %v5909_v63  ;;  %v1895_v22 = vsel %vm1058_vm4, %v1855_v29, %v1879_v16  ;;  %v1926_v1 = vadd.f32 %v1918_v12, %v1774_v33 }
 0x407   : > { %5635 = vmatpush3.bf16.xpose.msra.mxu0 %v3654_v48  ;;  %v4421_v48 = vrot.slane %v7071_v28, 4 }
 0x408   : > { %5646 = vmatprep.subr.bf16.mxu0 %v5909_v63 }
 0x409   : > { %v1572_v52 = vpop.permute.xlu1 %1571 }
 0x40d   : > { %v1574_v41 = vpop.permute.xlu1 %1573 }
 0x40e   : > { %5637 = vmatmul.mubr.msk.bf16.vlgmr.msra.gmra.mrb[52].mxu0 %vm2018_vm1, %v6806_v18  ;;  %v4122_v18 = vsel %vm2018_vm1, %v4117_v15, 0 }
 0x40f   : > { %5647 = vmatpush3.bf16.xpose.msra.mxu0 %v3816_v19  ;;  %5648 = vmatprep.mubr.msk.bf16.mxu0 %vm5910_vm2, %v5909_v63  ;;  %v1550_v19 = vmul.f32 %v1542_v32, %v7019_v3  ;;  %v1431_v3 = vadd.f32 %v7086_v4, %v6157_v43  ;;  %v1439_v43 = vadd.f32 %v7086_v4, %v6181_v54 }
 0x410   : > { %5658 = vmatprep.subr.bf16.mxu0 %v5909_v63 }
 0x411   : > { %v1596_v37 = vpop.permute.xlu1 %1595 }
 0x412   : > { %v2404_v9 = vpop.xlane.xlu0 %2403  ;;  %v1613_v6 = vsel %vm1001_vm3, %v1572_v52, %v1596_v37 }
 0x413   : > { %v2416_v40 = vsub.f32 %v7003_v53, %v2404_v9  ;;  %v1677_v29 = vsub.f32 0.0, %v1613_v6 }
 0x415   : > { %v2429_v30 = vmul.f32 1.442695, %v2416_v40  ;;  %v1598_v21 = vpop.permute.xlu1 %1597 }
 0x416   : > { %5649 = vmatmul.mubr.msk.bf16.vlgmr.msra.gmra.mrb[56].mxu0 %vm2018_vm1, %v3809_v0  ;;  %v1614_v38 = vsel %vm1001_vm3, %v1574_v41, %v1598_v21  ;;  %v1654_v46 = vpop.permute.xlu0 %1653  ;;  %v1549_v41 = vmul.f32 %v1541_v50, %v7013_v26  ;;  %v2012_v21 = vpack.c.bf16 %v1431_v3, %v1431_v3  ;;  %v1447_v50 = vadd.f32 %v7086_v4, %v6177_v51 }
 0x417   : > { %5818 = vpow2.f32 %v2429_v30  ;;  %5659 = vmatpush3.bf16.xpose.msra.mxu0 %v3967_v55  ;;  %5660 = vmatprep.mubr.msk.bf16.mxu0 %vm5910_vm2, %v5909_v63  ;;  %v1678_v39 = vsub.f32 0.0, %v1614_v38 }
 0x418   : > { %5670 = vmatprep.subr.bf16.mxu0 %v5909_v63  ;;  %v2016_v36 = vpack.c.bf16 %v1447_v50, %v1447_v50 }
 0x419   : > { %v1628_v53 = vpop.permute.xlu1 %1627 }
 0x41d   : > { %v1630_v13 = vpop.permute.xlu1 %1629 }
 0x41e   : > { %5661 = vmatmul.mubr.msk.bf16.vlgmr.msra.gmra.mrb[60].mxu0 %vm2018_vm1, %v6945_v34  ;;  %v1911_v34 = vsel %vm6441_vm5, %v1903_v8, %v1895_v22  ;;  %v1670_v44 = vsel %vm1058_vm4, %v1630_v13, %v1654_v46  ;;  %v2014_v22 = vpack.c.bf16 %v1439_v43, %v1439_v43 }
 0x41f   : > { %5671 = vmatpush3.bf16.xpose.msra.mxu0 %v4122_v18  ;;  %5672 = vmatprep.mubr.msk.bf16.mxu0 %vm5910_vm2, %v5909_v63  ;;  %v1919_v45 = vmul.f32 %v1911_v34, %v1534_v56  ;;  %v1686_v16 = vsel %vm6441_vm5, %v1678_v39, %v1670_v44 }
 0x420   : > { %5682 = vmatprep.subr.bf16.mxu0 %v5909_v63  ;;  %v1694_v31 = vmul.f32 %v1686_v16, %v1534_v56  ;;  %v2718_v10 = vsel %vm2486_vm6, %v2014_v22, 0 }
 0x421   : > { %v7125_v27 = vpop.eup %5818  ;;  %v1652_v59 = vpop.permute.xlu1 %1651  ;;  %v1927_v25 = vadd.f32 %v1919_v45, %v1775_v5  ;;  %v2810_v5 = vsel %vm2486_vm6, %v2016_v36, 0 }
 0x422   : > { %v2450_v7 = vsel %vm2018_vm1, %v7125_v27, 0.0  ;;  %v1669_v57 = vsel %vm1058_vm4, %v1628_v53, %v1652_v59  ;;  %v1702_v62 = vadd.f32 %v1694_v31, %v1550_v19 }
 0x423   : > { %2451 = vadd.xlane.f32.xlu1 %v2450_v7  ;;  %v1685_v47 = vsel %vm6441_vm5, %v1677_v29, %v1669_v57  ;;  %v3648_v61 = vpack.c.bf16 %v1927_v25, %v1926_v1 }
 0x424   : > { %v1693_v52 = vmul.f32 %v1685_v47, %v1533_v2 }
 0x425   : > { %v4579_v49 = vsel %vm2018_vm1, %v3648_v61, 0  ;;  %v4729_v37 = vrot.slane %v3648_v61, 4 }
 0x426   : > { %5673 = vmatmul.mubr.msk.bf16.vlgmr.msra.gmra.mrb[64].mxu0 %vm2018_vm1, %v4115_v58  ;;  %v1701_v9 = vadd.f32 %v1693_v52, %v1549_v41  ;;  %v2626_v58 = vsel %vm2486_vm6, %v2012_v21, 0 }
 0x427   : > { %5683 = vmatpush3.bf16.xpose.msra.mxu0 %v4273_v17  ;;  %5684 = vmatprep.mubr.msk.bf16.mxu0 %vm5910_vm2, %v5909_v63  ;;  %v4734_v26 = vsel %vm2018_vm1, %v4729_v37, 0 }
 0x428   : > { %5694 = vmatprep.subr.bf16.mxu0 %v5909_v63 }
 0x42e   : > { %5685 = vmatmul.mubr.msk.bf16.vlgmr.msra.gmra.mrb[68].mxu0 %vm2018_vm1, %v7071_v28  ;;  %v3644_v28 = vpack.c.bf16 %v1702_v62, %v1701_v9 }
 0x42f   : > { %5695 = vmatpush3.bf16.xpose.msra.mxu0 %v4428_v23  ;;  %5696 = vmatprep.mubr.msk.bf16.mxu0 %vm5910_vm2, %v5909_v63  ;;  %v3649_v23 = vld [vmem:[%s785_s2] sm:$0xff] }
 0x430   : > { %5706 = vmatprep.subr.bf16.mxu0 %v5909_v63  ;;  %v4727_v40 = vrot.slane %v3644_v28, 4 }
 0x436   : > { %5697 = vmatmul.mubr.msk.bf16.vlgmr.msra.gmra.mrb[72].mxu0 %vm2018_vm1, %v4421_v48 }
 0x437   : > { %5707 = vmatpush3.bf16.xpose.msra.mxu0 %v4579_v49  ;;  %5708 = vmatprep.mubr.msk.bf16.mxu0 %vm5910_vm2, %v5909_v63 }
 0x438   : > { %5718 = vmatprep.subr.bf16.mxu0 %v5909_v63 }
 0x43e   : > { %5709 = vmatmul.mubr.msk.bf16.vlgmr.msra.gmra.mrb[76].mxu0 %vm2018_vm1, %v3644_v28 }
 0x43f   : > { %5719 = vmatpush3.bf16.xpose.msra.mxu0 %v4734_v26  ;;  %5720 = vmatprep.mubr.msk.bf16.mxu0 %vm5910_vm2, %v5909_v63 }
 0x446   : > { %5721 = vmatmul.mubr.msk.bf16.vlgmr.msra.gmra.mrb[80].mxu0 %vm2018_vm1, %v4727_v40 }
 0x447   : > { %v2440_v0 = vpop.xlane.xlu0 %2439 }
 0x448   : > { %5820 = vrcp.f32 %v2440_v0 }
 0x452   : > { %v5821_v30 = vpop.eup %5820  ;;  %v2410_v55 = vpop.xlane.xlu1 %2409 }
 0x453   : > { %v2468_v15 = vmul.f32 %v5821_v30, %v7056_v42  ;;  %v2418_v18 = vsub.f32 %v7075_v20, %v2410_v55 }
 0x455   : > { %v2433_v53 = vmul.f32 1.442695, %v2418_v18  ;;  %v2476_v35 = vpack.c.bf16 %v2468_v15, %v2468_v15 }
 0x456   : > { %v2446_v7 = vpop.xlane.xlu1 %2445 }
 0x457   : > { %5822 = vpow2.f32 %v2433_v53  ;;  %5595 = vmatmul.mubr.msk.bf16.vlgmr.msra.gmra.mrb[44].mxu1 %vm2018_vm1, %v2476_v35 }
 0x458   : > { %5824 = vrcp.f32 %v2446_v7  ;;  %5605 = vmatpush3.bf16.msra.mxu1 %v2626_v58  ;;  %5606 = vmatprep.mubr.msk.bf16.mxu1 %vm5910_vm2, %v5909_v63 }
 0x459   : > { %5616 = vmatprep.subr.bf16.mxu1 %v5909_v63 }
 0x461   : > { %v7198_v42 = vpop.eup %5822 }
 0x462   : > { %v5825_v20 = vpop.eup %5824  ;;  %v2456_v24 = vsel %vm2018_vm1, %v7198_v42, 0.0 }
 0x463   : > { %v2470_v8 = vmul.f32 %v5825_v20, %v7079_v11  ;;  %2457 = vadd.xlane.f32.xlu1 %v2456_v24 }
 0x465   : > { %v2478_v13 = vpack.c.bf16 %v2470_v8, %v2470_v8 }
 0x467   : > { %5607 = vmatmul.mubr.msk.bf16.vlgmr.msra.gmra.mrb[48].mxu1 %vm2018_vm1, %v2478_v13 }
 0x468   : > { %5617 = vmatpush3.bf16.msra.mxu1 %v2718_v10  ;;  %5618 = vmatprep.mubr.msk.bf16.mxu1 %vm5910_vm2, %v5909_v63 }
 0x469   : > { %5628 = vmatprep.subr.bf16.mxu1 %v5909_v63 }
 0x47b   : > { %v2524_v54 = vpop.f32.mrb[36].mxu0 }
 0x47c   : > { %2852 = vst.msk [vmem:[#allocation2] sm:$0xff] %vm2018_vm1, %v2524_v54  ;;  %v5590_v17 = vpop.f32.mrb[37].mxu0 }
 0x47d   : > { %v2527_v60 = vpop.f32.mrb[38].mxu0 }
 0x47e   : > { %v5591_v56 = vpop.f32.mrb[39].mxu0 }
 0x483   : > { %v2616_v34 = vpop.f32.mrb[40].mxu0 }
 0x484   : > { %2854 = vst.msk [vmem:[#allocation2 + $0x10] sm:$0xff] %vm2018_vm1, %v2616_v34  ;;  %v5602_v11 = vpop.f32.mrb[41].mxu0 }
 0x485   : > { %v2619_v2 = vpop.f32.mrb[42].mxu0 }
 0x486   : > { %v5603_v14 = vpop.f32.mrb[43].mxu0 }
 0x4b0   : > { %v2452_v32 = vpop.xlane.xlu1 %2451 }
 0x4b1   : > { %5826 = vrcp.f32 %v2452_v32 }
 0x4bb   : > { %v5827_v45 = vpop.eup %5826 }
 0x4bc   : > { %v2472_v59 = vmul.f32 %v5827_v45, %v7125_v27 }
 0x4be   : > { %v2480_v12 = vpack.c.bf16 %v2472_v59, %v2472_v59 }
 0x4c0   : > { %5619 = vmatmul.mubr.msk.bf16.vlgmr.msra.gmra.mrb[52].mxu1 %vm2018_vm1, %v2480_v12  ;;  %v4021_v12 = vld [vmem:[#allocation2 + $0x2] sm:$0x1] }
 0x4c1   : > { %5629 = vmatpush3.bf16.msra.mxu1 %v2810_v5  ;;  %5630 = vmatprep.mubr.msk.bf16.mxu1 %vm5910_vm2, %v5909_v63  ;;  %v4023_v5 = vld [vmem:[#allocation2 + $0x12] sm:$0x1] }
 0x4c2   : > { %5640 = vmatprep.subr.bf16.mxu1 %v5909_v63 }
 0x4d0   : > { %v2708_v6 = vpop.f32.mrb[44].mxu0 }
 0x4d1   : > { %2856 = vst.msk [vmem:[#allocation2 + $0x20] sm:$0xff] %vm2018_vm1, %v2708_v6  ;;  %v5614_v51 = vpop.f32.mrb[45].mxu0  ;;  %v4176_v6 = vld [vmem:[#allocation2 + $0x3] sm:$0x1] }
 0x4d2   : > { %v2711_v4 = vpop.f32.mrb[46].mxu0  ;;  %v4327_v51 = vld [vmem:[#allocation2 + $0x4] sm:$0x1] }
 0x4d3   : > { %v5615_v33 = vpop.f32.mrb[47].mxu0 }
 0x4d4   : > { %v4482_v33 = vld [vmem:[#allocation2 + $0x5] sm:$0x1] }
 0x4d8   : > { %v2800_v25 = vpop.f32.mrb[48].mxu0 }
 0x4d9   : > { %2858 = vst.msk [vmem:[#allocation2 + $0x30] sm:$0xff] %vm2018_vm1, %v2800_v25  ;;  %v5626_v27 = vpop.f32.mrb[49].mxu0  ;;  %v4633_v25 = vld [vmem:[#allocation2 + $0x6] sm:$0x1] }
 0x4da   : > { %v2803_v38 = vpop.f32.mrb[50].mxu0 }
 0x4db   : > { %v5627_v57 = vpop.f32.mrb[51].mxu0  ;;  %v4178_v38 = vld [vmem:[#allocation2 + $0x13] sm:$0x1] }
 0x4dc   : > { %v4788_v57 = vld [vmem:[#allocation2 + $0x7] sm:$0x1] }
 0x4e1   : > { %v3690_v29 = vpop.f32.mrb[52].mxu0 }
 0x4e2   : > { %v7225_v46 = vadd.f32 %v3690_v29, %v3649_v23  ;;  %v5638_v1 = vpop.f32.mrb[53].mxu0  ;;  %v4031_v29 = vpack.c.bf16 %v4023_v5, %v4023_v5 }
 0x4e3   : > { %v3693_v44 = vpop.f32.mrb[54].mxu0  ;;  %v4329_v1 = vld [vmem:[#allocation2 + $0x14] sm:$0x1] }
 0x4e4   : > { %v5639_v39 = vpop.f32.mrb[55].mxu0  ;;  %v3696_v47 = vsel %vm2018_vm1, %v7225_v46, -inf  ;;  %v4484_v44 = vld [vmem:[#allocation2 + $0x15] sm:$0x1] }
 0x4e5   : > { %3697 = vmax.xlane.f32.xlu1 %v3696_v47  ;;  %v4029_v47 = vpack.c.bf16 %v4021_v12, %v4021_v12 }
 0x4e9   : > { %v3852_v61 = vpop.f32.mrb[56].mxu0 }
 0x4ea   : > { %v7229_v16 = vadd.f32 %v3852_v61, %v3649_v23  ;;  %v5650_v48 = vpop.f32.mrb[57].mxu0  ;;  %v4184_v61 = vpack.c.bf16 %v4176_v6, %v4176_v6 }
 0x4eb   : > { %v3855_v52 = vpop.f32.mrb[58].mxu0  ;;  %v4335_v48 = vpack.c.bf16 %v4327_v51, %v4327_v51 }
 0x4ec   : > { %v5651_v31 = vpop.f32.mrb[59].mxu0  ;;  %v3858_v41 = vsel %vm2018_vm1, %v7229_v16, -inf  ;;  %v4186_v52 = vpack.c.bf16 %v4178_v38, %v4178_v38 }
 0x4ed   : > { %3859 = vmax.xlane.f32.xlu1 %v3858_v41  ;;  %v4490_v31 = vpack.c.bf16 %v4482_v33, %v4482_v33  ;;  %v4635_v41 = vld [vmem:[#allocation2 + $0x16] sm:$0x1] }
 0x4f0   : > { %v2458_v49 = vpop.xlane.xlu1 %2457 }
 0x4f1   : > { %5828 = vrcp.f32 %v2458_v49  ;;  %v4003_v19 = vpop.f32.mrb[60].mxu0  ;;  %v4641_v49 = vpack.c.bf16 %v4633_v25, %v4633_v25 }
 0x4f2   : > { %v7233_v9 = vadd.f32 %v4003_v19, %v3649_v23  ;;  %v5662_v62 = vpop.f32.mrb[61].mxu0  ;;  %v4796_v19 = vpack.c.bf16 %v4788_v57, %v4788_v57 }
 0x4f3   : > { %v4006_v37 = vpop.f32.mrb[62].mxu0  ;;  %v4337_v62 = vpack.c.bf16 %v4329_v1, %v4329_v1 }
 0x4f4   : > { %v5663_v28 = vpop.f32.mrb[63].mxu0  ;;  %v4009_v26 = vsel %vm2018_vm1, %v7233_v9, -inf  ;;  %v4492_v37 = vpack.c.bf16 %v4484_v44, %v4484_v44 }
 0x4f5   : > { %4010 = vmax.xlane.f32.xlu0 %v4009_v26  ;;  %v4047_v28 = vunpack.c.l.b16 %v4031_v29  ;;  %v4790_v26 = vld [vmem:[#allocation2 + $0x17] sm:$0x1] }
 0x4f9   : > { %v4158_v40 = vpop.f32.mrb[64].mxu0 }
 0x4fa   : > { %v7237_v0 = vadd.f32 %v4158_v40, %v3649_v23  ;;  %v5674_v3 = vpop.f32.mrb[65].mxu0  ;;  %v4045_v40 = vunpack.c.l.b16 %v4029_v47 }
 0x4fb   : > { %v5829_v30 = vpop.eup %5828  ;;  %v4161_v55 = vpop.f32.mrb[66].mxu0  ;;  %v4200_v3 = vunpack.c.l.b16 %v4184_v61 }
 0x4fc   : > { %v2474_v21 = vmul.f32 %v5829_v30, %v7198_v42  ;;  %v5675_v15 = vpop.f32.mrb[67].mxu0  ;;  %v4164_v18 = vsel %vm2018_vm1, %v7237_v0, -inf  ;;  %v4351_v30 = vunpack.c.l.b16 %v4335_v48  ;;  %v4643_v55 = vpack.c.bf16 %v4635_v41, %v4635_v41 }
 0x4fd   : > { %4165 = vmax.xlane.f32.xlu1 %v4164_v18  ;;  %v4202_v15 = vunpack.c.l.b16 %v4186_v52  ;;  %v4506_v18 = vunpack.c.l.b16 %v4490_v31 }
 0x4fe   : > { %v2482_v53 = vpack.c.bf16 %v2474_v21, %v2474_v21 }
 0x4ff   : > { %v4210_v6 = vrot.slane %v4202_v15, 6 }
 0x500   : > { %5631 = vmatmul.mubr.msk.bf16.vlgmr.msra.gmra.mrb[56].mxu1 %vm2018_vm1, %v2482_v53  ;;  %v4657_v53 = vunpack.c.l.b16 %v4641_v49 }
 0x501   : > { %v4309_v35 = vpop.f32.mrb[68].mxu0  ;;  %5642 = vmatprep.mubr.msk.bf16.mxu1 %vm5910_vm2, %v5909_v63 }
 0x502   : > { %v7245_v7 = vadd.f32 %v4309_v35, %v3649_v23  ;;  %v5686_v58 = vpop.f32.mrb[69].mxu0  ;;  %v4812_v35 = vunpack.c.l.b16 %v4796_v19 }
 0x503   : > { %v4312_v43 = vpop.f32.mrb[70].mxu0 }
 0x504   : > { %v5687_v20 = vpop.f32.mrb[71].mxu0  ;;  %v4315_v42 = vsel %vm2018_vm1, %v7245_v7, -inf }
 0x505   : > { %4316 = vmax.xlane.f32.xlu0 %v4315_v42  ;;  %v4353_v42 = vunpack.c.l.b16 %v4337_v62  ;;  %v4025_v62 = vld [vmem:[#allocation2 + $0x22] sm:$0x1] }
 0x507   : > { %v4361_v57 = vrot.slane %v4353_v42, 6 }
 0x509   : > { %v4464_v24 = vpop.f32.mrb[72].mxu0 }
 0x50a   : > { %v7249_v22 = vadd.f32 %v4464_v24, %v3649_v23  ;;  %v5698_v8 = vpop.f32.mrb[73].mxu0 }
 0x50b   : > { %v4467_v13 = vpop.f32.mrb[74].mxu0  ;;  %v4508_v8 = vunpack.c.l.b16 %v4492_v37  ;;  %v4180_v37 = vld [vmem:[#allocation2 + $0x23] sm:$0x1] }
 0x50c   : > { %v5699_v10 = vpop.f32.mrb[75].mxu0  ;;  %v4470_v54 = vsel %vm2018_vm1, %v7249_v22, -inf  ;;  %v4798_v13 = vpack.c.bf16 %v4790_v26, %v4790_v26 }
 0x50d   : > { %4471 = vmax.xlane.f32.xlu1 %v4470_v54  ;;  %v4055_v10 = vrot.slane %v4047_v28, 6  ;;  %v4516_v47 = vrot.slane %v4508_v8, 6 }
 0x50e   : > { %v4814_v29 = vunpack.c.l.b16 %v4798_v13 }
 0x510   : > { %v4822_v15 = vrot.slane %v4814_v29, 6 }
 0x511   : > { %v4615_v17 = vpop.f32.mrb[76].mxu0 }
 0x512   : > { %v7253_v60 = vadd.f32 %v4615_v17, %v3649_v23  ;;  %v5710_v56 = vpop.f32.mrb[77].mxu0 }
 0x513   : > { %v4618_v34 = vpop.f32.mrb[78].mxu0 }
 0x514   : > { %v5711_v11 = vpop.f32.mrb[79].mxu0  ;;  %v4621_v2 = vsel %vm2018_vm1, %v7253_v60, -inf }
 0x515   : > { %4622 = vmax.xlane.f32.xlu0 %v4621_v2 }
 0x519   : > { %v4770_v14 = vpop.f32.mrb[80].mxu0 }
 0x51a   : > { %v7257_v32 = vadd.f32 %v4770_v14, %v3649_v23  ;;  %v5722_v50 = vpop.f32.mrb[81].mxu0 }
 0x51b   : > { %v4773_v45 = vpop.f32.mrb[82].mxu0  ;;  %v4659_v50 = vunpack.c.l.b16 %v4643_v55 }
 0x51c   : > { %v5723_v36 = vpop.f32.mrb[83].mxu0  ;;  %v4776_v59 = vsel %vm2018_vm1, %v7257_v32, -inf }
 0x51d   : > { %4777 = vmax.xlane.f32.xlu1 %v4776_v59  ;;  %v4667_v61 = vrot.slane %v4659_v50, 6 }
 0x52a   : > { %v2570_v4 = vpop.f32.mrb[44].mxu1 }
 0x52b   : > { %2853 = vst.msk [vmem:[#allocation2 + $0x8] sm:$0xff] %vm2018_vm1, %v2570_v4  ;;  %v5596_v27 = vpop.f32.mrb[45].mxu1 }
 0x52c   : > { %v2573_v23 = vpop.f32.mrb[46].mxu1 }
 0x52d   : > { %v5597_v39 = vpop.f32.mrb[47].mxu1 }
 0x532   : > { %v4022_v21 = vld [vmem:[#allocation2 + $0xa] sm:$0x1]  ;;  %v4177_v43 = vld [vmem:[#allocation2 + $0xb] sm:$0x1]  ;;  %v4328_v20 = vld [vmem:[#allocation2 + $0xc] sm:$0x1] }
 0x533   : > { %v4030_v58 = vpack.c.bf16 %v4022_v21, %v4022_v21  ;;  %v4483_v24 = vld [vmem:[#allocation2 + $0xd] sm:$0x1]  ;;  %v4185_v54 = vpack.c.bf16 %v4177_v43, %v4177_v43  ;;  %v4336_v17 = vpack.c.bf16 %v4328_v20, %v4328_v20  ;;  %v4634_v34 = vld [vmem:[#allocation2 + $0xe] sm:$0x1]  ;;  %v4789_v11 = vld [vmem:[#allocation2 + $0xf] sm:$0x1]  ;;  %v4188_v20 = vpack.c.bf16 %v4180_v37, %v4180_v37 }
 0x534   : > { %v4491_v56 = vpack.c.bf16 %v4483_v24, %v4483_v24  ;;  %v4642_v14 = vpack.c.bf16 %v4634_v34, %v4634_v34  ;;  %v4797_v12 = vpack.c.bf16 %v4789_v11, %v4789_v11  ;;  %v4331_v21 = vld [vmem:[#allocation2 + $0x24] sm:$0x1]  ;;  %v4637_v43 = vld [vmem:[#allocation2 + $0x26] sm:$0x1]  ;;  %v4792_v24 = vld [vmem:[#allocation2 + $0x27] sm:$0x1] }
 0x535   : > { %v4046_v2 = vunpack.c.l.b16 %v4030_v58  ;;  %v4201_v45 = vunpack.c.l.b16 %v4185_v54  ;;  %v4352_v36 = vunpack.c.l.b16 %v4336_v17  ;;  %v4486_v58 = vld [vmem:[#allocation2 + $0x25] sm:$0x1]  ;;  %v4339_v42 = vpack.c.bf16 %v4331_v21, %v4331_v21 }
 0x536   : > { %v4507_v59 = vunpack.c.l.b16 %v4491_v56  ;;  %v4658_v51 = vunpack.c.l.b16 %v4642_v14  ;;  %v4813_v27 = vunpack.c.l.b16 %v4797_v12  ;;  %v4494_v8 = vpack.c.bf16 %v4486_v58, %v4486_v58 }
 0x537   : > { %v4053_v5 = vrot.slane %v4046_v2, 7  ;;  %v4208_v4 = vrot.slane %v4201_v45, 7  ;;  %v4359_v33 = vrot.slane %v4352_v36, 7  ;;  %v4645_v13 = vpack.c.bf16 %v4637_v43, %v4637_v43 }
 0x538   : > { %v4514_v25 = vrot.slane %v4507_v59, 7  ;;  %v4665_v23 = vrot.slane %v4658_v51, 7  ;;  %v4204_v34 = vunpack.c.l.b16 %v4188_v20  ;;  %v4800_v14 = vpack.c.bf16 %v4792_v24, %v4792_v24 }
 0x539   : > { %v4054_v38 = vsel %vm3741_vm8, %v4053_v5, %v4045_v40  ;;  %v4209_v39 = vsel %vm3741_vm8, %v4208_v4, %v4200_v3  ;;  %v4360_v31 = vsel %vm3741_vm8, %v4359_v33, %v4351_v30  ;;  %v4820_v3 = vrot.slane %v4813_v27, 7 }
 0x53a   : > { %v2662_v1 = vpop.f32.mrb[48].mxu1  ;;  %v7264_v44 = vsel %vm3744_vm9, %v4055_v10, %v4054_v38  ;;  %v4211_v52 = vsel %vm3744_vm9, %v4210_v6, %v4209_v39  ;;  %v4515_v41 = vsel %vm3741_vm8, %v4514_v25, %v4506_v18  ;;  %v4666_v49 = vsel %vm3741_vm8, %v4665_v23, %v4657_v53 }
 0x53b   : > { %2855 = vst.msk [vmem:[#allocation2 + $0x18] sm:$0xff] %vm2018_vm1, %v2662_v1  ;;  %v5608_v48 = vpop.f32.mrb[49].mxu1  ;;  %v4362_v28 = vsel %vm3744_vm9, %v4361_v57, %v4360_v31  ;;  %v4517_v26 = vsel %vm3744_vm9, %v4516_v47, %v4515_v41  ;;  %v4668_v40 = vsel %vm3744_vm9, %v4667_v61, %v4666_v49  ;;  %v4821_v30 = vsel %vm3741_vm8, %v4820_v3, %v4812_v35 }
 0x53c   : > { %v2665_v19 = vpop.f32.mrb[50].mxu1  ;;  %v4033_v18 = vpack.c.bf16 %v4025_v62, %v4025_v62  ;;  %v4823_v53 = vsel %vm3744_vm9, %v4822_v15, %v4821_v30  ;;  %v4355_v45 = vunpack.c.l.b16 %v4339_v42  ;;  %v4510_v6 = vunpack.c.l.b16 %v4494_v8 }
 0x53d   : > { %v5609_v55 = vpop.f32.mrb[51].mxu1  ;;  %v4661_v4 = vunpack.c.l.b16 %v4645_v13  ;;  %v4214_v29 = vrot.slane %v4204_v34, 4  ;;  %v4816_v19 = vunpack.c.l.b16 %v4800_v14 }
 0x53e   : > { %v4049_v17 = vunpack.c.l.b16 %v4033_v18  ;;  %v4365_v41 = vrot.slane %v4355_v45, 4  ;;  %v4520_v3 = vrot.slane %v4510_v6, 4 }
 0x53f   : > { %v4671_v55 = vrot.slane %v4661_v4, 4  ;;  %v4826_v20 = vrot.slane %v4816_v19, 4 }
 0x540   : > { %v4059_v23 = vrot.slane %v4049_v17, 4 }
 0x542   : > { %v4024_v10 = vld [vmem:[#allocation2 + $0x1a] sm:$0x1]  ;;  %v4179_v56 = vld [vmem:[#allocation2 + $0x1b] sm:$0x1]  ;;  %v4330_v11 = vld [vmem:[#allocation2 + $0x1c] sm:$0x1] }
 0x543   : > { %v4032_v54 = vpack.c.bf16 %v4024_v10, %v4024_v10  ;;  %v4485_v2 = vld [vmem:[#allocation2 + $0x1d] sm:$0x1]  ;;  %v4187_v50 = vpack.c.bf16 %v4179_v56, %v4179_v56  ;;  %v4338_v35 = vpack.c.bf16 %v4330_v11, %v4330_v11  ;;  %v4636_v59 = vld [vmem:[#allocation2 + $0x1e] sm:$0x1]  ;;  %v4791_v12 = vld [vmem:[#allocation2 + $0x1f] sm:$0x1] }
 0x544   : > { %v4493_v36 = vpack.c.bf16 %v4485_v2, %v4485_v2  ;;  %v4644_v51 = vpack.c.bf16 %v4636_v59, %v4636_v59  ;;  %v4799_v38 = vpack.c.bf16 %v4791_v12, %v4791_v12 }
 0x545   : > { %v4048_v5 = vunpack.c.l.b16 %v4032_v54  ;;  %v4203_v33 = vunpack.c.l.b16 %v4187_v50  ;;  %v4354_v25 = vunpack.c.l.b16 %v4338_v35  ;;  %v4027_v50 = vld [vmem:[#allocation2 + $0x32] sm:$0x1] }
 0x546   : > { %v4509_v27 = vunpack.c.l.b16 %v4493_v36  ;;  %v4660_v1 = vunpack.c.l.b16 %v4644_v51  ;;  %v4815_v48 = vunpack.c.l.b16 %v4799_v38  ;;  %v4035_v12 = vpack.c.bf16 %v4027_v50, %v4027_v50  ;;  %v4488_v51 = vld [vmem:[#allocation2 + $0x35] sm:$0x1] }
 0x547   : > { %v4057_v57 = vrot.slane %v4048_v5, 5  ;;  %v4212_v39 = vrot.slane %v4203_v33, 5  ;;  %v4363_v47 = vrot.slane %v4354_v25, 5  ;;  %v4182_v5 = vld [vmem:[#allocation2 + $0x33] sm:$0x1] }
 0x548   : > { %v4518_v61 = vrot.slane %v4509_v27, 5  ;;  %v4669_v49 = vrot.slane %v4660_v1, 5  ;;  %v4639_v25 = vld [vmem:[#allocation2 + $0x36] sm:$0x1]  ;;  %v4051_v38 = vunpack.c.l.b16 %v4035_v12 }
 0x549   : > { %v4058_v31 = vsel %vm3747_vm10, %v4057_v57, %v7264_v44  ;;  %v4213_v37 = vsel %vm3747_vm10, %v4212_v39, %v4211_v52  ;;  %v4364_v15 = vsel %vm3747_vm10, %v4363_v47, %v4362_v28  ;;  %v4824_v52 = vrot.slane %v4815_v48, 5 }
 0x54a   : > { %v7280_v62 = vsel %vm3750_vm11, %v4059_v23, %v4058_v31  ;;  %v7284_v21 = vsel %vm3750_vm11, %v4214_v29, %v4213_v37  ;;  %v4519_v58 = vsel %vm3747_vm10, %v4518_v61, %v4517_v26  ;;  %v4670_v43 = vsel %vm3747_vm10, %v4669_v49, %v4668_v40  ;;  %v4794_v49 = vld [vmem:[#allocation2 + $0x37] sm:$0x1] }
 0x54b   : > { %v7290_v44 = vsel %vm3750_vm11, %v4365_v41, %v4364_v15  ;;  %v7293_v30 = vsel %vm3750_vm11, %v4520_v3, %v4519_v58  ;;  %v7296_v18 = vsel %vm3750_vm11, %v4671_v55, %v4670_v43  ;;  %v4825_v42 = vsel %vm3747_vm10, %v4824_v52, %v4823_v53 }
 0x54c   : > { %v7300_v24 = vsel %vm3750_vm11, %v4826_v20, %v4825_v42  ;;  %v4190_v57 = vpack.c.bf16 %v4182_v5, %v4182_v5  ;;  %v4496_v29 = vpack.c.bf16 %v4488_v51, %v4488_v51  ;;  %v4647_v1 = vpack.c.bf16 %v4639_v25, %v4639_v25 }
 0x54d   : > { %v4063_v31 = vrot.slane %v4051_v38, 2 }
 0x54e   : > { %v4206_v41 = vunpack.c.l.b16 %v4190_v57  ;;  %v4512_v58 = vunpack.c.l.b16 %v4496_v29  ;;  %v4663_v43 = vunpack.c.l.b16 %v4647_v1 }
 0x550   : > { %v4524_v12 = vrot.slane %v4512_v58, 2  ;;  %v4675_v51 = vrot.slane %v4663_v43, 2  ;;  %v3708_v58 = vld [vmem:[#allocation2] sm:$0x1] }
 0x572   : > { %v3698_v28 = vpop.xlane.xlu1 %3697 }
 0x573   : > { %v3699_v26 = vsub.f32 %v7225_v46, %v3698_v28 }
 0x575   : > { %v3700_v40 = vmul.f32 1.442695, %v3699_v26 }
 0x577   : > { %5830 = vpow2.f32 %v3700_v40 }
 0x57a   : > { %v3860_v8 = vpop.xlane.xlu1 %3859 }
 0x57b   : > { %v3861_v13 = vsub.f32 %v7229_v16, %v3860_v8  ;;  %v4802_v8 = vpack.c.bf16 %v4794_v49, %v4794_v49 }
 0x57d   : > { %v3862_v10 = vmul.f32 1.442695, %v3861_v13 }
 0x57f   : > { %5832 = vpow2.f32 %v3862_v10 }
 0x581   : > { %v7304_v54 = vpop.eup %5830 }
 0x582   : > { %v4011_v17 = vpop.xlane.xlu0 %4010  ;;  %v3702_v56 = vsel %vm2018_vm1, %v7304_v54, 0.0 }
 0x583   : > { %v4012_v53 = vsub.f32 %v7233_v9, %v4011_v17  ;;  %3703 = vadd.xlane.f32.xlu0 %v3702_v56 }
 0x585   : > { %v4013_v34 = vmul.f32 1.442695, %v4012_v53 }
 0x587   : > { %5834 = vpow2.f32 %v4013_v34  ;;  %v4218_v34 = vrot.slane %v4206_v41, 2 }
 0x589   : > { %v7309_v11 = vpop.eup %5832 }
 0x58a   : > { %v4166_v46 = vpop.xlane.xlu1 %4165  ;;  %v3864_v2 = vsel %vm2018_vm1, %v7309_v11, 0.0 }
 0x58b   : > { %v4167_v16 = vsub.f32 %v7237_v0, %v4166_v46  ;;  %3865 = vadd.xlane.f32.xlu1 %v3864_v2  ;;  %v4333_v0 = vld [vmem:[#allocation2 + $0x34] sm:$0x1] }
 0x58c   : > { %v4341_v23 = vpack.c.bf16 %v4333_v0, %v4333_v0 }
 0x58d   : > { %v4168_v14 = vmul.f32 1.442695, %v4167_v16 }
 0x58e   : > { %v4357_v55 = vunpack.c.l.b16 %v4341_v23 }
 0x58f   : > { %5836 = vpow2.f32 %v4168_v14 }
 0x590   : > { %v4369_v50 = vrot.slane %v4357_v55, 2  ;;  %v3711_v55 = vld [vmem:[#allocation2 + $0x18] sm:$0x1] }
 0x591   : > { %v7314_v35 = vpop.eup %5834  ;;  %v3719_v43 = vpack.c.bf16 %v3711_v55, %v3711_v55 }
 0x592   : > { %v4317_v45 = vpop.xlane.xlu0 %4316  ;;  %v4015_v9 = vsel %vm2018_vm1, %v7314_v35, 0.0 }
 0x593   : > { %v4318_v36 = vsub.f32 %v7245_v7, %v4317_v45  ;;  %4016 = vadd.xlane.f32.xlu0 %v4015_v9  ;;  %v2754_v59 = vpop.f32.mrb[52].mxu1 }
 0x594   : > { %2857 = vst.msk [vmem:[#allocation2 + $0x28] sm:$0xff] %vm2018_vm1, %v2754_v59  ;;  %v5620_v6 = vpop.f32.mrb[53].mxu1 }
 0x595   : > { %v4319_v4 = vmul.f32 1.442695, %v4318_v36  ;;  %v2757_v33 = vpop.f32.mrb[54].mxu1 }
 0x596   : > { %v5621_v27 = vpop.f32.mrb[55].mxu1 }
 0x597   : > { %5838 = vpow2.f32 %v4319_v4  ;;  %v4818_v4 = vunpack.c.l.b16 %v4802_v8 }
 0x599   : > { %v7320_v7 = vpop.eup %5836 }
 0x59a   : > { %v4472_v39 = vpop.xlane.xlu1 %4471  ;;  %v4170_v47 = vsel %vm2018_vm1, %v7320_v7, 0.0 }
 0x59b   : > { %v4473_v61 = vsub.f32 %v7249_v22, %v4472_v39  ;;  %4171 = vadd.xlane.f32.xlu1 %v4170_v47  ;;  %v4026_v48 = vld [vmem:[#allocation2 + $0x2a] sm:$0x1]  ;;  %v4181_v37 = vld [vmem:[#allocation2 + $0x2b] sm:$0x1]  ;;  %v4332_v3 = vld [vmem:[#allocation2 + $0x2c] sm:$0x1] }
 0x59c   : > { %v4034_v19 = vpack.c.bf16 %v4026_v48, %v4026_v48  ;;  %v4487_v15 = vld [vmem:[#allocation2 + $0x2d] sm:$0x1]  ;;  %v4189_v20 = vpack.c.bf16 %v4181_v37, %v4181_v37  ;;  %v4340_v42 = vpack.c.bf16 %v4332_v3, %v4332_v3  ;;  %v4638_v26 = vld [vmem:[#allocation2 + $0x2e] sm:$0x1]  ;;  %v4793_v56 = vld [vmem:[#allocation2 + $0x2f] sm:$0x1] }
 0x59d   : > { %v4474_v52 = vmul.f32 1.442695, %v4473_v61  ;;  %v4495_v28 = vpack.c.bf16 %v4487_v15, %v4487_v15  ;;  %v4646_v22 = vpack.c.bf16 %v4638_v26, %v4638_v26  ;;  %v4801_v5 = vpack.c.bf16 %v4793_v56, %v4793_v56  ;;  %v3710_v15 = vld [vmem:[#allocation2 + $0x10] sm:$0x1] }
 0x59e   : > { %v4050_v40 = vunpack.c.l.b16 %v4034_v19  ;;  %v4205_v13 = vunpack.c.l.b16 %v4189_v20  ;;  %v4356_v10 = vunpack.c.l.b16 %v4340_v42  ;;  %v4830_v39 = vrot.slane %v4818_v4, 2  ;;  %v3712_v42 = vld [vmem:[#allocation2 + $0x20] sm:$0x1] }
 0x59f   : > { %5840 = vpow2.f32 %v4474_v52  ;;  %v4511_v17 = vunpack.c.l.b16 %v4495_v28  ;;  %v4662_v46 = vunpack.c.l.b16 %v4646_v22  ;;  %v4817_v29 = vunpack.c.l.b16 %v4801_v5  ;;  %v3713_v28 = vld [vmem:[#allocation2 + $0x28] sm:$0x1] }
 0x5a0   : > { %v4061_v53 = vrot.slane %v4050_v40, 3  ;;  %v4216_v16 = vrot.slane %v4205_v13, 3  ;;  %v4367_v14 = vrot.slane %v4356_v10, 3  ;;  %v3718_v20 = vpack.c.bf16 %v3710_v15, %v3710_v15  ;;  %v3714_v40 = vld [vmem:[#allocation2 + $0x30] sm:$0x1] }
 0x5a1   : > { %v7325_v2 = vpop.eup %5838  ;;  %v4522_v45 = vrot.slane %v4511_v17, 3  ;;  %v3716_v26 = vpack.c.bf16 %v3708_v58, %v3708_v58  ;;  %v3735_v22 = vunpack.c.l.b16 %v3719_v43  ;;  %v3720_v13 = vpack.c.bf16 %v3712_v42, %v3712_v42 }
 0x5a2   : > { %v4623_v9 = vpop.xlane.xlu0 %4622  ;;  %v4321_v36 = vsel %vm2018_vm1, %v7325_v2, 0.0  ;;  %v4062_v59 = vsel %vm3753_vm12, %v4061_v53, %v7280_v62  ;;  %v4217_v33 = vsel %vm3753_vm12, %v4216_v16, %v7284_v21  ;;  %v4368_v25 = vsel %vm3753_vm12, %v4367_v14, %v7290_v44 }
 0x5a3   : > { %v4624_v6 = vsub.f32 %v7253_v60, %v4623_v9  ;;  %4322 = vadd.xlane.f32.xlu0 %v4321_v36  ;;  %v7333_v0 = vsel %vm3756_vm13, %v4063_v31, %v4062_v59  ;;  %v4523_v27 = vsel %vm3753_vm12, %v4522_v45, %v7293_v30  ;;  %v4673_v62 = vrot.slane %v4662_v46, 3 }
 0x5a4   : > { %v7342_v57 = vsel %vm3756_vm13, %v4218_v34, %v4217_v33  ;;  %v7345_v60 = vsel %vm3756_vm13, %v4369_v50, %v4368_v25  ;;  %v7348_v23 = vsel %vm3756_vm13, %v4524_v12, %v4523_v27  ;;  %v4828_v30 = vrot.slane %v4817_v29, 3 }
 0x5a5   : > { %v4625_v38 = vmul.f32 1.442695, %v4624_v6  ;;  %v4674_v21 = vsel %vm3753_vm12, %v4673_v62, %v7296_v18  ;;  %v3721_v10 = vpack.c.bf16 %v3713_v28, %v3713_v28  ;;  %v3734_v17 = vunpack.c.l.b16 %v3718_v20 }
 0x5a6   : > { %v7353_v44 = vsel %vm3756_vm13, %v4675_v51, %v4674_v21  ;;  %v4829_v48 = vsel %vm3753_vm12, %v4828_v30, %v7300_v24  ;;  %v3709_v24 = vld [vmem:[#allocation2 + $0x8] sm:$0x1]  ;;  %v3722_v53 = vpack.c.bf16 %v3714_v40, %v3714_v40  ;;  %v3732_v34 = vunpack.c.l.b16 %v3716_v26 }
 0x5a7   : > { %5842 = vpow2.f32 %v4625_v38  ;;  %v7363_v18 = vsel %vm3756_vm13, %v4830_v39, %v4829_v48  ;;  %v3746_v50 = vrot.slane %v3735_v22, 5  ;;  %v3736_v9 = vunpack.c.l.b16 %v3720_v13 }
 0x5a8   : > { %v3737_v36 = vunpack.c.l.b16 %v3721_v10  ;;  %v3743_v59 = vrot.slane %v3734_v17, 6  ;;  %v3738_v12 = vunpack.c.l.b16 %v3722_v53 }
 0x5a9   : > { %v7355_v1 = vpop.eup %5840  ;;  %v3749_v51 = vrot.slane %v3736_v9, 4  ;;  %v3872_v9 = vld [vmem:[#allocation2 + $0x11] sm:$0x1] }
 0x5aa   : > { %v4778_v47 = vpop.xlane.xlu1 %4777  ;;  %v4476_v61 = vsel %vm2018_vm1, %v7355_v1, 0.0  ;;  %v3752_v4 = vrot.slane %v3737_v36, 3  ;;  %v3755_v25 = vrot.slane %v3738_v12, 2  ;;  %v3875_v12 = vld [vmem:[#allocation2 + $0x29] sm:$0x1] }
 0x5ab   : > { %v4779_v31 = vsub.f32 %v7257_v32, %v4778_v47  ;;  %4477 = vadd.xlane.f32.xlu1 %v4476_v61  ;;  %v3717_v32 = vpack.c.bf16 %v3709_v24, %v3709_v24 }
 0x5ad   : > { %v4780_v41 = vmul.f32 1.442695, %v4779_v31  ;;  %v3733_v52 = vunpack.c.l.b16 %v3717_v32 }
 0x5af   : > { %5844 = vpow2.f32 %v4780_v41  ;;  %v3740_v8 = vrot.slane %v3733_v52, 7 }
 0x5b1   : > { %v7365_v49 = vpop.eup %5842  ;;  %v3742_v14 = vsel %vm3741_vm8, %v3740_v8, %v3732_v34 }
 0x5b2   : > { %v4627_v19 = vsel %vm2018_vm1, %v7365_v49, 0.0  ;;  %v3745_v5 = vsel %vm3744_vm9, %v3743_v59, %v3742_v14 }
 0x5b3   : > { %4628 = vadd.xlane.f32.xlu0 %v4627_v19  ;;  %v3748_v6 = vsel %vm3747_vm10, %v3746_v50, %v3745_v5  ;;  %v3874_v5 = vld [vmem:[#allocation2 + $0x21] sm:$0x1] }
 0x5b4   : > { %v3751_v38 = vsel %vm3750_vm11, %v3749_v51, %v3748_v6  ;;  %v3883_v51 = vpack.c.bf16 %v3875_v12, %v3875_v12 }
 0x5b9   : > { %v7369_v37 = vpop.eup %5844 }
 0x5ba   : > { %v4782_v3 = vsel %vm2018_vm1, %v7369_v37, 0.0 }
 0x5bb   : > { %4783 = vadd.xlane.f32.xlu1 %v4782_v3  ;;  %v3754_v3 = vsel %vm3753_vm12, %v3752_v4, %v3751_v38  ;;  %v3876_v38 = vld [vmem:[#allocation2 + $0x31] sm:$0x1] }
 0x5bc   : > { %v3757_v28 = vsel %vm3756_vm13, %v3755_v25, %v3754_v3 }
 0x5d3   : > { %v2846_v56 = vpop.f32.mrb[56].mxu1 }
 0x5d4   : > { %2859 = vst.msk [vmem:[#allocation2 + $0x38] sm:$0xff] %vm2018_vm1, %v2846_v56  ;;  %v5632_v46 = vpop.f32.mrb[57].mxu1 }
 0x5d5   : > { %v2849_v16 = vpop.f32.mrb[58].mxu1 }
 0x5d6   : > { %v5633_v45 = vpop.f32.mrb[59].mxu1 }
 0x5d7   : > { %v3873_v45 = vld [vmem:[#allocation2 + $0x19] sm:$0x1] }
 0x5d8   : > { %v3881_v36 = vpack.c.bf16 %v3873_v45, %v3873_v45 }
 0x5da   : > { %v3897_v4 = vunpack.c.l.b16 %v3881_v36 }
 0x5db   : > { %v3715_v33 = vld [vmem:[#allocation2 + $0x38] sm:$0x1]  ;;  %v4028_v27 = vld [vmem:[#allocation2 + $0x3a] sm:$0x1]  ;;  %v4183_v29 = vld [vmem:[#allocation2 + $0x3b] sm:$0x1] }
 0x5dc   : > { %v3723_v62 = vpack.c.bf16 %v3715_v33, %v3715_v33  ;;  %v4036_v21 = vpack.c.bf16 %v4028_v27, %v4028_v27  ;;  %v4334_v30 = vld [vmem:[#allocation2 + $0x3c] sm:$0x1]  ;;  %v4489_v39 = vld [vmem:[#allocation2 + $0x3d] sm:$0x1]  ;;  %v4191_v47 = vpack.c.bf16 %v4183_v29, %v4183_v29  ;;  %v4640_v31 = vld [vmem:[#allocation2 + $0x3e] sm:$0x1]  ;;  %v3882_v27 = vpack.c.bf16 %v3874_v5, %v3874_v5 }
 0x5dd   : > { %v4342_v61 = vpack.c.bf16 %v4334_v30, %v4334_v30  ;;  %v4497_v48 = vpack.c.bf16 %v4489_v39, %v4489_v39  ;;  %v4795_v41 = vld [vmem:[#allocation2 + $0x3f] sm:$0x1]  ;;  %v4648_v32 = vpack.c.bf16 %v4640_v31, %v4640_v31  ;;  %v3877_v25 = vld [vmem:[#allocation2 + $0x39] sm:$0x1]  ;;  %v3899_v29 = vunpack.c.l.b16 %v3883_v51 }
 0x5de   : > { %v3739_v19 = vunpack.c.l.b16 %v3723_v62  ;;  %v4052_v24 = vunpack.c.l.b16 %v4036_v21  ;;  %v4207_v55 = vunpack.c.l.b16 %v4191_v47  ;;  %v4803_v43 = vpack.c.bf16 %v4795_v41, %v4795_v41 }
 0x5df   : > { %v4358_v15 = vunpack.c.l.b16 %v4342_v61  ;;  %v4513_v58 = vunpack.c.l.b16 %v4497_v48  ;;  %v4664_v42 = vunpack.c.l.b16 %v4648_v32  ;;  %v3885_v21 = vpack.c.bf16 %v3877_v25, %v3877_v25 }
 0x5e0   : > { %v3758_v52 = vrot.slane %v3739_v19, 1  ;;  %v4065_v20 = vrot.slane %v4052_v24, 1  ;;  %v4220_v26 = vrot.slane %v4207_v55, 1  ;;  %v4819_v17 = vunpack.c.l.b16 %v4803_v43 }
 0x5e1   : > { %v4371_v40 = vrot.slane %v4358_v15, 1  ;;  %v4526_v22 = vrot.slane %v4513_v58, 1  ;;  %v4677_v10 = vrot.slane %v4664_v42, 1  ;;  %v3906_v39 = vrot.slane %v3897_v4, 5 }
 0x5e2   : > { %v3760_v8 = vsel %vm3759_vm14, %v3758_v52, %v3757_v28  ;;  %v7383_v13 = vsel %vm3759_vm14, %v4065_v20, %v7333_v0  ;;  %v7387_v53 = vsel %vm3759_vm14, %v4220_v26, %v7342_v57  ;;  %v4832_v14 = vrot.slane %v4819_v17, 1 }
 0x5e3   : > { %v3761_v56 = vpack.c.b16 %v3760_v8, %v3760_v8  ;;  %v7391_v34 = vsel %vm3759_vm14, %v4371_v40, %v7345_v60  ;;  %v7395_v46 = vsel %vm3759_vm14, %v4526_v22, %v7348_v23  ;;  %v7399_v16 = vsel %vm3759_vm14, %v4677_v10, %v7353_v44  ;;  %v3871_v60 = vld [vmem:[#allocation2 + $0x9] sm:$0x1]  ;;  %v3870_v23 = vld [vmem:[#allocation2 + $0x1] sm:$0x1] }
 0x5e4   : > { %v7405_v57 = vsel %vm3759_vm14, %v4832_v14, %v7363_v18  ;;  %v3879_v50 = vpack.c.bf16 %v3871_v60, %v3871_v60  ;;  %v3880_v44 = vpack.c.bf16 %v3872_v9, %v3872_v9  ;;  %v3878_v6 = vpack.c.bf16 %v3870_v23, %v3870_v23 }
 0x5e5   : > { %v3766_v0 = vsel %vm2486_vm6, %v3761_v56, 0  ;;  %v3884_v47 = vpack.c.bf16 %v3876_v38, %v3876_v38  ;;  %v3898_v61 = vunpack.c.l.b16 %v3882_v27  ;;  %v3901_v19 = vunpack.c.l.b16 %v3885_v21 }
 0x5e6   : > { %5641 = vmatpush3.bf16.msra.mxu1 %v3766_v0  ;;  %v3895_v59 = vunpack.c.l.b16 %v3879_v50  ;;  %v3896_v62 = vunpack.c.l.b16 %v3880_v44  ;;  %v3894_v18 = vunpack.c.l.b16 %v3878_v6  ;;  %v3910_v24 = vrot.slane %v3899_v29, 3 }
 0x5e7   : > { %5652 = vmatprep.subr.bf16.mxu1 %v5909_v63  ;;  %v3900_v32 = vunpack.c.l.b16 %v3884_v47  ;;  %v3908_v55 = vrot.slane %v3898_v61, 4  ;;  %v3914_v43 = vrot.slane %v3901_v19, 1  ;;  %v4893_v61 = vld [vmem:[%s789_s23] sm:$0xf] }
 0x5e8   : > { %v3902_v33 = vrot.slane %v3895_v59, 7  ;;  %v3904_v48 = vrot.slane %v3896_v62, 6  ;;  %5744 = vmatprep.subr.msk.bf16.mxu0 %vm2486_vm6, %v4893_v61 }
 0x5e9   : > { %v3912_v52 = vrot.slane %v3900_v32, 2 }
 0x5ea   : > { %v3903_v30 = vsel %vm3741_vm8, %v3902_v33, %v3894_v18 }
 0x5eb   : > { %v3905_v41 = vsel %vm3744_vm9, %v3904_v48, %v3903_v30  ;;  %v2896_v48 = vld [vmem:[#allocation3 + $0x20] sm:$0xff] }
 0x5ec   : > { %v3907_v3 = vsel %vm3747_vm10, %v3906_v39, %v3905_v41 }
 0x5ed   : > { %v3909_v15 = vsel %vm3750_vm11, %v3908_v55, %v3907_v3  ;;  %v7490_v3 = vld [vmem:[%s7473_s25 + $0x2] ss:$0 sm:$0xff]  ;;  %v2897_v55 = vld [vmem:[#allocation3 + $0x30] sm:$0xff] }
 0x5ee   : > { %v3911_v58 = vsel %vm3753_vm12, %v3910_v24, %v3909_v15 }
 0x5ef   : > { %v3913_v42 = vsel %vm3756_vm13, %v3912_v52, %v3911_v58  ;;  %v2966_v58 = vmul.f32 %v7490_v3, %v2896_v48 }
 0x5f0   : > { %v3915_v28 = vsel %vm3759_vm14, %v3914_v43, %v3913_v42  ;;  %v7496_v43 = vld [vmem:[%s7473_s25 + $0x3] ss:$0 sm:$0xff] }
 0x5f1   : > { %v3916_v22 = vpack.c.b16 %v3915_v28, %v3915_v28  ;;  %v7499_v42 = vld [vmem:[#allocation3 + $0x40] sm:$0xff] }
 0x5f3   : > { %v3921_v10 = vsel %vm2486_vm6, %v3916_v22, 0  ;;  %v7505_v22 = vld [vmem:[%s7473_s25 + $0x4] ss:$0 sm:$0xff] }
 0x610   : > { %v3704_v31 = vpop.xlane.xlu0 %3703 }
 0x611   : > { %5846 = vrcp.f32 %v3704_v31  ;;  %v4907_v31 = vsel %vm2486_vm6, %v4893_v61, 0 }
 0x612   : > { %5731 = vmatpush3.bf16.msra.mxu0 %v4907_v31 }
 0x618   : > { %v3866_v20 = vpop.xlane.xlu1 %3865 }
 0x619   : > { %5848 = vrcp.f32 %v3866_v20  ;;  %v2967_v20 = vmul.f32 %v7490_v3, %v2897_v55 }
 0x61b   : > { %v5847_v26 = vpop.eup %5846 }
 0x61c   : > { %v3706_v40 = vmul.f32 %v5847_v26, %v7304_v54  ;;  %v4067_v54 = vpack.c.b16 %v7383_v13, %v7383_v13  ;;  %v2996_v26 = vmul.f32 %v7496_v43, %v2897_v55 }
 0x61e   : > { %v3707_v8 = vpack.c.bf16 %v3706_v40, %v3706_v40  ;;  %v4072_v60 = vsel %vm2486_vm6, %v4067_v54, 0  ;;  %v2997_v40 = vmul.f32 %v7496_v43, %v7499_v42 }
 0x620   : > { %5643 = vmatmul.mubr.msk.bf16.vlgmr.msra.gmra.mrb[60].mxu1 %vm2018_vm1, %v3707_v8  ;;  %v4017_v17 = vpop.xlane.xlu0 %4016 }
 0x621   : > { %5653 = vmatpush3.bf16.msra.mxu1 %v3921_v10  ;;  %5850 = vrcp.f32 %v4017_v17  ;;  %5654 = vmatprep.mubr.msk.bf16.mxu1 %vm5910_vm2, %v5909_v63  ;;  %v7507_v10 = vld [vmem:[#allocation3 + $0x50] sm:$0xff]  ;;  %v3026_v17 = vmul.f32 %v7505_v22, %v7499_v42 }
 0x622   : > { %5664 = vmatprep.subr.bf16.mxu1 %v5909_v63  ;;  %v3027_v54 = vmul.f32 %v7505_v22, %v7507_v10 }
 0x623   : > { %v5849_v56 = vpop.eup %5848 }
 0x624   : > { %v3868_v0 = vmul.f32 %v5849_v56, %v7309_v11  ;;  %v4222_v11 = vpack.c.b16 %v7387_v53, %v7387_v53 }
 0x626   : > { %v3869_v14 = vpack.c.bf16 %v3868_v0, %v3868_v0  ;;  %v4227_v36 = vsel %vm2486_vm6, %v4222_v11, 0  ;;  %v7512_v0 = vld [vmem:[%s7473_s25 + $0x8] ss:$0 sm:$0xff] }
 0x628   : > { %5655 = vmatmul.mubr.msk.bf16.vlgmr.msra.gmra.mrb[64].mxu1 %vm2018_vm1, %v3869_v14  ;;  %v4172_v50 = vpop.xlane.xlu1 %4171 }
 0x629   : > { %5665 = vmatpush3.bf16.msra.mxu1 %v4072_v60  ;;  %5852 = vrcp.f32 %v4172_v50  ;;  %5666 = vmatprep.mubr.msk.bf16.mxu1 %vm5910_vm2, %v5909_v63  ;;  %v3042_v60 = vld [vmem:[#allocation3 + $0x1] sm:$0xff]  ;;  %v3072_v50 = vld [vmem:[#allocation3 + $0x11] sm:$0xff] }
 0x62a   : > { %5676 = vmatprep.subr.bf16.mxu1 %v5909_v63 }
 0x62b   : > { %v5851_v45 = vpop.eup %5850 }
 0x62c   : > { %v4019_v9 = vmul.f32 %v5851_v45, %v7314_v35  ;;  %v4373_v35 = vpack.c.b16 %v7391_v34, %v7391_v34 }
 0x62e   : > { %v4020_v13 = vpack.c.bf16 %v4019_v9, %v4019_v9  ;;  %v4378_v44 = vsel %vm2486_vm6, %v4373_v35, 0  ;;  %v3057_v35 = vmul.f32 %v7512_v0, %v3072_v50 }
 0x630   : > { %v4323_v23 = vpop.xlane.xlu0 %4322  ;;  %5667 = vmatmul.mubr.msk.bf16.vlgmr.msra.gmra.mrb[68].mxu1 %vm2018_vm1, %v4020_v13  ;;  %v3056_v13 = vmul.f32 %v7512_v0, %v3042_v60  ;;  %v3046_v60 = vld [vmem:[#allocation3 + $0x41] sm:$0xff] }
 0x631   : > { %5854 = vrcp.f32 %v4323_v23  ;;  %5677 = vmatpush3.bf16.msra.mxu1 %v4227_v36  ;;  %5678 = vmatprep.mubr.msk.bf16.mxu1 %vm5910_vm2, %v5909_v63  ;;  %v7522_v36 = vld [vmem:[%s7473_s25 + $0x9] ss:$0 sm:$0xff] }
 0x632   : > { %5688 = vmatprep.subr.bf16.mxu1 %v5909_v63 }
 0x633   : > { %v5853_v59 = vpop.eup %5852 }
 0x634   : > { %v4174_v12 = vmul.f32 %v5853_v59, %v7320_v7  ;;  %v4528_v7 = vpack.c.b16 %v7395_v46, %v7395_v46 }
 0x636   : > { %v4175_v53 = vpack.c.bf16 %v4174_v12, %v4174_v12  ;;  %v4533_v33 = vsel %vm2486_vm6, %v4528_v7, 0 }
 0x638   : > { %5679 = vmatmul.mubr.msk.bf16.vlgmr.msra.gmra.mrb[72].mxu1 %vm2018_vm1, %v4175_v53  ;;  %v4478_v5 = vpop.xlane.xlu1 %4477  ;;  %v3044_v53 = vld [vmem:[#allocation3 + $0x21] sm:$0xff] }
 0x639   : > { %5689 = vmatpush3.bf16.msra.mxu1 %v4378_v44  ;;  %5856 = vrcp.f32 %v4478_v5  ;;  %5690 = vmatprep.mubr.msk.bf16.mxu1 %vm5910_vm2, %v5909_v63  ;;  %v2968_v44 = vmul.f32 %v7490_v3, %v7499_v42  ;;  %v3086_v7 = vmul.f32 %v7522_v36, %v3044_v53 }
 0x63a   : > { %5700 = vmatprep.subr.bf16.mxu1 %v5909_v63 }
 0x63b   : > { %v5855_v6 = vpop.eup %5854 }
 0x63c   : > { %v4325_v51 = vmul.f32 %v5855_v6, %v7325_v2  ;;  %v4679_v2 = vpack.c.b16 %v7399_v16, %v7399_v16  ;;  %v4834_v16 = vpack.c.b16 %v7405_v57, %v7405_v57  ;;  %v7480_v57 = vld [vmem:[%s7473_s25 + $0x1] ss:$0 sm:$0xff] }
 0x63d   : > { %v2938_v32 = vmul.f32 %v7480_v57, %v2896_v48  ;;  %v2939_v9 = vmul.f32 %v7480_v57, %v2897_v55  ;;  %v2940_v23 = vmul.f32 %v7480_v57, %v7499_v42 }
 0x63e   : > { %v4326_v34 = vpack.c.bf16 %v4325_v51, %v4325_v51  ;;  %v4684_v62 = vsel %vm2486_vm6, %v4679_v2, 0  ;;  %v4839_v29 = vsel %vm2486_vm6, %v4834_v16, 0  ;;  %v3085_v51 = vmul.f32 %v7522_v36, %v3072_v50  ;;  %v7535_v2 = vld [vmem:[#allocation3 + $0x60] sm:$0xff] }
 0x63f   : > { %v2999_v16 = vmul.f32 %v7496_v43, %v7535_v2  ;;  %v3028_v61 = vmul.f32 %v7505_v22, %v7535_v2 }
 0x640   : > { %v4629_v4 = vpop.xlane.xlu0 %4628  ;;  %5691 = vmatmul.mubr.msk.bf16.vlgmr.msra.gmra.mrb[76].mxu1 %vm2018_vm1, %v4326_v34  ;;  %v2969_v34 = vmul.f32 %v7490_v3, %v7507_v10 }
 0x641   : > { %5858 = vrcp.f32 %v4629_v4  ;;  %5701 = vmatpush3.bf16.msra.mxu1 %v4533_v33  ;;  %5702 = vmatprep.mubr.msk.bf16.mxu1 %vm5910_vm2, %v5909_v63  ;;  %v7533_v33 = vld [vmem:[%s7473_s25 + $0xa] ss:$0 sm:$0xff] }
 0x642   : > { %5712 = vmatprep.subr.bf16.mxu1 %v5909_v63 }
 0x643   : > { %v5857_v25 = vpop.eup %5856 }
 0x644   : > { %v4480_v27 = vmul.f32 %v5857_v25, %v7355_v1 }
 0x646   : > { %v4481_v46 = vpack.c.bf16 %v4480_v27, %v4480_v27  ;;  %v3045_v27 = vld [vmem:[#allocation3 + $0x31] sm:$0xff] }
 0x648   : > { %5703 = vmatmul.mubr.msk.bf16.vlgmr.msra.gmra.mrb[80].mxu1 %vm2018_vm1, %v4481_v46  ;;  %v4784_v38 = vpop.xlane.xlu1 %4783  ;;  %v2998_v46 = vmul.f32 %v7496_v43, %v7507_v10 }
 0x649   : > { %5713 = vmatpush3.bf16.msra.mxu1 %v4684_v62  ;;  %5860 = vrcp.f32 %v4784_v38  ;;  %5714 = vmatprep.mubr.msk.bf16.mxu1 %vm5910_vm2, %v5909_v63 }
 0x64a   : > { %5724 = vmatprep.subr.bf16.mxu1 %v5909_v63 }
 0x64b   : > { %v5859_v18 = vpop.eup %5858 }
 0x64c   : > { %v4631_v1 = vmul.f32 %v5859_v18, %v7365_v49  ;;  %v7477_v49 = vld [vmem:[%s7473_s25] ss:$0 sm:$0xff]  ;;  %v3114_v18 = vmul.f32 %v7533_v33, %v3044_v53 }
 0x64d   : > { %v2909_v45 = vmul.f32 %v7477_v49, %v2896_v48  ;;  %v2910_v59 = vmul.f32 %v7477_v49, %v2897_v55  ;;  %v2912_v50 = vmul.f32 %v7477_v49, %v7507_v10 }
 0x64e   : > { %v4632_v21 = vpack.c.bf16 %v4631_v1, %v4631_v1 }
 0x64f   : > { %v2947_v5 = vadd.f32 %v2939_v9, %v2909_v45  ;;  %v2948_v4 = vadd.f32 %v2940_v23, %v2910_v59  ;;  %v2941_v45 = vmul.f32 %v7480_v57, %v7507_v10  ;;  %v2942_v9 = vmul.f32 %v7480_v57, %v7535_v2 }
 0x650   : > { %5715 = vmatmul.mubr.msk.bf16.vlgmr.msra.gmra.mrb[84].mxu1 %vm2018_vm1, %v4632_v21  ;;  %v3130_v21 = vld [vmem:[#allocation3 + $0x31] sm:$0xff] }
 0x651   : > { %5725 = vmatpush3.bf16.msra.mxu1 %v4839_v29  ;;  %5726 = vmatprep.mubr.msk.bf16.mxu1 %vm5910_vm2, %v5909_v63  ;;  %v2894_v63 = vld [vmem:[#allocation3] sm:$0xff]  ;;  %v2976_v62 = vadd.f32 %v2968_v44, %v2947_v5  ;;  %v2977_v1 = vadd.f32 %v2969_v34, %v2948_v4  ;;  %v7543_v29 = vld [vmem:[%s7473_s25 + $0xb] ss:$0 sm:$0xff] }
 0x652   : > { %v2907_v41 = vmul.f32 %v7477_v49, %v2894_v63  ;;  %v3159_v63 = vld [vmem:[#allocation3 + $0x41] sm:$0xff]  ;;  %v3143_v31 = vmul.f32 %v7543_v29, %v3130_v21 }
 0x653   : > { %v5861_v30 = vpop.eup %5860  ;;  %v3144_v55 = vmul.f32 %v7543_v29, %v3159_v63  ;;  %v3247_v4 = vld [vmem:[#allocation3 + $0x22] sm:$0xff] }
 0x654   : > { %v4786_v39 = vmul.f32 %v5861_v30, %v7369_v37  ;;  %v2895_v37 = vld [vmem:[#allocation3 + $0x10] sm:$0xff] }
 0x655   : > { %v2937_v19 = vmul.f32 %v7480_v57, %v2895_v37  ;;  %v2908_v24 = vmul.f32 %v7477_v49, %v2895_v37  ;;  %v3006_v37 = vadd.f32 %v2998_v46, %v2976_v62 }
 0x656   : > { %v4787_v47 = vpack.c.bf16 %v4786_v39, %v4786_v39  ;;  %v3115_v39 = vmul.f32 %v7533_v33, %v3045_v27 }
 0x657   : > { %v2945_v15 = vadd.f32 %v2937_v19, %v2907_v41  ;;  %v2946_v52 = vadd.f32 %v2938_v32, %v2908_v24  ;;  %v3007_v41 = vadd.f32 %v2999_v16, %v2977_v1  ;;  %v7554_v24 = vld [vmem:[%s7473_s25 + $0xc] ss:$0 sm:$0xff] }
 0x658   : > { %5727 = vmatmul.mubr.msk.bf16.vlgmr.msra.gmra.mrb[88].mxu1 %vm2018_vm1, %v4787_v47  ;;  %v7546_v47 = vld [vmem:[#allocation3 + $0x70] sm:$0xff] }
 0x659   : > { %v2974_v28 = vadd.f32 %v2966_v58, %v2945_v15  ;;  %v2975_v8 = vadd.f32 %v2967_v20, %v2946_v52  ;;  %v3029_v19 = vmul.f32 %v7505_v22, %v7546_v47  ;;  %v3160_v15 = vld [vmem:[#allocation3 + $0x51] sm:$0xff]  ;;  %v3058_v58 = vmul.f32 %v7512_v0, %v3044_v53 }
 0x65a   : > { %v3036_v52 = vadd.f32 %v3028_v61, %v3006_v37  ;;  %v2971_v34 = vmul.f32 %v7490_v3, %v7546_v47  ;;  %v3000_v61 = vmul.f32 %v7496_v43, %v7546_v47 }
 0x65b   : > { %v3004_v56 = vadd.f32 %v2996_v26, %v2974_v28  ;;  %v3005_v14 = vadd.f32 %v2997_v40, %v2975_v8  ;;  %v3172_v28 = vmul.f32 %v7554_v24, %v3159_v63  ;;  %v3059_v26 = vmul.f32 %v7512_v0, %v3045_v27  ;;  %v3188_v8 = vld [vmem:[#allocation3 + $0x2] sm:$0xff] }
 0x65c   : > { %v3037_v40 = vadd.f32 %v3029_v19, %v3007_v41  ;;  %v7599_v41 = vld [vmem:[#allocation3 + $0x90] sm:$0xff] }
 0x65d   : > { %v3034_v11 = vadd.f32 %v3026_v17, %v3004_v56  ;;  %v3035_v12 = vadd.f32 %v3027_v54, %v3005_v14  ;;  %v7561_v17 = vld [vmem:[%s7473_s25 + $0x10] ss:$0 sm:$0xff]  ;;  %v3173_v54 = vmul.f32 %v7554_v24, %v3160_v15  ;;  %v2911_v14 = vmul.f32 %v7477_v49, %v7499_v42  ;;  %v7576_v42 = vld [vmem:[%s7473_s25 + $0x11] ss:$0 sm:$0xff] }
 0x65e   : > { %v3202_v59 = vmul.f32 %v7561_v17, %v3188_v8  ;;  %v3067_v5 = vadd.f32 %v3059_v26, %v3037_v40  ;;  %v3232_v16 = vmul.f32 %v7576_v42, %v3247_v4 }
 0x65f   : > { %v3064_v6 = vadd.f32 %v3056_v13, %v3034_v11  ;;  %v3065_v25 = vadd.f32 %v3057_v35, %v3035_v12  ;;  %v3218_v11 = vld [vmem:[#allocation3 + $0x12] sm:$0xff]  ;;  %v3087_v13 = vmul.f32 %v7522_v36, %v3045_v27  ;;  %v3066_v12 = vadd.f32 %v3058_v58, %v3036_v52 }
 0x660   : > { %v3088_v35 = vmul.f32 %v7522_v36, %v3046_v60  ;;  %v3203_v44 = vmul.f32 %v7561_v17, %v3218_v11  ;;  %v2949_v10 = vadd.f32 %v2941_v45, %v2911_v14  ;;  %v3231_v46 = vmul.f32 %v7576_v42, %v3218_v11  ;;  %v7604_v52 = vld [vmem:[%s7473_s25 + $0x13] ss:$0 sm:$0xff] }
 0x661   : > { %v3093_v38 = vadd.f32 %v3085_v51, %v3064_v6  ;;  %v3094_v30 = vadd.f32 %v3086_v7, %v3065_v25  ;;  %v7579_v6 = vld [vmem:[#allocation3 + $0x51] sm:$0xff]  ;;  %v2950_v51 = vadd.f32 %v2942_v9, %v2912_v50  ;;  %v2970_v7 = vmul.f32 %v7490_v3, %v7535_v2  ;;  %v7585_v25 = vld [vmem:[#allocation3 + $0x80] sm:$0xff] }
 0x662   : > { %v3095_v62 = vadd.f32 %v3087_v13, %v3066_v12  ;;  %v3096_v21 = vadd.f32 %v3088_v35, %v3067_v5  ;;  %v3145_v58 = vmul.f32 %v7543_v29, %v3160_v15  ;;  %v3030_v8 = vmul.f32 %v7505_v22, %v7585_v25  ;;  %v7612_v50 = vld [vmem:[#allocation3 + $0x42] sm:$0xff]  ;;  %v7614_v15 = vld [vmem:[#allocation3 + $0x71] sm:$0xff] }
 0x663   : > { %v3122_v48 = vadd.f32 %v3114_v18, %v3093_v38  ;;  %v3123_v32 = vadd.f32 %v3115_v39, %v3094_v30  ;;  %v3116_v38 = vmul.f32 %v7533_v33, %v3046_v60  ;;  %v7590_v18 = vld [vmem:[%s7473_s25 + $0x12] ss:$0 sm:$0xff]  ;;  %v3117_v30 = vmul.f32 %v7533_v33, %v7579_v6 }
 0x664   : > { %v3001_v39 = vmul.f32 %v7496_v43, %v7585_v25  ;;  %v2978_v63 = vadd.f32 %v2970_v7, %v2949_v10  ;;  %v2979_v37 = vadd.f32 %v2971_v34, %v2950_v51  ;;  %v3290_v12 = vmul.f32 %v7604_v52, %v7612_v50  ;;  %v7628_v10 = vld [vmem:[#allocation3 + $0x52] sm:$0xff] }
 0x665   : > { %v3151_v20 = vadd.f32 %v3143_v31, %v3122_v48  ;;  %v3152_v56 = vadd.f32 %v3144_v55, %v3123_v32  ;;  %v3276_v48 = vld [vmem:[#allocation3 + $0x32] sm:$0xff]  ;;  %v3161_v31 = vld [vmem:[#allocation3 + $0x61] sm:$0xff]  ;;  %v3260_v32 = vmul.f32 %v7590_v18, %v3247_v4  ;;  %v3124_v55 = vadd.f32 %v3116_v38, %v3095_v62 }
 0x666   : > { %v3125_v26 = vadd.f32 %v3117_v30, %v3096_v21  ;;  %v3146_v40 = vmul.f32 %v7543_v29, %v3161_v31  ;;  %v3009_v14 = vadd.f32 %v3001_v39, %v2979_v37  ;;  %v3289_v9 = vmul.f32 %v7604_v52, %v3276_v48  ;;  %v3334_v30 = vld [vmem:[#allocation3 + $0x3] sm:$0xff]  ;;  %v7644_v39 = vld [vmem:[%s7473_s25 + $0x18] ss:$0 sm:$0xff] }
 0x667   : > { %v3180_v23 = vadd.f32 %v3172_v28, %v3151_v20  ;;  %v3181_v53 = vadd.f32 %v3173_v54, %v3152_v56  ;;  %v3261_v28 = vmul.f32 %v7590_v18, %v3276_v48  ;;  %v3031_v56 = vmul.f32 %v7505_v22, %v7599_v41 }
 0x668   : > { %v3008_v54 = vadd.f32 %v3000_v61, %v2978_v63  ;;  %v3153_v11 = vadd.f32 %v3145_v58, %v3124_v55  ;;  %v3174_v13 = vmul.f32 %v7554_v24, %v3161_v31  ;;  %v3154_v35 = vadd.f32 %v3146_v40, %v3125_v26  ;;  %v3364_v61 = vld [vmem:[#allocation3 + $0x13] sm:$0xff] }
 0x669   : > { %v3210_v27 = vadd.f32 %v3202_v59, %v3180_v23  ;;  %v3211_v1 = vadd.f32 %v3203_v44, %v3181_v53  ;;  %v7619_v23 = vld [vmem:[%s7473_s25 + $0x14] ss:$0 sm:$0xff]  ;;  %v3175_v53 = vmul.f32 %v7554_v24, %v7614_v15  ;;  %v3060_v44 = vmul.f32 %v7512_v0, %v3046_v60 }
 0x66a   : > { %v3061_v5 = vmul.f32 %v7512_v0, %v7579_v6  ;;  %v3038_v51 = vadd.f32 %v3030_v8, %v3008_v54  ;;  %v3039_v7 = vadd.f32 %v3031_v56, %v3009_v14  ;;  %v2944_v34 = vmul.f32 %v7480_v57, %v7585_v25  ;;  %v3019_v8 = vld [vmem:[#allocation3 + $0xa0] sm:$0xff]  ;;  %v7662_v56 = vld [vmem:[%s7473_s25 + $0x19] ss:$0 sm:$0xff] }
 0x66b   : > { %v3239_v19 = vadd.f32 %v3231_v46, %v3210_v27  ;;  %v3240_v20 = vadd.f32 %v3232_v16, %v3211_v1  ;;  %v2913_v27 = vmul.f32 %v7477_v49, %v7535_v2  ;;  %v7634_v46 = vld [vmem:[#allocation3 + $0x61] sm:$0xff]  ;;  %v2914_v62 = vmul.f32 %v7477_v49, %v7546_v47 }
 0x66c   : > { %v2943_v60 = vmul.f32 %v7480_v57, %v7546_v47  ;;  %v3318_v1 = vmul.f32 %v7619_v23, %v7612_v50  ;;  %v3182_v16 = vadd.f32 %v3174_v13, %v3153_v11  ;;  %v3204_v21 = vmul.f32 %v7561_v17, %v3247_v4 }
 0x66d   : > { %v3268_v45 = vadd.f32 %v3260_v32, %v3239_v19  ;;  %v3269_v59 = vadd.f32 %v3261_v28, %v3240_v20  ;;  %v3319_v2 = vmul.f32 %v7619_v23, %v7628_v10  ;;  %v3183_v37 = vadd.f32 %v3175_v53, %v3154_v35  ;;  %v7657_v20 = vld [vmem:[#allocation3 + $0x71] sm:$0xff]  ;;  %v3163_v53 = vld [vmem:[#allocation3 + $0x81] sm:$0xff] }
 0x66e   : > { %v3205_v49 = vmul.f32 %v7561_v17, %v3276_v48  ;;  %v3089_v57 = vmul.f32 %v7522_v36, %v7579_v6  ;;  %v3090_v47 = vmul.f32 %v7522_v36, %v7634_v46  ;;  %v3068_v31 = vadd.f32 %v3060_v44, %v3038_v51 }
 0x66f   : > { %v3297_v38 = vadd.f32 %v3289_v9, %v3268_v45  ;;  %v3298_v63 = vadd.f32 %v3290_v12, %v3269_v59  ;;  %v3069_v4 = vadd.f32 %v3061_v5, %v3039_v7  ;;  %v2972_v19 = vmul.f32 %v7490_v3, %v7585_v25  ;;  %v7667_v45 = vld [vmem:[#allocation3 + $0x23] sm:$0xff] }
 0x670   : > { %v2973_v32 = vmul.f32 %v7490_v3, %v7599_v41  ;;  %v2951_v55 = vadd.f32 %v2943_v60, %v2913_v27  ;;  %v2952_v58 = vadd.f32 %v2944_v34, %v2914_v62  ;;  %v3348_v26 = vmul.f32 %v7644_v39, %v3334_v30  ;;  %v3020_v27 = vld [vmem:[#allocation3 + $0xb0] sm:$0xff]  ;;  %v7680_v62 = vld [vmem:[%s7473_s25 + $0x1a] ss:$0 sm:$0xff] }
 0x671   : > { %v3326_v28 = vadd.f32 %v3318_v1, %v3297_v38  ;;  %v3212_v6 = vadd.f32 %v3204_v21, %v3182_v16  ;;  %v3233_v40 = vmul.f32 %v7576_v42, %v3276_v48  ;;  %v3327_v54 = vadd.f32 %v3319_v2, %v3298_v63  ;;  %v7688_v16 = vld [vmem:[#allocation3 + $0x62] sm:$0xff] }
 0x672   : > { %v3349_v14 = vmul.f32 %v7644_v39, %v3364_v61  ;;  %v3213_v25 = vadd.f32 %v3205_v49, %v3183_v37  ;;  %v3234_v3 = vmul.f32 %v7576_v42, %v7612_v50  ;;  %v3097_v9 = vadd.f32 %v3089_v57, %v3068_v31 }
 0x673   : > { %v3118_v11 = vmul.f32 %v7533_v33, %v7634_v46  ;;  %v3098_v13 = vadd.f32 %v3090_v47, %v3069_v4  ;;  %v3119_v48 = vmul.f32 %v7533_v33, %v7657_v20  ;;  %v3002_v59 = vmul.f32 %v7496_v43, %v7599_v41 }
 0x674   : > { %v2980_v12 = vadd.f32 %v2972_v19, %v2951_v55  ;;  %v2981_v35 = vadd.f32 %v2973_v32, %v2952_v58  ;;  %v3003_v44 = vmul.f32 %v7496_v43, %v3019_v8  ;;  %v3356_v5 = vadd.f32 %v3348_v26, %v3326_v28  ;;  %v7686_v43 = vld [vmem:[#allocation3 + $0x33] sm:$0xff] }
 0x675   : > { %v3377_v51 = vmul.f32 %v7662_v56, %v3364_v61  ;;  %v3241_v7 = vadd.f32 %v3233_v40, %v3212_v6  ;;  %v3262_v34 = vmul.f32 %v7590_v18, %v7612_v50  ;;  %v3357_v60 = vadd.f32 %v3349_v14, %v3327_v54  ;;  %v7699_v32 = vld [vmem:[#allocation3 + $0x91] sm:$0xff]  ;;  %v7712_v40 = vld [vmem:[#allocation3 + $0x43] sm:$0xff] }
 0x676   : > { %v3378_v38 = vmul.f32 %v7662_v56, %v7667_v45  ;;  %v3242_v41 = vadd.f32 %v3234_v3, %v3213_v25  ;;  %v3263_v1 = vmul.f32 %v7590_v18, %v7628_v10  ;;  %v3126_v21 = vadd.f32 %v3118_v11, %v3097_v9  ;;  %v3079_v25 = vld [vmem:[#allocation3 + $0x81] sm:$0xff] }
 0x677   : > { %v3147_v30 = vmul.f32 %v7543_v29, %v7614_v15  ;;  %v3127_v63 = vadd.f32 %v3119_v48, %v3098_v13  ;;  %v3148_v2 = vmul.f32 %v7543_v29, %v3163_v53  ;;  %v3010_v37 = vadd.f32 %v3002_v59, %v2980_v12  ;;  %v7702_v15 = vld [vmem:[%s7473_s25 + $0x1b] ss:$0 sm:$0xff]  ;;  %v7724_v12 = vld [vmem:[%s7473_s25 + $0x1c] ss:$0 sm:$0xff] }
 0x678   : > { %v3032_v49 = vmul.f32 %v7505_v22, %v3019_v8  ;;  %v3011_v57 = vadd.f32 %v3003_v44, %v2981_v35  ;;  %v3033_v47 = vmul.f32 %v7505_v22, %v3020_v27  ;;  %v3385_v61 = vadd.f32 %v3377_v51, %v3356_v5  ;;  %v7714_v8 = vld [vmem:[#allocation3 + $0x72] sm:$0xff] }
 0x679   : > { %v3406_v31 = vmul.f32 %v7680_v62, %v7667_v45  ;;  %v3270_v4 = vadd.f32 %v3262_v34, %v3241_v7  ;;  %v3291_v19 = vmul.f32 %v7604_v52, %v7628_v10  ;;  %v3386_v55 = vadd.f32 %v3378_v38, %v3357_v60  ;;  %v7733_v34 = vld [vmem:[#allocation3 + $0x53] sm:$0xff] }
 0x67a   : > { %v3407_v58 = vmul.f32 %v7680_v62, %v7686_v43  ;;  %v3271_v28 = vadd.f32 %v3263_v1, %v3242_v41  ;;  %v3292_v22 = vmul.f32 %v7604_v52, %v7688_v16  ;;  %v3062_v26 = vmul.f32 %v7512_v0, %v7634_v46 }
 0x67b   : > { %v3063_v6 = vmul.f32 %v7512_v0, %v7657_v20  ;;  %v3155_v54 = vadd.f32 %v3147_v30, %v3126_v21  ;;  %v3176_v14 = vmul.f32 %v7554_v24, %v3163_v53  ;;  %v3156_v3 = vadd.f32 %v3148_v2, %v3127_v63  ;;  %v3108_v30 = vld [vmem:[#allocation3 + $0x91] sm:$0xff] }
 0x67c   : > { %v3177_v9 = vmul.f32 %v7554_v24, %v7699_v32  ;;  %v3040_v11 = vadd.f32 %v3032_v49, %v3010_v37  ;;  %v3041_v13 = vadd.f32 %v3033_v47, %v3011_v57  ;;  %v3414_v48 = vadd.f32 %v3406_v31, %v3385_v61  ;;  %v7744_v49 = vld [vmem:[%s7473_s25 + $0x20] ss:$0 sm:$0xff]  ;;  %v3510_v31 = vld [vmem:[#allocation3 + $0x14] sm:$0xff] }
 0x67d   : > { %v3435_v46 = vmul.f32 %v7702_v15, %v7686_v43  ;;  %v3299_v59 = vadd.f32 %v3291_v19, %v3270_v4  ;;  %v3320_v0 = vmul.f32 %v7619_v23, %v7688_v16  ;;  %v3415_v35 = vadd.f32 %v3407_v58, %v3386_v55 }
 0x67e   : > { %v3436_v53 = vmul.f32 %v7702_v15, %v7712_v40  ;;  %v3300_v44 = vadd.f32 %v3292_v22, %v3271_v28  ;;  %v3321_v5 = vmul.f32 %v7619_v23, %v7714_v8  ;;  %v3092_v51 = vmul.f32 %v7522_v36, %v3079_v25 }
 0x67f   : > { %v3091_v7 = vmul.f32 %v7522_v36, %v7657_v20  ;;  %v3184_v27 = vadd.f32 %v3176_v14, %v3155_v54  ;;  %v3206_v60 = vmul.f32 %v7561_v17, %v7612_v50  ;;  %v3185_v38 = vadd.f32 %v3177_v9, %v3156_v3  ;;  %v3480_v20 = vld [vmem:[#allocation3 + $0x4] sm:$0xff] }
 0x680   : > { %v3207_v41 = vmul.f32 %v7561_v17, %v7628_v10  ;;  %v3070_v1 = vadd.f32 %v3062_v26, %v3040_v11  ;;  %v3071_v21 = vadd.f32 %v3063_v6, %v3041_v13  ;;  %v3443_v63 = vadd.f32 %v3435_v46, %v3414_v48  ;;  %v3165_v9 = vld [vmem:[#allocation3 + $0xa1] sm:$0xff] }
 0x681   : > { %v3464_v2 = vmul.f32 %v7724_v12, %v7712_v40  ;;  %v3328_v37 = vadd.f32 %v3320_v0, %v3299_v59  ;;  %v3350_v36 = vmul.f32 %v7644_v39, %v7667_v45  ;;  %v3444_v57 = vadd.f32 %v3436_v53, %v3415_v35  ;;  %v7760_v11 = vld [vmem:[%s7473_s25 + $0x21] ss:$0 sm:$0xff]  ;;  %v7765_v46 = vld [vmem:[#allocation3 + $0x24] sm:$0xff] }
 0x682   : > { %v3465_v50 = vmul.f32 %v7724_v12, %v7733_v34  ;;  %v3329_v47 = vadd.f32 %v3321_v5, %v3300_v44  ;;  %v3351_v61 = vmul.f32 %v7644_v39, %v7686_v43  ;;  %v3214_v4 = vadd.f32 %v3206_v60, %v3184_v27  ;;  %v7773_v35 = vld [vmem:[#allocation3 + $0x82] sm:$0xff] }
 0x683   : > { %v3235_v19 = vmul.f32 %v7576_v42, %v7628_v10  ;;  %v3236_v45 = vmul.f32 %v7576_v42, %v7688_v16  ;;  %v3120_v55 = vmul.f32 %v7533_v33, %v3079_v25  ;;  %v3215_v58 = vadd.f32 %v3207_v41, %v3185_v38  ;;  %v3166_v41 = vld [vmem:[#allocation3 + $0xb1] sm:$0xff] }
 0x684   : > { %v3099_v28 = vadd.f32 %v3091_v7, %v3070_v1  ;;  %v3100_v22 = vadd.f32 %v3092_v51, %v3071_v21  ;;  %v3121_v26 = vmul.f32 %v7533_v33, %v3108_v30  ;;  %v3472_v6 = vadd.f32 %v3464_v2, %v3443_v63  ;;  %v7780_v1 = vld [vmem:[%s7473_s25 + $0x22] ss:$0 sm:$0xff]  ;;  %v7788_v2 = vld [vmem:[#allocation3 + $0x63] sm:$0xff] }
 0x685   : > { %v3494_v54 = vmul.f32 %v7744_v49, %v3480_v20  ;;  %v3358_v14 = vadd.f32 %v3350_v36, %v3328_v37  ;;  %v3379_v3 = vmul.f32 %v7662_v56, %v7686_v43  ;;  %v3473_v10 = vadd.f32 %v3465_v50, %v3444_v57 }
 0x686   : > { %v3495_v13 = vmul.f32 %v7744_v49, %v3510_v31  ;;  %v3359_v48 = vadd.f32 %v3351_v61, %v3329_v47  ;;  %v3380_v25 = vmul.f32 %v7662_v56, %v7712_v40  ;;  %v3243_v33 = vadd.f32 %v3235_v19, %v3214_v4  ;;  %v7795_v47 = vld [vmem:[#allocation3 + $0x92] sm:$0xff] }
 0x687   : > { %v3264_v59 = vmul.f32 %v7590_v18, %v7688_v16  ;;  %v3265_v43 = vmul.f32 %v7590_v18, %v7714_v8  ;;  %v3149_v0 = vmul.f32 %v7543_v29, %v7699_v32  ;;  %v3244_v53 = vadd.f32 %v3236_v45, %v3215_v58 }
 0x688   : > { %v3128_v44 = vadd.f32 %v3120_v55, %v3099_v28  ;;  %v3129_v5 = vadd.f32 %v3121_v26, %v3100_v22  ;;  %v3150_v51 = vmul.f32 %v7543_v29, %v3165_v9  ;;  %v3502_v7 = vadd.f32 %v3494_v54, %v3472_v6  ;;  %v7786_v29 = vld [vmem:[#allocation3 + $0x34] sm:$0xff]  ;;  %v7803_v28 = vld [vmem:[%s7473_s25 + $0x23] ss:$0 sm:$0xff] }
 0x689   : > { %v3523_v27 = vmul.f32 %v7760_v11, %v3510_v31  ;;  %v3387_v60 = vadd.f32 %v3379_v3, %v3358_v14  ;;  %v3408_v38 = vmul.f32 %v7680_v62, %v7712_v40  ;;  %v3503_v21 = vadd.f32 %v3495_v13, %v3473_v10  ;;  %v7811_v14 = vld [vmem:[#allocation3 + $0x73] sm:$0xff] }
 0x68a   : > { %v3524_v32 = vmul.f32 %v7760_v11, %v7765_v46  ;;  %v3388_v30 = vadd.f32 %v3380_v25, %v3359_v48  ;;  %v3409_v63 = vmul.f32 %v7680_v62, %v7733_v34  ;;  %v3272_v37 = vadd.f32 %v3264_v59, %v3243_v33 }
 0x68b   : > { %v3293_v36 = vmul.f32 %v7604_v52, %v7714_v8  ;;  %v3294_v20 = vmul.f32 %v7604_v52, %v7773_v35  ;;  %v3178_v57 = vmul.f32 %v7554_v24, %v3165_v9  ;;  %v3273_v50 = vadd.f32 %v3265_v43, %v3244_v53 }
 0x68c   : > { %v3157_v61 = vadd.f32 %v3149_v0, %v3128_v44  ;;  %v3158_v31 = vadd.f32 %v3150_v51, %v3129_v5  ;;  %v3179_v4 = vmul.f32 %v7554_v24, %v3166_v41  ;;  %v3531_v19 = vadd.f32 %v3523_v27, %v3502_v7  ;;  %v7809_v24 = vld [vmem:[#allocation3 + $0x44] sm:$0xff] }
 0x68d   : > { %v3552_v45 = vmul.f32 %v7780_v1, %v7765_v46  ;;  %v3416_v55 = vadd.f32 %v3408_v38, %v3387_v60  ;;  %v3437_v58 = vmul.f32 %v7702_v15, %v7733_v34  ;;  %v3532_v22 = vadd.f32 %v3524_v32, %v3503_v21  ;;  %v7826_v5 = vld [vmem:[%s7473_s25 + $0x24] ss:$0 sm:$0xff]  ;;  %v7832_v60 = vld [vmem:[#allocation3 + $0x54] sm:$0xff] }
 0x68e   : > { %v3553_v26 = vmul.f32 %v7780_v1, %v7786_v29  ;;  %v3417_v6 = vadd.f32 %v3409_v63, %v3388_v30  ;;  %v3438_v54 = vmul.f32 %v7702_v15, %v7788_v2  ;;  %v3301_v3 = vadd.f32 %v3293_v36, %v3272_v37 }
 0x68f   : > { %v3322_v9 = vmul.f32 %v7619_v23, %v7773_v35  ;;  %v3323_v10 = vmul.f32 %v7619_v23, %v7795_v47  ;;  %v3208_v13 = vmul.f32 %v7561_v17, %v7688_v16  ;;  %v3302_v48 = vadd.f32 %v3294_v20, %v3273_v50 }
 0x690   : > { %v3186_v25 = vadd.f32 %v3178_v57, %v3157_v61  ;;  %v3187_v33 = vadd.f32 %v3179_v4, %v3158_v31  ;;  %v3209_v59 = vmul.f32 %v7561_v17, %v7714_v8  ;;  %v3560_v43 = vadd.f32 %v3552_v45, %v3531_v19 }
 0x691   : > { %v3581_v0 = vmul.f32 %v7803_v28, %v7786_v29  ;;  %v3445_v53 = vadd.f32 %v3437_v58, %v3416_v55  ;;  %v3466_v44 = vmul.f32 %v7724_v12, %v7788_v2  ;;  %v3561_v51 = vadd.f32 %v3553_v26, %v3532_v22 }
 0x692   : > { %v3582_v16 = vmul.f32 %v7803_v28, %v7809_v24  ;;  %v3446_v7 = vadd.f32 %v3438_v54, %v3417_v6  ;;  %v3467_v27 = vmul.f32 %v7724_v12, %v7811_v14  ;;  %v3330_v17 = vadd.f32 %v3322_v9, %v3301_v3  ;;  %v3311_v54 = vld [vmem:[#allocation3 + $0xa2] sm:$0xff] }
 0x693   : > { %v3352_v38 = vmul.f32 %v7644_v39, %v7712_v40  ;;  %v3353_v41 = vmul.f32 %v7644_v39, %v7733_v34  ;;  %v3237_v21 = vmul.f32 %v7576_v42, %v7714_v8  ;;  %v3331_v32 = vadd.f32 %v3323_v10, %v3302_v48  ;;  %v7866_v48 = vld [vmem:[%s777_s1] ss:$0 sm:$0xff] }
 0x694   : > { %v3216_v30 = vadd.f32 %v3208_v13, %v3186_v25  ;;  %v3217_v63 = vadd.f32 %v3209_v59, %v3187_v33  ;;  %v3238_v37 = vmul.f32 %v7576_v42, %v7773_v35  ;;  %v3589_v36 = vadd.f32 %v3581_v0, %v3560_v43  ;;  %v7874_v0 = vld [vmem:[#allocation3 + $0x83] sm:$0xff] }
 0x695   : > { %v3610_v20 = vmul.f32 %v7826_v5, %v7809_v24  ;;  %v3474_v57 = vadd.f32 %v3466_v44, %v3445_v53  ;;  %v3496_v40 = vmul.f32 %v7744_v49, %v7765_v46  ;;  %v3590_v50 = vadd.f32 %v3582_v16, %v3561_v51 }
 0x696   : > { %v3611_v61 = vmul.f32 %v7826_v5, %v7832_v60  ;;  %v3475_v8 = vadd.f32 %v3467_v27, %v3446_v7  ;;  %v3497_v31 = vmul.f32 %v7744_v49, %v7786_v29  ;;  %v3360_v4 = vadd.f32 %v3352_v38, %v3330_v17  ;;  %v3312_v17 = vld [vmem:[#allocation3 + $0xb2] sm:$0xff] }
 0x697   : > { %v3381_v42 = vmul.f32 %v7662_v56, %v7733_v34  ;;  %v3382_v19 = vmul.f32 %v7662_v56, %v7788_v2  ;;  %v3266_v45 = vmul.f32 %v7590_v18, %v7773_v35  ;;  %v3361_v46 = vadd.f32 %v3353_v41, %v3331_v32 }
 0x698   : > { %v3245_v55 = vadd.f32 %v3237_v21, %v3216_v30  ;;  %v3246_v58 = vadd.f32 %v3238_v37, %v3217_v63  ;;  %v3267_v22 = vmul.f32 %v7590_v18, %v7795_v47  ;;  %v3504_v6 = vadd.f32 %v3496_v40, %v3474_v57  ;;  %v7881_v21 = vld [vmem:[#allocation3 + $0x64] sm:$0xff] }
 0x699   : > { %v3525_v34 = vmul.f32 %v7760_v11, %v7786_v29  ;;  %v3618_v3 = vadd.f32 %v3610_v20, %v3589_v36  ;;  %v3619_v10 = vadd.f32 %v3611_v61, %v3590_v50  ;;  %v3505_v35 = vadd.f32 %v3497_v31, %v3475_v8  ;;  %v3456_v20 = vld [vmem:[#allocation3 + $0x93] sm:$0xff] }
 0x69a   : > { %v3526_v13 = vmul.f32 %v7760_v11, %v7809_v24  ;;  %v3389_v33 = vadd.f32 %v3381_v42, %v3360_v4  ;;  %v3410_v18 = vmul.f32 %v7680_v62, %v7788_v2  ;;  %v3411_v59 = vmul.f32 %v7680_v62, %v7811_v14 }
 0x69b   : > { %v3295_v29 = vmul.f32 %v7604_v52, %v7795_v47  ;;  %v3390_v53 = vadd.f32 %v3382_v19, %v3361_v46  ;;  %v3274_v44 = vadd.f32 %v3266_v45, %v3245_v55  ;;  %v3275_v51 = vadd.f32 %v3267_v22, %v3246_v58  ;;  %v7897_v22 = vld [vmem:[#allocation3 + $0x74] sm:$0xff] }
 0x69c   : > { %v3296_v16 = vmul.f32 %v7604_v52, %v3311_v54  ;;  %v3533_v7 = vadd.f32 %v3525_v34, %v3504_v6  ;;  %v3554_v27 = vmul.f32 %v7780_v1, %v7809_v24  ;;  %v3633_v38 = vadd.f32 %v7866_v48, %v3618_v3 }
 0x69d   : > { %v3634_v41 = vadd.f32 %v7866_v48, %v3619_v10  ;;  %v3534_v47 = vadd.f32 %v3526_v13, %v3505_v35  ;;  %v3555_v32 = vmul.f32 %v7780_v1, %v7832_v60  ;;  %v3418_v30 = vadd.f32 %v3410_v18, %v3389_v33 }
 0x69e   : > { %v3439_v63 = vmul.f32 %v7702_v15, %v7811_v14  ;;  %v3440_v52 = vmul.f32 %v7702_v15, %v7874_v0  ;;  %v3324_v37 = vmul.f32 %v7619_v23, %v3311_v54  ;;  %v3419_v36 = vadd.f32 %v3411_v59, %v3390_v53 }
 0x69f   : > { %v3303_v57 = vadd.f32 %v3295_v29, %v3274_v44  ;;  %v3304_v40 = vadd.f32 %v3296_v16, %v3275_v51  ;;  %v3325_v50 = vmul.f32 %v7619_v23, %v3312_v17  ;;  %v3562_v8 = vadd.f32 %v3554_v27, %v3533_v7 }
 0x6a0   : > { %v3583_v31 = vmul.f32 %v7803_v28, %v7832_v60  ;;  %v3584_v4 = vmul.f32 %v7803_v28, %v7881_v21  ;;  %v3563_v46 = vadd.f32 %v3555_v32, %v3534_v47  ;;  %v3468_v55 = vmul.f32 %v7724_v12, %v7874_v0 }
 0x6a1   : > { %v3447_v6 = vadd.f32 %v3439_v63, %v3418_v30  ;;  %v3469_v23 = vmul.f32 %v7724_v12, %v3456_v20  ;;  %v3354_v34 = vmul.f32 %v7644_v39, %v7788_v2  ;;  %v3355_v54 = vmul.f32 %v7644_v39, %v7811_v14 }
 0x6a2   : > { %v3332_v10 = vadd.f32 %v3324_v37, %v3303_v57  ;;  %v3333_v35 = vadd.f32 %v3325_v50, %v3304_v40  ;;  %v3591_v13 = vadd.f32 %v3583_v31, %v3562_v8  ;;  %v3592_v33 = vadd.f32 %v3584_v4, %v3563_v46  ;;  %v3457_v37 = vld [vmem:[#allocation3 + $0xa3] sm:$0xff] }
 0x6a3   : > { %v3613_v18 = vmul.f32 %v7826_v5, %v7897_v22  ;;  %v3476_v59 = vadd.f32 %v3468_v55, %v3447_v6  ;;  %v3498_v2 = vmul.f32 %v7744_v49, %v7809_v24  ;;  %v3499_v39 = vmul.f32 %v7744_v49, %v7832_v60 }
 0x6a4   : > { %v3383_v29 = vmul.f32 %v7662_v56, %v7811_v14  ;;  %v3362_v53 = vadd.f32 %v3354_v34, %v3332_v10  ;;  %v3363_v44 = vadd.f32 %v3355_v54, %v3333_v35  ;;  %v3384_v51 = vmul.f32 %v7662_v56, %v7874_v0 }
 0x6a5   : > { %v3527_v17 = vmul.f32 %v7760_v11, %v7832_v60  ;;  %v3621_v24 = vadd.f32 %v3613_v18, %v3592_v33  ;;  %v3528_v47 = vmul.f32 %v7760_v11, %v7881_v21  ;;  %v3412_v14 = vmul.f32 %v7680_v62, %v7874_v0 }
 0x6a6   : > { %v3391_v63 = vadd.f32 %v3383_v29, %v3362_v53  ;;  %v3413_v56 = vmul.f32 %v7680_v62, %v3456_v20  ;;  %v3556_v60 = vmul.f32 %v7780_v1, %v7881_v21  ;;  %v3557_v50 = vmul.f32 %v7780_v1, %v7897_v22 }
 0x6a7   : > { %v3636_v57 = vadd.f32 %v7866_v48, %v3621_v24  ;;  %v3441_v0 = vmul.f32 %v7702_v15, %v3456_v20  ;;  %v3442_v62 = vmul.f32 %v7702_v15, %v3457_v37  ;;  %v3470_v20 = vmul.f32 %v7724_v12, %v3457_v37  ;;  %v3602_v15 = vld [vmem:[#allocation3 + $0x94] sm:$0xff] }
 0x6a8   : > { %v3420_v31 = vadd.f32 %v3412_v14, %v3391_v63  ;;  %v3500_v33 = vmul.f32 %v7744_v49, %v7881_v21  ;;  %v3501_v18 = vmul.f32 %v7744_v49, %v7897_v22  ;;  %v3559_v49 = vmul.f32 %v7780_v1, %v3602_v15 }
 0x6aa   : > { %v3449_v10 = vadd.f32 %v3441_v0, %v3420_v31 }
 0x6f3   : > { %v3802_v26 = vpop.f32.mrb[60].mxu1 }
 0x6f4   : > { %v5644_v9 = vpop.f32.mrb[61].mxu1  ;;  %v4881_v42 = vadd.f32 %v3802_v26, %v3633_v38 }
 0x6f5   : > { %v3805_v25 = vpop.f32.mrb[62].mxu1  ;;  %v3448_v9 = vadd.f32 %v3440_v52, %v3419_v36  ;;  %v3392_v52 = vadd.f32 %v3384_v51, %v3363_v44  ;;  %v3529_v44 = vmul.f32 %v7760_v11, %v7897_v22 }
 0x6f6   : > { %v5645_v43 = vpop.f32.mrb[63].mxu1  ;;  %v3612_v25 = vmul.f32 %v7826_v5, %v7881_v21 }
 0x6f7   : > { %v3477_v43 = vadd.f32 %v3469_v23, %v3448_v9  ;;  %v3421_v4 = vadd.f32 %v3413_v56, %v3392_v52  ;;  %v3587_v56 = vmul.f32 %v7803_v28, %v3602_v15 }
 0x6f8   : > { %v3620_v7 = vadd.f32 %v3612_v25, %v3591_v13  ;;  %v3615_v25 = vmul.f32 %v7826_v5, %v3602_v15 }
 0x6f9   : > { %v3507_v30 = vadd.f32 %v3499_v39, %v3477_v43  ;;  %v3450_v35 = vadd.f32 %v3442_v62, %v3421_v4 }
 0x6fa   : > { %v3635_v36 = vadd.f32 %v7866_v48, %v3620_v7 }
 0x6fb   : > { %v3957_v61 = vpop.f32.mrb[64].mxu1  ;;  %v3536_v8 = vadd.f32 %v3528_v47, %v3507_v30  ;;  %v3603_v30 = vld [vmem:[#allocation3 + $0xa4] sm:$0xff] }
 0x6fc   : > { %v4882_v19 = vadd.f32 %v3957_v61, %v3634_v41  ;;  %v5656_v45 = vpop.f32.mrb[65].mxu1  ;;  %v3506_v41 = vadd.f32 %v3498_v2, %v3476_v59  ;;  %v3601_v61 = vld [vmem:[#allocation3 + $0x84] sm:$0xff]  ;;  %v3478_v2 = vadd.f32 %v3470_v20, %v3449_v10  ;;  %v3616_v0 = vmul.f32 %v7826_v5, %v3603_v30 }
 0x6fd   : > { %v3960_v58 = vpop.f32.mrb[66].mxu1  ;;  %v3586_v34 = vmul.f32 %v7803_v28, %v3601_v61  ;;  %v3565_v9 = vadd.f32 %v3557_v50, %v3536_v8  ;;  %v3614_v13 = vmul.f32 %v7826_v5, %v3601_v61  ;;  %v3530_v51 = vmul.f32 %v7760_v11, %v3601_v61 }
 0x6fe   : > { %v4889_v3 = vpack.c.bf16 %v4882_v19, %v4881_v42  ;;  %v5657_v26 = vpop.f32.mrb[67].mxu1  ;;  %v3535_v40 = vadd.f32 %v3527_v17, %v3506_v41  ;;  %v3458_v42 = vld [vmem:[#allocation3 + $0xb3] sm:$0xff]  ;;  %v3585_v58 = vmul.f32 %v7803_v28, %v7897_v22  ;;  %v3508_v17 = vadd.f32 %v3500_v33, %v3478_v2 }
 0x6ff   : > { %v3471_v54 = vmul.f32 %v7724_v12, %v3458_v42  ;;  %v3594_v12 = vadd.f32 %v3586_v34, %v3565_v9 }
 0x700   : > { %5732 = vmatprep.mubr.msk.bf16.mxu0 %vm2018_vm1, %v4889_v3  ;;  %v3564_v23 = vadd.f32 %v3556_v60, %v3535_v40  ;;  %v3537_v47 = vadd.f32 %v3529_v44, %v3508_v17  ;;  %v3604_v40 = vld [vmem:[#allocation3 + $0xb4] sm:$0xff] }
 0x701   : > { %v3479_v39 = vadd.f32 %v3471_v54, %v3450_v35  ;;  %v3617_v8 = vmul.f32 %v7826_v5, %v3604_v40 }
 0x702   : > { %v3593_v59 = vadd.f32 %v3585_v58, %v3564_v23 }
 0x703   : > { %v4108_v16 = vpop.f32.mrb[68].mxu1  ;;  %v3509_v21 = vadd.f32 %v3501_v18, %v3479_v39 }
 0x704   : > { %v5668_v27 = vpop.f32.mrb[69].mxu1  ;;  %v4883_v45 = vadd.f32 %v4108_v16, %v3635_v36  ;;  %v3622_v16 = vadd.f32 %v3614_v13, %v3593_v59 }
 0x705   : > { %v4111_v38 = vpop.f32.mrb[70].mxu1  ;;  %v3623_v27 = vadd.f32 %v3615_v25, %v3594_v12  ;;  %v3538_v14 = vadd.f32 %v3530_v51, %v3509_v21 }
 0x706   : > { %v5669_v32 = vpop.f32.mrb[71].mxu1  ;;  %v3558_v38 = vmul.f32 %v7780_v1, %v3601_v61  ;;  %v3637_v24 = vadd.f32 %v7866_v48, %v3622_v16  ;;  %v3588_v1 = vmul.f32 %v7803_v28, %v3603_v30 }
 0x707   : > { %v3638_v41 = vadd.f32 %v7866_v48, %v3623_v27 }
 0x708   : > { %v3566_v60 = vadd.f32 %v3558_v38, %v3537_v47 }
 0x70a   : > { %v3595_v50 = vadd.f32 %v3587_v56, %v3566_v60 }
 0x70b   : > { %v4263_v19 = vpop.f32.mrb[72].mxu1 }
 0x70c   : > { %v4884_v46 = vadd.f32 %v4263_v19, %v3636_v57  ;;  %v5680_v55 = vpop.f32.mrb[73].mxu1  ;;  %v3567_v57 = vadd.f32 %v3559_v49, %v3538_v14  ;;  %v3624_v42 = vadd.f32 %v3616_v0, %v3595_v50 }
 0x70d   : > { %v4266_v6 = vpop.f32.mrb[74].mxu1 }
 0x70e   : > { %v4890_v3 = vpack.c.bf16 %v4884_v46, %v4883_v45  ;;  %v5681_v26 = vpop.f32.mrb[75].mxu1  ;;  %v3596_v61 = vadd.f32 %v3588_v1, %v3567_v57  ;;  %v3639_v46 = vadd.f32 %v7866_v48, %v3624_v42 }
 0x710   : > { %5733 = vmatmul.mubr.msk.bf16.vlgmr.msra.gmra.mrb[84].mxu0 %vm2018_vm1, %v4890_v3  ;;  %v3625_v45 = vadd.f32 %v3617_v8, %v3596_v61 }
 0x712   : > { %v3640_v55 = vadd.f32 %v7866_v48, %v3625_v45  ;;  %v5352_v48 = vld [vmem:[%s8035_s17] ss:$0 sm:$0xff] (!%p5351_p7) }
 0x713   : > { %v4414_v29 = vpop.f32.mrb[76].mxu1  ;;  %4985 = vst.msk [vmem:[%s6056_s0] sm:$0xff] (!%p5351_p7), %vm843_vm0, %v5352_v48  ;;  %4986 = vst.msk [vmem:[%s6056_s0 + $0x8] sm:$0xff] (!%p5351_p7), %vm843_vm0, %v5352_v48 }
 0x714   : > { %v5692_v43 = vpop.f32.mrb[77].mxu1  ;;  %v4885_v22 = vadd.f32 %v4414_v29, %v3637_v24  ;;  %4987 = vst.msk [vmem:[%s6056_s0 + $0x10] sm:$0xff] (!%p5351_p7), %vm843_vm0, %v5352_v48  ;;  %4988 = vst.msk [vmem:[%s6056_s0 + $0x18] sm:$0xff] (!%p5351_p7), %vm843_vm0, %v5352_v48 }
 0x715   : > { %v4417_v53 = vpop.f32.mrb[78].mxu1  ;;  %4989 = vst.msk [vmem:[%s6056_s0 + $0x20] sm:$0xff] (!%p5351_p7), %vm843_vm0, %v5352_v48  ;;  %4990 = vst.msk [vmem:[%s6056_s0 + $0x28] sm:$0xff] (!%p5351_p7), %vm843_vm0, %v5352_v48 }
 0x716   : > { %v5693_v7 = vpop.f32.mrb[79].mxu1  ;;  %4991 = vst.msk [vmem:[%s6056_s0 + $0x30] sm:$0xff] (!%p5351_p7), %vm843_vm0, %v5352_v48  ;;  %4992 = vst.msk [vmem:[%s6056_s0 + $0x38] sm:$0xff] (!%p5351_p7), %vm843_vm0, %v5352_v48 }
 0x71b   : > { %v4569_v32 = vpop.f32.mrb[80].mxu1 }
 0x71c   : > { %v4886_v63 = vadd.f32 %v4569_v32, %v3638_v41  ;;  %v5704_v11 = vpop.f32.mrb[81].mxu1 }
 0x71d   : > { %v4572_v52 = vpop.f32.mrb[82].mxu1 }
 0x71e   : > { %v4891_v37 = vpack.c.bf16 %v4886_v63, %v4885_v22  ;;  %v5705_v36 = vpop.f32.mrb[83].mxu1 }
 0x720   : > { %5736 = vmatprep.mubr.msk.bf16.mxu0 %vm2018_vm1, %v4891_v37 }
 0x723   : > { %v4720_v31 = vpop.f32.mrb[84].mxu1 }
 0x724   : > { %v5716_v4 = vpop.f32.mrb[85].mxu1  ;;  %v4887_v58 = vadd.f32 %v4720_v31, %v3639_v46 }
 0x725   : > { %v4723_v62 = vpop.f32.mrb[86].mxu1 }
 0x726   : > { %v5717_v19 = vpop.f32.mrb[87].mxu1 }
 0x72b   : > { %v4875_v28 = vpop.f32.mrb[88].mxu1 }
 0x72c   : > { %v4888_v6 = vadd.f32 %v4875_v28, %v3640_v55  ;;  %v5728_v23 = vpop.f32.mrb[89].mxu1 }
 0x72d   : > { %v4878_v34 = vpop.f32.mrb[90].mxu1 }
 0x72e   : > { %v4892_v20 = vpack.c.bf16 %v4888_v6, %v4887_v58  ;;  %v5729_v54 = vpop.f32.mrb[91].mxu1 }
 0x730   : > { %5737 = vmatmul.mubr.msk.bf16.gmra.mrb[88].mxu0 %vm2018_vm1, %v4892_v20 }
 0x7e3   : > { %v5734_v5 = vpop.f32.mrb[84].mxu0 }
 0x7e4   : > { %v4943_v3 = vpop.f32.mrb[85].mxu0 }
 0x7e5   : > { %v5735_v26 = vpop.f32.mrb[86].mxu0 }
 0x7e6   : > { %v4946_v9 = vpop.f32.mrb[87].mxu0 }
 0x800   : > { %4977 = sbr.rel (%p5351_p7) target bundleno = 2055 (0x807), region = 96 }
 0x803   : > { %v5738_v15 = vpop.f32.mrb[88].mxu0 }
 0x804   : > { %v4959_v10 = vpop.f32.mrb[89].mxu0 }
 0x805   : > { %v5739_v35 = vpop.f32.mrb[90].mxu0 }
 0x806   : > { %v4962_v13 = vpop.f32.mrb[91].mxu0 }
 0x807 PF: > { %v4993_v25 = vld [vmem:[%s6056_s0] sm:$0xff]  ;;  %v4994_v33 = vld [vmem:[%s6056_s0 + $0x8] sm:$0xff]  ;;  %v4995_v18 = vld [vmem:[%s6056_s0 + $0x10] sm:$0xff] }
 0x808   : > { %v5001_v59 = vadd.f32 %v4993_v25, %v4943_v3  ;;  %v5002_v12 = vadd.f32 %v4994_v33, %v4946_v9  ;;  %v5003_v2 = vadd.f32 %v5734_v5, %v4995_v18  ;;  %v4996_v39 = vld [vmem:[%s6056_s0 + $0x18] sm:$0xff]  ;;  %v4997_v29 = vld [vmem:[%s6056_s0 + $0x20] sm:$0xff]  ;;  %v4998_v43 = vld [vmem:[%s6056_s0 + $0x28] sm:$0xff] }
 0x809   : > { %v5004_v53 = vadd.f32 %v5735_v26, %v4996_v39  ;;  %v5005_v44 = vadd.f32 %v4997_v29, %v4959_v10  ;;  %v5006_v51 = vadd.f32 %v4998_v43, %v4962_v13  ;;  %v4999_v16 = vld [vmem:[%s6056_s0 + $0x30] sm:$0xff]  ;;  %v5000_v7 = vld [vmem:[%s6056_s0 + $0x38] sm:$0xff] }
 0x80a   : > { %5009 = vst.msk [vmem:[%s6056_s0] sm:$0xff] %vm843_vm0, %v5001_v59  ;;  %5010 = vst.msk [vmem:[%s6056_s0 + $0x8] sm:$0xff] %vm843_vm0, %v5002_v12  ;;  %v5007_v27 = vadd.f32 %v5738_v15, %v4999_v16  ;;  %v5008_v17 = vadd.f32 %v5739_v35, %v5000_v7 }
 0x80b   : > { %5011 = vst.msk [vmem:[%s6056_s0 + $0x10] sm:$0xff] %vm843_vm0, %v5003_v2  ;;  %5012 = vst.msk [vmem:[%s6056_s0 + $0x18] sm:$0xff] %vm843_vm0, %v5004_v53 }
 0x80c   : > { %5013 = vst.msk [vmem:[%s6056_s0 + $0x20] sm:$0xff] %vm843_vm0, %v5005_v44  ;;  %5014 = vst.msk [vmem:[%s6056_s0 + $0x28] sm:$0xff] %vm843_vm0, %v5006_v51 }
 0x80d   : > { %5015 = vst.msk [vmem:[%s6056_s0 + $0x30] sm:$0xff] %vm843_vm0, %v5007_v27  ;;  %5016 = vst.msk [vmem:[%s6056_s0 + $0x38] sm:$0xff] %vm843_vm0, %v5008_v17 }
 0x80e PF: > { %s8073_s27 = sld [smem:[#allocation6_spill]]  ;;  %s8075_s28 = sld [smem:[#allocation5_spill]] }
 0x80f   : > { %s8076_s29 = sld [smem:[#allocation7_spill]]  ;;  %s8077_s30 = sld [smem:[#allocation8_spill]] }
 0x814   : > { %s28_s0 = sadd.s32 1, %s8073_s27   ;;  %s8074_s27 = sld [smem:[#allocation4_spill]] }
 0x815   : > { %p25_p8 = scmp.ge.s32.totalorder %s28_s0, 10  }
 0x817   :  { %27 = sbr.rel (!%p25_p8) target bundleno = 6 (0x6), region = 170 }

</bundles_post_ra>
